<compile_context>
chip_gen: v6e
topology: v6e:2x2x1
jax: 0.10.0
libtpu: 0.0.40
codegen_flags: <defaults>
</compile_context>

<pallas_src>
import functools
import math

import jax
import jax.numpy as jnp
from jax.experimental import pallas as pl
from jax.experimental.pallas import tpu as pltpu


# ----------------------------------------------------------------------------
# Fused kernel: patch-embed -> L x transformer block -> final LN + head
# ----------------------------------------------------------------------------
def _fused_vit_kernel(patches_ref, projw_ref, projb_ref, pos_ref,
                      ln1w_ref, ln1b_ref, wqkv_ref, wproj_ref, bproj_ref,
                      ln2w_ref, ln2b_ref, wfc1_ref, bfc1_ref, wfc2_ref, bfc2_ref,
                      normw_ref, normb_ref, headw_ref,
                      out_ref, tok_ref, *, num_heads):
    layer = pl.program_id(1)
    last = pl.num_programs(1) - 1

    tb, n_tok, e = tok_ref.shape
    rows = tb * n_tok
    head_dim = e // num_heads
    scale = 1.0 / math.sqrt(head_dim)
    eps = 1e-5

    def layer_norm(v, w_, b_):
        mu = jnp.mean(v, axis=-1, keepdims=True)
        var = jnp.mean((v - mu) ** 2, axis=-1, keepdims=True)
        return (v - mu) * jax.lax.rsqrt(var + eps) * w_ + b_

    def gelu(v):
        # TODO(synk): PyTorch nn.GELU default is erf-based; tanh approximation used here
        # (exp/tanh are native EUP ops; erf has no guaranteed Mosaic lowering).
        c = math.sqrt(2.0 / math.pi)
        return 0.5 * v * (1.0 + jnp.tanh(c * (v + 0.044715 * v ** 3)))

    # ---- layer 0: fused patch embedding (Conv2d-as-matmul) + bias + pos_embed ------------
    @pl.when(layer == 0)
    def _():
        p2 = patches_ref[...].reshape(rows, patches_ref.shape[-1])              # bf16
        t = jnp.dot(p2, projw_ref[...], preferred_element_type=jnp.float32)     # [rows, E]
        tok_ref[...] = t.reshape(tb, n_tok, e) + projb_ref[...] + pos_ref[...]
        # pos_drop: drop_rate = 0.0 -> identity

    x = tok_ref[...].reshape(rows, e)          # f32 residual stream, VMEM-resident

    ln1w, ln1b = ln1w_ref[...], ln1b_ref[...]
    ln2w, ln2b = ln2w_ref[...], ln2b_ref[...]
    bproj, bfc1, bfc2 = bproj_ref[...], bfc1_ref[...], bfc2_ref[...]

    # ---- attention sub-block (pre-norm); qkv_bias=False, proj has bias --------------------
    h = layer_norm(x, ln1w, ln1b).astype(jnp.bfloat16)
    qkv = jnp.dot(h, wqkv_ref[...], preferred_element_type=jnp.float32)         # [rows, 3E]
    q = qkv[:, :e].reshape(tb, n_tok, e).astype(jnp.bfloat16)
    k = qkv[:, e:2 * e].reshape(tb, n_tok, e).astype(jnp.bfloat16)
    v = qkv[:, 2 * e:].reshape(tb, n_tok, e).astype(jnp.bfloat16)

    # TODO(synk): for large token counts switch to a KV-tiled online-softmax (flash) loop
    # instead of materializing the full [tb, N, N] score tensor per head.
    head_outs = []
    for hd in range(num_heads):        # static unroll; head_dim chosen as a lane multiple
        sl = slice(hd * head_dim, (hd + 1) * head_dim)
        qh, kh, vh = q[..., sl], k[..., sl], v[..., sl]                          # [tb, N, d]
        s = jnp.einsum('bnd,bmd->bnm', qh, kh,
                       preferred_element_type=jnp.float32) * scale              # [tb, N, N]
        s = s - jnp.max(s, axis=-1, keepdims=True)
        p = jnp.exp(s)
        p = p * pl.reciprocal(jnp.sum(p, axis=-1, keepdims=True))               # exact recip
        head_outs.append(jnp.einsum('bnm,bmd->bnd', p.astype(jnp.bfloat16), vh,
                                    preferred_element_type=jnp.float32))
    attn = head_outs[0] if num_heads == 1 else jnp.concatenate(head_outs, axis=-1)
    attn = attn.reshape(rows, e).astype(jnp.bfloat16)
    attn = jnp.dot(attn, wproj_ref[...], preferred_element_type=jnp.float32) + bproj
    x = x + attn

    # ---- MLP sub-block (pre-norm) ----------------------------------------------------------
    h2 = layer_norm(x, ln2w, ln2b).astype(jnp.bfloat16)
    m = jnp.dot(h2, wfc1_ref[...], preferred_element_type=jnp.float32) + bfc1
    m = gelu(m).astype(jnp.bfloat16)
    m = jnp.dot(m, wfc2_ref[...], preferred_element_type=jnp.float32) + bfc2
    x = x + m

    tok_ref[...] = x.reshape(tb, n_tok, e)     # residual stream stays in VMEM across layers

    # ---- last layer: fused final LayerNorm + head Linear (bias=False) ----------------------
    @pl.when(layer == last)
    def _():
        hh = layer_norm(x, normw_ref[...], normb_ref[...]).astype(jnp.bfloat16)
        y = jnp.dot(hh, headw_ref[...], preferred_element_type=jnp.float32)
        out_ref[...] = y.reshape(tb, n_tok, headw_ref.shape[-1]).astype(out_ref.dtype)


# ----------------------------------------------------------------------------
# pallas_call wrapper
# ----------------------------------------------------------------------------
def _pick_batch_tile(bsz, n_tok, max_rows=1024):
    """Largest batch tile that keeps matmul rows modest while leaving >= 2 batch tiles
    (so the 'parallel' grid axis can feed both TensorCores on v7x)."""
    divs = [d for d in range(1, bsz + 1) if bsz % d == 0 and d * n_tok <= max_rows]
    if not divs:
        return 1
    multi = [d for d in divs if bsz // d >= 2]
    return max(multi) if multi else max(divs)


def _vmem_limit_bytes(need_bytes):
    """Generation-aware VMEM budget: headroom on v7x (64 MiB/TC), larger resident blocks
    on v5e/v6e (128 MiB physical)."""
    try:
        cap = int(pltpu.get_tpu_info().vmem_capacity_bytes)
    except Exception:
        cap = 64 << 20
    if cap <= (64 << 20):
        budget = (cap * 3) // 4                      # ~48 MiB on v7x-class parts
    else:
        budget = min((cap * 25) // 32, 100 << 20)    # ~96-100 MiB on v5e/v6e
    return int(max(32 << 20, min(need_bytes, budget)))


def fused_vit_call(patches, params, *, num_heads, batch_tile):
    bsz, n, cpp = patches.shape
    e = params["proj_w"].shape[1]
    out_pad = params["head_w"].shape[1]
    blocks = params["blocks"]
    num_layers = blocks["w_qkv"].shape[0]
    hidden = blocks["w_fc1"].shape[2]
    tb = batch_tile

    layer_names = ["ln1_w", "ln1_b", "w_qkv", "w_proj", "b_proj",
                   "ln2_w", "ln2_b", "w_fc1", "b_fc1", "w_fc2", "b_fc2"]
    layer_ws = [blocks[name] for name in layer_names]
    shared_ws = [params["proj_w"], params["proj_b"], params["pos_embed"],
                 params["norm_w"], params["norm_b"], params["head_w"]]

    patches_spec = pl.BlockSpec((tb, n, cpp), lambda b, l: (b, 0, 0))
    shared_specs = [pl.BlockSpec(w.shape, lambda b, l: (0, 0)) for w in shared_ws]
    layer_specs = [pl.BlockSpec((None,) + w.shape[1:], lambda b, l: (l, 0, 0))
                   for w in layer_ws]
    out_spec = pl.BlockSpec((tb, n, out_pad), lambda b, l: (b, 0, 0))

    # VMEM estimate: double-buffered per-layer weights + shared weights + resident token
    # scratch + fused I/O blocks + matmul/softmax intermediates, clamped per generation.
    layer_bytes = sum(math.prod(w.shape[1:]) * w.dtype.itemsize for w in layer_ws)
    shared_bytes = sum(math.prod(w.shape) * w.dtype.itemsize for w in shared_ws)
    rows = tb * n
    interm_bytes = rows * (3 * e + hidden + 2 * e) * 4 + tb * num_heads * n * n * 4
    resident_bytes = (rows * e * 4
                      + 2 * rows * cpp * patches.dtype.itemsize
                      + 2 * rows * out_pad * 4)
    need = 2 * layer_bytes + shared_bytes + resident_bytes + interm_bytes + (4 << 20)

    kernel = functools.partial(_fused_vit_kernel, num_heads=num_heads)
    return pl.pallas_call(
        kernel,
        out_shape=jax.ShapeDtypeStruct((bsz, n, out_pad), jnp.float32),
        grid=(bsz // tb, num_layers),                 # layer axis innermost (resident tokens)
        in_specs=[patches_spec] + shared_specs[:3] + layer_specs + shared_specs[3:],
        out_specs=out_spec,
        scratch_shapes=[pltpu.VMEM((tb, n, e), jnp.float32)],
        compiler_params=pltpu.CompilerParams(
            dimension_semantics=("parallel", "arbitrary"),
            vmem_limit_bytes=_vmem_limit_bytes(need)),
    )(patches, params["proj_w"], params["proj_b"], params["pos_embed"],
      *layer_ws, params["norm_w"], params["norm_b"], params["head_w"])


# ----------------------------------------------------------------------------
# Parameter init (deterministic; mirrors module __init__ shapes, big mats in bf16)
# ----------------------------------------------------------------------------
def init_params(key, *, img_size, patch_size, in_channels, out_channels,
                embed_dim, num_layers, mlp_ratio):
    ph, pw = img_size[0] // patch_size, img_size[1] // patch_size
    n = ph * pw
    cpp = in_channels * patch_size * patch_size
    hidden = int(embed_dim * mlp_ratio)
    out_size = out_channels * patch_size * patch_size
    out_pad = ((out_size + 127) // 128) * 128

    def tn(k, shape, dtype=jnp.float32):
        return (0.02 * jax.random.truncated_normal(k, -2.0, 2.0, shape)).astype(dtype)

    keys = jax.random.split(key, 8)
    head_w = tn(keys[2], (embed_dim, out_size), jnp.bfloat16)
    head_w = jnp.pad(head_w, ((0, 0), (0, out_pad - out_size)))   # lane-dense pad, once

    return {
        # Conv2d(k=p, stride=p) as matmul: PyTorch weight [E, C, p, p] -> [C*p*p, E]
        "proj_w": tn(keys[0], (cpp, embed_dim), jnp.bfloat16),
        "proj_b": jnp.zeros((1, embed_dim), jnp.float32),
        "pos_embed": tn(keys[1], (n, embed_dim)),
        "norm_w": jnp.ones((1, embed_dim), jnp.float32),
        "norm_b": jnp.zeros((1, embed_dim), jnp.float32),
        "head_w": head_w,                                         # [E, out_pad] bf16
        "blocks": {   # per-layer weights stacked on a leading layer axis
            "ln1_w": jnp.ones((num_layers, 1, embed_dim), jnp.float32),
            "ln1_b": jnp.zeros((num_layers, 1, embed_dim), jnp.float32),
            "w_qkv": tn(keys[3], (num_layers, embed_dim, 3 * embed_dim), jnp.bfloat16),
            "w_proj": tn(keys[4], (num_layers, embed_dim, embed_dim), jnp.bfloat16),
            "b_proj": jnp.zeros((num_layers, 1, embed_dim), jnp.float32),
            "ln2_w": jnp.ones((num_layers, 1, embed_dim), jnp.float32),
            "ln2_b": jnp.zeros((num_layers, 1, embed_dim), jnp.float32),
            "w_fc1": tn(keys[5], (num_layers, embed_dim, hidden), jnp.bfloat16),
            "b_fc1": jnp.zeros((num_layers, 1, hidden), jnp.float32),
            "w_fc2": tn(keys[6], (num_layers, hidden, embed_dim), jnp.bfloat16),
            "b_fc2": jnp.zeros((num_layers, 1, embed_dim), jnp.float32),
        },
    }


# ----------------------------------------------------------------------------
# Full forward pass
# ----------------------------------------------------------------------------
def weather_transformer_forward(x, params, *, patch_size, num_heads, out_channels):
    b, c, h, w = x.shape
    p = patch_size
    ph, pw = h // p, w // p
    n = ph * pw
    e = params["proj_w"].shape[1]
    assert n % 8 == 0, "token count must be a sublane multiple for the in-kernel reshape"
    assert e % num_heads == 0

    # Conv2d(k=p, stride=p) == im2col reshape + matmul; cast to bf16 once here (halves the
    # HBM bytes of the patches read; the kernel feeds the MXU in bf16 anyway).
    patches = (x.reshape(b, c, ph, p, pw, p)
                 .transpose(0, 2, 4, 1, 3, 5)          # [B, ph, pw, C, p, p]
                 .reshape(b, n, c * p * p)
                 .astype(jnp.bfloat16))

    tb = _pick_batch_tile(b, n)
    y = fused_vit_call(patches, params, num_heads=num_heads, batch_tile=tb)  # [B, N, out_pad]

    out_size = out_channels * p * p
    y = y[..., :out_size]
    # forward_head: reshape + einsum('nhwpqc->nchpwq') + reshape  (pure layout glue)
    y = y.reshape(b, ph, pw, p, p, out_channels)
    y = y.transpose(0, 5, 1, 3, 2, 4).reshape(b, out_channels, ph * p, pw * p)
    # drop_rate / attn_drop / drop_path = 0.0 -> identity; use_quantization=False -> skip
    return y


# ----------------------------------------------------------------------------
if __name__ == "__main__":
    img_size = (16, 16)
    patch_size = 4
    in_channels = 4
    out_channels = 4
    embed_dim = 256        # lane-dense (multiple of 128)
    num_heads = 2          # head_dim = 128 -> lane-aligned per-head Q/K/V slices
    num_layers = 2
    mlp_ratio = 4.0
    batch = 2

    key = jax.random.PRNGKey(0)
    kx, kp = jax.random.split(key)
    x = jax.random.normal(kx, (batch, in_channels, *img_size), dtype=jnp.float32)
    params = init_params(kp, img_size=img_size, patch_size=patch_size,
                         in_channels=in_channels, out_channels=out_channels,
                         embed_dim=embed_dim, num_layers=num_layers, mlp_ratio=mlp_ratio)

    out = weather_transformer_forward(x, params, patch_size=patch_size,
                                      num_heads=num_heads, out_channels=out_channels)
    out = jax.block_until_ready(out)
    assert out.shape == (batch, out_channels, img_size[0], img_size[1]), out.shape
    assert bool(jnp.all(jnp.isfinite(out)))
    print("KERNEL_OK")
</pallas_src>

<mosaic_0001>
module attributes {stable_mosaic.version = 11 : i64} {
  func.func @_fused_vit_kernel(%arg0: i32, %arg1: i32, %arg2: memref<1x16x64xbf16, #tpu.memory_space<vmem>>, %arg3: memref<64x256xbf16, #tpu.memory_space<vmem>>, %arg4: memref<1x256xf32, #tpu.memory_space<vmem>>, %arg5: memref<16x256xf32, #tpu.memory_space<vmem>>, %arg6: memref<1x1x256xf32, #tpu.memory_space<vmem>>, %arg7: memref<1x1x256xf32, #tpu.memory_space<vmem>>, %arg8: memref<1x256x768xbf16, #tpu.memory_space<vmem>>, %arg9: memref<1x256x256xbf16, #tpu.memory_space<vmem>>, %arg10: memref<1x1x256xf32, #tpu.memory_space<vmem>>, %arg11: memref<1x1x256xf32, #tpu.memory_space<vmem>>, %arg12: memref<1x1x256xf32, #tpu.memory_space<vmem>>, %arg13: memref<1x256x1024xbf16, #tpu.memory_space<vmem>>, %arg14: memref<1x1x1024xf32, #tpu.memory_space<vmem>>, %arg15: memref<1x1024x256xbf16, #tpu.memory_space<vmem>>, %arg16: memref<1x1x256xf32, #tpu.memory_space<vmem>>, %arg17: memref<1x256xf32, #tpu.memory_space<vmem>>, %arg18: memref<1x256xf32, #tpu.memory_space<vmem>>, %arg19: memref<256x128xbf16, #tpu.memory_space<vmem>>, %arg20: memref<1x16x128xf32, #tpu.memory_space<vmem>>, %arg21: memref<1x16x256xf32, #tpu.memory_space<vmem>>) attributes {dimension_semantics = [#tpu.dimension_semantics<parallel>, #tpu.dimension_semantics<arbitrary>], iteration_bounds = array<i64: 2, 2>, scalar_prefetch = 0 : i64, scratch_operands = 1 : i64, tpu.core_type = #tpu.core_type<tc>, window_params = [{transform_indices = @transform_0, window_bounds = array<i64: 1, 16, 64>}, {pipeline_mode = #tpu.pipeline_mode<synchronous>, transform_indices = @transform_1, window_bounds = array<i64: 64, 256>}, {pipeline_mode = #tpu.pipeline_mode<synchronous>, transform_indices = @transform_2, window_bounds = array<i64: 1, 256>}, {pipeline_mode = #tpu.pipeline_mode<synchronous>, transform_indices = @transform_3, window_bounds = array<i64: 16, 256>}, {transform_indices = @transform_4, window_bounds = array<i64: 1, 1, 256>}, {transform_indices = @transform_5, window_bounds = array<i64: 1, 1, 256>}, {transform_indices = @transform_6, window_bounds = array<i64: 1, 256, 768>}, {transform_indices = @transform_7, window_bounds = array<i64: 1, 256, 256>}, {transform_indices = @transform_8, window_bounds = array<i64: 1, 1, 256>}, {transform_indices = @transform_9, window_bounds = array<i64: 1, 1, 256>}, {transform_indices = @transform_10, window_bounds = array<i64: 1, 1, 256>}, {transform_indices = @transform_11, window_bounds = array<i64: 1, 256, 1024>}, {transform_indices = @transform_12, window_bounds = array<i64: 1, 1, 1024>}, {transform_indices = @transform_13, window_bounds = array<i64: 1, 1024, 256>}, {transform_indices = @transform_14, window_bounds = array<i64: 1, 1, 256>}, {pipeline_mode = #tpu.pipeline_mode<synchronous>, transform_indices = @transform_15, window_bounds = array<i64: 1, 256>}, {pipeline_mode = #tpu.pipeline_mode<synchronous>, transform_indices = @transform_16, window_bounds = array<i64: 1, 256>}, {pipeline_mode = #tpu.pipeline_mode<synchronous>, transform_indices = @transform_17, window_bounds = array<i64: 256, 128>}, {transform_indices = @transform_18, window_bounds = array<i64: 1, 16, 128>}]} {
    %c0_i32 = arith.constant 0 : i32
    %0 = arith.cmpi eq, %arg1, %c0_i32 : i32
    %1 = arith.extui %0 : i1 to i32
    %c0_i32_0 = arith.constant 0 : i32
    %2 = arith.cmpi ne, %1, %c0_i32_0 : i32
    scf.if %2 {
      %c0_67 = arith.constant 0 : index
      %c0_68 = arith.constant 0 : index
      %c0_69 = arith.constant 0 : index
      %152 = vector.load %arg2[%c0_67, %c0_68, %c0_69] : memref<1x16x64xbf16, #tpu.memory_space<vmem>>, vector<1x16x64xbf16>
      %153 = vector.shape_cast %152 : vector<1x16x64xbf16> to vector<16x64xbf16>
      %c0_70 = arith.constant 0 : index
      %c0_71 = arith.constant 0 : index
      %154 = vector.load %arg3[%c0_70, %c0_71] : memref<64x256xbf16, #tpu.memory_space<vmem>>, vector<64x256xbf16>
      %cst_72 = arith.constant dense<0.000000e+00> : vector<16x256xf32>
      %155 = tpu.matmul %153, %154, %cst_72 {dimension_numbers = #tpu.dot_dimension_numbers<[1], [0], [0], [1], [0, 0, 1, 1], [], []>} : vector<16x64xbf16>, vector<64x256xbf16>, vector<16x256xf32> -> vector<16x256xf32>
      %156 = vector.shape_cast %155 : vector<16x256xf32> to vector<1x16x256xf32>
      %c0_73 = arith.constant 0 : index
      %c0_74 = arith.constant 0 : index
      %157 = vector.load %arg4[%c0_73, %c0_74] : memref<1x256xf32, #tpu.memory_space<vmem>>, vector<1x256xf32>
      %158 = vector.shape_cast %157 : vector<1x256xf32> to vector<1x1x256xf32>
      %159 = vector.broadcast %158 : vector<1x1x256xf32> to vector<1x16x256xf32>
      %160 = arith.addf %156, %159 : vector<1x16x256xf32>
      %c0_75 = arith.constant 0 : index
      %c0_76 = arith.constant 0 : index
      %161 = vector.load %arg5[%c0_75, %c0_76] : memref<16x256xf32, #tpu.memory_space<vmem>>, vector<16x256xf32>
      %162 = vector.shape_cast %161 : vector<16x256xf32> to vector<1x16x256xf32>
      %163 = arith.addf %160, %162 : vector<1x16x256xf32>
      %c0_77 = arith.constant 0 : index
      %c0_78 = arith.constant 0 : index
      %c0_79 = arith.constant 0 : index
      %164 = vector.load %arg21[%c0_77, %c0_78, %c0_79] : memref<1x16x256xf32, #tpu.memory_space<vmem>>, vector<1x16x256xf32>
      tpu.vector_store %arg21[%c0_77, %c0_78, %c0_79], %163 {strides = array<i32>} : memref<1x16x256xf32, #tpu.memory_space<vmem>>, vector<1x16x256xf32>,
    } else {
    }
    %c0 = arith.constant 0 : index
    %c0_1 = arith.constant 0 : index
    %c0_2 = arith.constant 0 : index
    %3 = vector.load %arg21[%c0, %c0_1, %c0_2] : memref<1x16x256xf32, #tpu.memory_space<vmem>>, vector<1x16x256xf32>
    %4 = vector.shape_cast %3 : vector<1x16x256xf32> to vector<16x256xf32>
    %c0_3 = arith.constant 0 : index
    %c0_4 = arith.constant 0 : index
    %c0_5 = arith.constant 0 : index
    %5 = vector.load %arg6[%c0_3, %c0_4, %c0_5] : memref<1x1x256xf32, #tpu.memory_space<vmem>>, vector<1x1x256xf32>
    %6 = vector.shape_cast %5 : vector<1x1x256xf32> to vector<1x256xf32>
    %c0_6 = arith.constant 0 : index
    %c0_7 = arith.constant 0 : index
    %c0_8 = arith.constant 0 : index
    %7 = vector.load %arg7[%c0_6, %c0_7, %c0_8] : memref<1x1x256xf32, #tpu.memory_space<vmem>>, vector<1x1x256xf32>
    %8 = vector.shape_cast %7 : vector<1x1x256xf32> to vector<1x256xf32>
    %c0_9 = arith.constant 0 : index
    %c0_10 = arith.constant 0 : index
    %c0_11 = arith.constant 0 : index
    %9 = vector.load %arg11[%c0_9, %c0_10, %c0_11] : memref<1x1x256xf32, #tpu.memory_space<vmem>>, vector<1x1x256xf32>
    %10 = vector.shape_cast %9 : vector<1x1x256xf32> to vector<1x256xf32>
    %c0_12 = arith.constant 0 : index
    %c0_13 = arith.constant 0 : index
    %c0_14 = arith.constant 0 : index
    %11 = vector.load %arg12[%c0_12, %c0_13, %c0_14] : memref<1x1x256xf32, #tpu.memory_space<vmem>>, vector<1x1x256xf32>
    %12 = vector.shape_cast %11 : vector<1x1x256xf32> to vector<1x256xf32>
    %c0_15 = arith.constant 0 : index
    %c0_16 = arith.constant 0 : index
    %c0_17 = arith.constant 0 : index
    %13 = vector.load %arg10[%c0_15, %c0_16, %c0_17] : memref<1x1x256xf32, #tpu.memory_space<vmem>>, vector<1x1x256xf32>
    %14 = vector.shape_cast %13 : vector<1x1x256xf32> to vector<1x256xf32>
    %c0_18 = arith.constant 0 : index
    %c0_19 = arith.constant 0 : index
    %c0_20 = arith.constant 0 : index
    %15 = vector.load %arg14[%c0_18, %c0_19, %c0_20] : memref<1x1x1024xf32, #tpu.memory_space<vmem>>, vector<1x1x1024xf32>
    %16 = vector.shape_cast %15 : vector<1x1x1024xf32> to vector<1x1024xf32>
    %c0_21 = arith.constant 0 : index
    %c0_22 = arith.constant 0 : index
    %c0_23 = arith.constant 0 : index
    %17 = vector.load %arg16[%c0_21, %c0_22, %c0_23] : memref<1x1x256xf32, #tpu.memory_space<vmem>>, vector<1x1x256xf32>
    %18 = vector.shape_cast %17 : vector<1x1x256xf32> to vector<1x256xf32>
    %cst = arith.constant dense<0.000000e+00> : vector<16xf32>
    %19 = vector.multi_reduction <add>, %4, %cst [1] : vector<16x256xf32> to vector<16xf32>
    %20 = vector.shape_cast %19 : vector<16xf32> to vector<16x1xf32>
    %cst_24 = arith.constant 2.560000e+02 : f32
    %21 = vector.broadcast %cst_24 : f32 to vector<16x1xf32>
    %22 = arith.divf %20, %21 : vector<16x1xf32>
    %23 = vector.broadcast %22 : vector<16x1xf32> to vector<16x256xf32>
    %24 = arith.subf %4, %23 : vector<16x256xf32>
    %25 = arith.mulf %24, %24 : vector<16x256xf32>
    %cst_25 = arith.constant dense<0.000000e+00> : vector<16xf32>
    %26 = vector.multi_reduction <add>, %25, %cst_25 [1] : vector<16x256xf32> to vector<16xf32>
    %27 = vector.shape_cast %26 : vector<16xf32> to vector<16x1xf32>
    %cst_26 = arith.constant 2.560000e+02 : f32
    %28 = vector.broadcast %cst_26 : f32 to vector<16x1xf32>
    %29 = arith.divf %27, %28 : vector<16x1xf32>
    %30 = vector.broadcast %22 : vector<16x1xf32> to vector<16x256xf32>
    %31 = arith.subf %4, %30 : vector<16x256xf32>
    %cst_27 = arith.constant 9.99999974E-6 : f32
    %32 = vector.broadcast %cst_27 : f32 to vector<16x1xf32>
    %33 = arith.addf %29, %32 : vector<16x1xf32>
    %34 = math.rsqrt %33 : vector<16x1xf32>
    %35 = vector.broadcast %34 : vector<16x1xf32> to vector<16x256xf32>
    %36 = arith.mulf %31, %35 : vector<16x256xf32>
    %37 = vector.broadcast %6 : vector<1x256xf32> to vector<16x256xf32>
    %38 = arith.mulf %36, %37 : vector<16x256xf32>
    %39 = vector.broadcast %8 : vector<1x256xf32> to vector<16x256xf32>
    %40 = arith.addf %38, %39 : vector<16x256xf32>
    %41 = arith.truncf %40 : vector<16x256xf32> to vector<16x256xbf16>
    %c0_28 = arith.constant 0 : index
    %c0_29 = arith.constant 0 : index
    %c0_30 = arith.constant 0 : index
    %42 = vector.load %arg8[%c0_28, %c0_29, %c0_30] : memref<1x256x768xbf16, #tpu.memory_space<vmem>>, vector<1x256x768xbf16>
    %43 = vector.shape_cast %42 : vector<1x256x768xbf16> to vector<256x768xbf16>
    %cst_31 = arith.constant dense<0.000000e+00> : vector<16x768xf32>
    %44 = tpu.matmul %41, %43, %cst_31 {dimension_numbers = #tpu.dot_dimension_numbers<[1], [0], [0], [1], [0, 0, 1, 1], [], []>} : vector<16x256xbf16>, vector<256x768xbf16>, vector<16x768xf32> -> vector<16x768xf32>
    %45 = vector.extract_strided_slice %44 {offsets = [0, 0], sizes = [16, 256], strides = [1, 1]} : vector<16x768xf32> to vector<16x256xf32>
    %46 = vector.shape_cast %45 : vector<16x256xf32> to vector<1x16x256xf32>
    %47 = arith.truncf %46 : vector<1x16x256xf32> to vector<1x16x256xbf16>
    %48 = vector.extract_strided_slice %44 {offsets = [0, 256], sizes = [16, 256], strides = [1, 1]} : vector<16x768xf32> to vector<16x256xf32>
    %49 = vector.shape_cast %48 : vector<16x256xf32> to vector<1x16x256xf32>
    %50 = arith.truncf %49 : vector<1x16x256xf32> to vector<1x16x256xbf16>
    %51 = vector.extract_strided_slice %44 {offsets = [0, 512], sizes = [16, 256], strides = [1, 1]} : vector<16x768xf32> to vector<16x256xf32>
    %52 = vector.shape_cast %51 : vector<16x256xf32> to vector<1x16x256xf32>
    %53 = arith.truncf %52 : vector<1x16x256xf32> to vector<1x16x256xbf16>
    %54 = vector.extract_strided_slice %47 {offsets = [0, 0, 0], sizes = [1, 16, 128], strides = [1, 1, 1]} : vector<1x16x256xbf16> to vector<1x16x128xbf16>
    %55 = vector.extract_strided_slice %50 {offsets = [0, 0, 0], sizes = [1, 16, 128], strides = [1, 1, 1]} : vector<1x16x256xbf16> to vector<1x16x128xbf16>
    %56 = vector.extract_strided_slice %53 {offsets = [0, 0, 0], sizes = [1, 16, 128], strides = [1, 1, 1]} : vector<1x16x256xbf16> to vector<1x16x128xbf16>
    "tpu.trace_start"() <{level = 10 : i32, message = "bnd,bmd->bnm"}> : () -> ()
    %cst_32 = arith.constant dense<0.000000e+00> : vector<1x16x16xf32>
    %57 = tpu.matmul %54, %55, %cst_32 {dimension_numbers = #tpu.dot_dimension_numbers<[2], [2], [1], [1], [0, 0, 0, 1, 1, 1], [0], [0]>} : vector<1x16x128xbf16>, vector<1x16x128xbf16>, vector<1x16x16xf32> -> vector<1x16x16xf32>
    "tpu.trace_stop"() : () -> ()
    %cst_33 = arith.constant 0.0883883461 : f32
    %58 = vector.broadcast %cst_33 : f32 to vector<1x16x16xf32>
    %59 = arith.mulf %57, %58 : vector<1x16x16xf32>
    %cst_34 = arith.constant dense<0xFF800000> : vector<1x16xf32>
    %60 = vector.multi_reduction <maximumf>, %59, %cst_34 [2] : vector<1x16x16xf32> to vector<1x16xf32>
    %61 = vector.shape_cast %60 : vector<1x16xf32> to vector<1x16x1xf32>
    %62 = vector.broadcast %61 : vector<1x16x1xf32> to vector<1x16x16xf32>
    %63 = arith.subf %59, %62 : vector<1x16x16xf32>
    %64 = math.exp %63 : vector<1x16x16xf32>
    %cst_35 = arith.constant dense<0.000000e+00> : vector<1x16xf32>
    %65 = vector.multi_reduction <add>, %64, %cst_35 [2] : vector<1x16x16xf32> to vector<1x16xf32>
    %66 = vector.shape_cast %65 : vector<1x16xf32> to vector<1x16x1xf32>
    %67 = tpu.reciprocal %66 : vector<1x16x1xf32> -> vector<1x16x1xf32>
    %68 = vector.broadcast %67 : vector<1x16x1xf32> to vector<1x16x16xf32>
    %69 = arith.mulf %64, %68 : vector<1x16x16xf32>
    %70 = arith.truncf %69 : vector<1x16x16xf32> to vector<1x16x16xbf16>
    "tpu.trace_start"() <{level = 10 : i32, message = "bnm,bmd->bnd"}> : () -> ()
    %cst_36 = arith.constant dense<0.000000e+00> : vector<1x16x128xf32>
    %71 = tpu.matmul %70, %56, %cst_36 {dimension_numbers = #tpu.dot_dimension_numbers<[2], [1], [1], [2], [0, 0, 0, 1, 1, 2], [0], [0]>} : vector<1x16x16xbf16>, vector<1x16x128xbf16>, vector<1x16x128xf32> -> vector<1x16x128xf32>
    "tpu.trace_stop"() : () -> ()
    %72 = vector.extract_strided_slice %47 {offsets = [0, 0, 128], sizes = [1, 16, 128], strides = [1, 1, 1]} : vector<1x16x256xbf16> to vector<1x16x128xbf16>
    %73 = vector.extract_strided_slice %50 {offsets = [0, 0, 128], sizes = [1, 16, 128], strides = [1, 1, 1]} : vector<1x16x256xbf16> to vector<1x16x128xbf16>
    %74 = vector.extract_strided_slice %53 {offsets = [0, 0, 128], sizes = [1, 16, 128], strides = [1, 1, 1]} : vector<1x16x256xbf16> to vector<1x16x128xbf16>
    "tpu.trace_start"() <{level = 10 : i32, message = "bnd,bmd->bnm"}> : () -> ()
    %cst_37 = arith.constant dense<0.000000e+00> : vector<1x16x16xf32>
    %75 = tpu.matmul %72, %73, %cst_37 {dimension_numbers = #tpu.dot_dimension_numbers<[2], [2], [1], [1], [0, 0, 0, 1, 1, 1], [0], [0]>} : vector<1x16x128xbf16>, vector<1x16x128xbf16>, vector<1x16x16xf32> -> vector<1x16x16xf32>
    "tpu.trace_stop"() : () -> ()
    %cst_38 = arith.constant 0.0883883461 : f32
    %76 = vector.broadcast %cst_38 : f32 to vector<1x16x16xf32>
    %77 = arith.mulf %75, %76 : vector<1x16x16xf32>
    %cst_39 = arith.constant dense<0xFF800000> : vector<1x16xf32>
    %78 = vector.multi_reduction <maximumf>, %77, %cst_39 [2] : vector<1x16x16xf32> to vector<1x16xf32>
    %79 = vector.shape_cast %78 : vector<1x16xf32> to vector<1x16x1xf32>
    %80 = vector.broadcast %79 : vector<1x16x1xf32> to vector<1x16x16xf32>
    %81 = arith.subf %77, %80 : vector<1x16x16xf32>
    %82 = math.exp %81 : vector<1x16x16xf32>
    %cst_40 = arith.constant dense<0.000000e+00> : vector<1x16xf32>
    %83 = vector.multi_reduction <add>, %82, %cst_40 [2] : vector<1x16x16xf32> to vector<1x16xf32>
    %84 = vector.shape_cast %83 : vector<1x16xf32> to vector<1x16x1xf32>
    %85 = tpu.reciprocal %84 : vector<1x16x1xf32> -> vector<1x16x1xf32>
    %86 = vector.broadcast %85 : vector<1x16x1xf32> to vector<1x16x16xf32>
    %87 = arith.mulf %82, %86 : vector<1x16x16xf32>
    %88 = arith.truncf %87 : vector<1x16x16xf32> to vector<1x16x16xbf16>
    "tpu.trace_start"() <{level = 10 : i32, message = "bnm,bmd->bnd"}> : () -> ()
    %cst_41 = arith.constant dense<0.000000e+00> : vector<1x16x128xf32>
    %89 = tpu.matmul %88, %74, %cst_41 {dimension_numbers = #tpu.dot_dimension_numbers<[2], [1], [1], [2], [0, 0, 0, 1, 1, 2], [0], [0]>} : vector<1x16x16xbf16>, vector<1x16x128xbf16>, vector<1x16x128xf32> -> vector<1x16x128xf32>
    "tpu.trace_stop"() : () -> ()
    %90 = tpu.concatenate %71, %89 in 2 : vector<1x16x128xf32>, vector<1x16x128xf32> -> vector<1x16x256xf32>
    %91 = vector.shape_cast %90 : vector<1x16x256xf32> to vector<16x256xf32>
    %92 = arith.truncf %91 : vector<16x256xf32> to vector<16x256xbf16>
    %c0_42 = arith.constant 0 : index
    %c0_43 = arith.constant 0 : index
    %c0_44 = arith.constant 0 : index
    %93 = vector.load %arg9[%c0_42, %c0_43, %c0_44] : memref<1x256x256xbf16, #tpu.memory_space<vmem>>, vector<1x256x256xbf16>
    %94 = vector.shape_cast %93 : vector<1x256x256xbf16> to vector<256x256xbf16>
    %cst_45 = arith.constant dense<0.000000e+00> : vector<16x256xf32>
    %95 = tpu.matmul %92, %94, %cst_45 {dimension_numbers = #tpu.dot_dimension_numbers<[1], [0], [0], [1], [0, 0, 1, 1], [], []>} : vector<16x256xbf16>, vector<256x256xbf16>, vector<16x256xf32> -> vector<16x256xf32>
    %96 = vector.broadcast %14 : vector<1x256xf32> to vector<16x256xf32>
    %97 = arith.addf %95, %96 : vector<16x256xf32>
    %98 = arith.addf %4, %97 : vector<16x256xf32>
    %cst_46 = arith.constant dense<0.000000e+00> : vector<16xf32>
    %99 = vector.multi_reduction <add>, %98, %cst_46 [1] : vector<16x256xf32> to vector<16xf32>
    %100 = vector.shape_cast %99 : vector<16xf32> to vector<16x1xf32>
    %cst_47 = arith.constant 2.560000e+02 : f32
    %101 = vector.broadcast %cst_47 : f32 to vector<16x1xf32>
    %102 = arith.divf %100, %101 : vector<16x1xf32>
    %103 = vector.broadcast %102 : vector<16x1xf32> to vector<16x256xf32>
    %104 = arith.subf %98, %103 : vector<16x256xf32>
    %105 = arith.mulf %104, %104 : vector<16x256xf32>
    %cst_48 = arith.constant dense<0.000000e+00> : vector<16xf32>
    %106 = vector.multi_reduction <add>, %105, %cst_48 [1] : vector<16x256xf32> to vector<16xf32>
    %107 = vector.shape_cast %106 : vector<16xf32> to vector<16x1xf32>
    %cst_49 = arith.constant 2.560000e+02 : f32
    %108 = vector.broadcast %cst_49 : f32 to vector<16x1xf32>
    %109 = arith.divf %107, %108 : vector<16x1xf32>
    %110 = vector.broadcast %102 : vector<16x1xf32> to vector<16x256xf32>
    %111 = arith.subf %98, %110 : vector<16x256xf32>
    %cst_50 = arith.constant 9.99999974E-6 : f32
    %112 = vector.broadcast %cst_50 : f32 to vector<16x1xf32>
    %113 = arith.addf %109, %112 : vector<16x1xf32>
    %114 = math.rsqrt %113 : vector<16x1xf32>
    %115 = vector.broadcast %114 : vector<16x1xf32> to vector<16x256xf32>
    %116 = arith.mulf %111, %115 : vector<16x256xf32>
    %117 = vector.broadcast %10 : vector<1x256xf32> to vector<16x256xf32>
    %118 = arith.mulf %116, %117 : vector<16x256xf32>
    %119 = vector.broadcast %12 : vector<1x256xf32> to vector<16x256xf32>
    %120 = arith.addf %118, %119 : vector<16x256xf32>
    %121 = arith.truncf %120 : vector<16x256xf32> to vector<16x256xbf16>
    %c0_51 = arith.constant 0 : index
    %c0_52 = arith.constant 0 : index
    %c0_53 = arith.constant 0 : index
    %122 = vector.load %arg13[%c0_51, %c0_52, %c0_53] : memref<1x256x1024xbf16, #tpu.memory_space<vmem>>, vector<1x256x1024xbf16>
    %123 = vector.shape_cast %122 : vector<1x256x1024xbf16> to vector<256x1024xbf16>
    %cst_54 = arith.constant dense<0.000000e+00> : vector<16x1024xf32>
    %124 = tpu.matmul %121, %123, %cst_54 {dimension_numbers = #tpu.dot_dimension_numbers<[1], [0], [0], [1], [0, 0, 1, 1], [], []>} : vector<16x256xbf16>, vector<256x1024xbf16>, vector<16x1024xf32> -> vector<16x1024xf32>
    %125 = vector.broadcast %16 : vector<1x1024xf32> to vector<16x1024xf32>
    %126 = arith.addf %124, %125 : vector<16x1024xf32>
    %cst_55 = arith.constant 5.000000e-01 : f32
    %127 = vector.broadcast %cst_55 : f32 to vector<16x1024xf32>
    %128 = arith.mulf %127, %126 : vector<16x1024xf32>
    %129 = arith.mulf %126, %126 : vector<16x1024xf32>
    %130 = arith.mulf %126, %129 : vector<16x1024xf32>
    %cst_56 = arith.constant 4.471500e-02 : f32
    %131 = vector.broadcast %cst_56 : f32 to vector<16x1024xf32>
    %132 = arith.mulf %131, %130 : vector<16x1024xf32>
    %133 = arith.addf %126, %132 : vector<16x1024xf32>
    %cst_57 = arith.constant 0.797884583 : f32
    %134 = vector.broadcast %cst_57 : f32 to vector<16x1024xf32>
    %135 = arith.mulf %134, %133 : vector<16x1024xf32>
    %136 = math.tanh %135 : vector<16x1024xf32>
    %cst_58 = arith.constant 1.000000e+00 : f32
    %137 = vector.broadcast %cst_58 : f32 to vector<16x1024xf32>
    %138 = arith.addf %137, %136 : vector<16x1024xf32>
    %139 = arith.mulf %128, %138 : vector<16x1024xf32>
    %140 = arith.truncf %139 : vector<16x1024xf32> to vector<16x1024xbf16>
    %c0_59 = arith.constant 0 : index
    %c0_60 = arith.constant 0 : index
    %c0_61 = arith.constant 0 : index
    %141 = vector.load %arg15[%c0_59, %c0_60, %c0_61] : memref<1x1024x256xbf16, #tpu.memory_space<vmem>>, vector<1x1024x256xbf16>
    %142 = vector.shape_cast %141 : vector<1x1024x256xbf16> to vector<1024x256xbf16>
    %cst_62 = arith.constant dense<0.000000e+00> : vector<16x256xf32>
    %143 = tpu.matmul %140, %142, %cst_62 {dimension_numbers = #tpu.dot_dimension_numbers<[1], [0], [0], [1], [0, 0, 1, 1], [], []>} : vector<16x1024xbf16>, vector<1024x256xbf16>, vector<16x256xf32> -> vector<16x256xf32>
    %144 = vector.broadcast %18 : vector<1x256xf32> to vector<16x256xf32>
    %145 = arith.addf %143, %144 : vector<16x256xf32>
    %146 = arith.addf %98, %145 : vector<16x256xf32>
    %147 = vector.shape_cast %146 : vector<16x256xf32> to vector<1x16x256xf32>
    %c0_63 = arith.constant 0 : index
    %c0_64 = arith.constant 0 : index
    %c0_65 = arith.constant 0 : index
    %148 = vector.load %arg21[%c0_63, %c0_64, %c0_65] : memref<1x16x256xf32, #tpu.memory_space<vmem>>, vector<1x16x256xf32>
    tpu.vector_store %arg21[%c0_63, %c0_64, %c0_65], %147 {strides = array<i32>} : memref<1x16x256xf32, #tpu.memory_space<vmem>>, vector<1x16x256xf32>,
    %c1_i32 = arith.constant 1 : i32
    %149 = arith.cmpi eq, %arg1, %c1_i32 : i32
    %150 = arith.extui %149 : i1 to i32
    %c0_i32_66 = arith.constant 0 : i32
    %151 = arith.cmpi ne, %150, %c0_i32_66 : i32
    scf.if %151 {
      %c0_67 = arith.constant 0 : index
      %c0_68 = arith.constant 0 : index
      %152 = vector.load %arg17[%c0_67, %c0_68] : memref<1x256xf32, #tpu.memory_space<vmem>>, vector<1x256xf32>
      %c0_69 = arith.constant 0 : index
      %c0_70 = arith.constant 0 : index
      %153 = vector.load %arg18[%c0_69, %c0_70] : memref<1x256xf32, #tpu.memory_space<vmem>>, vector<1x256xf32>
      %cst_71 = arith.constant dense<0.000000e+00> : vector<16xf32>
      %154 = vector.multi_reduction <add>, %146, %cst_71 [1] : vector<16x256xf32> to vector<16xf32>
      %155 = vector.shape_cast %154 : vector<16xf32> to vector<16x1xf32>
      %cst_72 = arith.constant 2.560000e+02 : f32
      %156 = vector.broadcast %cst_72 : f32 to vector<16x1xf32>
      %157 = arith.divf %155, %156 : vector<16x1xf32>
      %158 = vector.broadcast %157 : vector<16x1xf32> to vector<16x256xf32>
      %159 = arith.subf %146, %158 : vector<16x256xf32>
      %160 = arith.mulf %159, %159 : vector<16x256xf32>
      %cst_73 = arith.constant dense<0.000000e+00> : vector<16xf32>
      %161 = vector.multi_reduction <add>, %160, %cst_73 [1] : vector<16x256xf32> to vector<16xf32>
      %162 = vector.shape_cast %161 : vector<16xf32> to vector<16x1xf32>
      %cst_74 = arith.constant 2.560000e+02 : f32
      %163 = vector.broadcast %cst_74 : f32 to vector<16x1xf32>
      %164 = arith.divf %162, %163 : vector<16x1xf32>
      %165 = vector.broadcast %157 : vector<16x1xf32> to vector<16x256xf32>
      %166 = arith.subf %146, %165 : vector<16x256xf32>
      %cst_75 = arith.constant 9.99999974E-6 : f32
      %167 = vector.broadcast %cst_75 : f32 to vector<16x1xf32>
      %168 = arith.addf %164, %167 : vector<16x1xf32>
      %169 = math.rsqrt %168 : vector<16x1xf32>
      %170 = vector.broadcast %169 : vector<16x1xf32> to vector<16x256xf32>
      %171 = arith.mulf %166, %170 : vector<16x256xf32>
      %172 = vector.broadcast %152 : vector<1x256xf32> to vector<16x256xf32>
      %173 = arith.mulf %171, %172 : vector<16x256xf32>
      %174 = vector.broadcast %153 : vector<1x256xf32> to vector<16x256xf32>
      %175 = arith.addf %173, %174 : vector<16x256xf32>
      %176 = arith.truncf %175 : vector<16x256xf32> to vector<16x256xbf16>
      %c0_76 = arith.constant 0 : index
      %c0_77 = arith.constant 0 : index
      %177 = vector.load %arg19[%c0_76, %c0_77] : memref<256x128xbf16, #tpu.memory_space<vmem>>, vector<256x128xbf16>
      %cst_78 = arith.constant dense<0.000000e+00> : vector<16x128xf32>
      %178 = tpu.matmul %176, %177, %cst_78 {dimension_numbers = #tpu.dot_dimension_numbers<[1], [0], [0], [1], [0, 0, 1, 1], [], []>} : vector<16x256xbf16>, vector<256x128xbf16>, vector<16x128xf32> -> vector<16x128xf32>
      %179 = vector.shape_cast %178 : vector<16x128xf32> to vector<1x16x128xf32>
      %c0_79 = arith.constant 0 : index
      %c0_80 = arith.constant 0 : index
      %c0_81 = arith.constant 0 : index
      %180 = vector.load %arg20[%c0_79, %c0_80, %c0_81] : memref<1x16x128xf32, #tpu.memory_space<vmem>>, vector<1x16x128xf32>
      tpu.vector_store %arg20[%c0_79, %c0_80, %c0_81], %179 {strides = array<i32>} : memref<1x16x128xf32, #tpu.memory_space<vmem>>, vector<1x16x128xf32>,
    } else {
    }
    return
  }
  func.func @transform_0(%arg0: i32, %arg1: i32) -> (i32, i32, i32) {
    %c0_i32 = arith.constant 0 : i32
    %c0_i32_0 = arith.constant 0 : i32
    %c0_i32_1 = arith.constant 0 : i32
    return %arg0, %c0_i32, %c0_i32_0 : i32, i32, i32
  }
  func.func @transform_1(%arg0: i32, %arg1: i32) -> (i32, i32) {
    %c0_i32 = arith.constant 0 : i32
    %c0_i32_0 = arith.constant 0 : i32
    %c0_i32_1 = arith.constant 0 : i32
    return %c0_i32, %c0_i32_0 : i32, i32
  }
  func.func @transform_2(%arg0: i32, %arg1: i32) -> (i32, i32) {
    %c0_i32 = arith.constant 0 : i32
    %c0_i32_0 = arith.constant 0 : i32
    %c0_i32_1 = arith.constant 0 : i32
    return %c0_i32, %c0_i32_0 : i32, i32
  }
  func.func @transform_3(%arg0: i32, %arg1: i32) -> (i32, i32) {
    %c0_i32 = arith.constant 0 : i32
    %c0_i32_0 = arith.constant 0 : i32
    %c0_i32_1 = arith.constant 0 : i32
    return %c0_i32, %c0_i32_0 : i32, i32
  }
  func.func @transform_4(%arg0: i32, %arg1: i32) -> (i32, i32, i32) {
    %c0_i32 = arith.constant 0 : i32
    %c0_i32_0 = arith.constant 0 : i32
    %c0_i32_1 = arith.constant 0 : i32
    return %arg1, %c0_i32, %c0_i32_0 : i32, i32, i32
  }
  func.func @transform_5(%arg0: i32, %arg1: i32) -> (i32, i32, i32) {
    %c0_i32 = arith.constant 0 : i32
    %c0_i32_0 = arith.constant 0 : i32
    %c0_i32_1 = arith.constant 0 : i32
    return %arg1, %c0_i32, %c0_i32_0 : i32, i32, i32
  }
  func.func @transform_6(%arg0: i32, %arg1: i32) -> (i32, i32, i32) {
    %c0_i32 = arith.constant 0 : i32
    %c0_i32_0 = arith.constant 0 : i32
    %c0_i32_1 = arith.constant 0 : i32
    return %arg1, %c0_i32, %c0_i32_0 : i32, i32, i32
  }
  func.func @transform_7(%arg0: i32, %arg1: i32) -> (i32, i32, i32) {
    %c0_i32 = arith.constant 0 : i32
    %c0_i32_0 = arith.constant 0 : i32
    %c0_i32_1 = arith.constant 0 : i32
    return %arg1, %c0_i32, %c0_i32_0 : i32, i32, i32
  }
  func.func @transform_8(%arg0: i32, %arg1: i32) -> (i32, i32, i32) {
    %c0_i32 = arith.constant 0 : i32
    %c0_i32_0 = arith.constant 0 : i32
    %c0_i32_1 = arith.constant 0 : i32
    return %arg1, %c0_i32, %c0_i32_0 : i32, i32, i32
  }
  func.func @transform_9(%arg0: i32, %arg1: i32) -> (i32, i32, i32) {
    %c0_i32 = arith.constant 0 : i32
    %c0_i32_0 = arith.constant 0 : i32
    %c0_i32_1 = arith.constant 0 : i32
    return %arg1, %c0_i32, %c0_i32_0 : i32, i32, i32
  }
  func.func @transform_10(%arg0: i32, %arg1: i32) -> (i32, i32, i32) {
    %c0_i32 = arith.constant 0 : i32
    %c0_i32_0 = arith.constant 0 : i32
    %c0_i32_1 = arith.constant 0 : i32
    return %arg1, %c0_i32, %c0_i32_0 : i32, i32, i32
  }
  func.func @transform_11(%arg0: i32, %arg1: i32) -> (i32, i32, i32) {
    %c0_i32 = arith.constant 0 : i32
    %c0_i32_0 = arith.constant 0 : i32
    %c0_i32_1 = arith.constant 0 : i32
    return %arg1, %c0_i32, %c0_i32_0 : i32, i32, i32
  }
  func.func @transform_12(%arg0: i32, %arg1: i32) -> (i32, i32, i32) {
    %c0_i32 = arith.constant 0 : i32
    %c0_i32_0 = arith.constant 0 : i32
    %c0_i32_1 = arith.constant 0 : i32
    return %arg1, %c0_i32, %c0_i32_0 : i32, i32, i32
  }
  func.func @transform_13(%arg0: i32, %arg1: i32) -> (i32, i32, i32) {
    %c0_i32 = arith.constant 0 : i32
    %c0_i32_0 = arith.constant 0 : i32
    %c0_i32_1 = arith.constant 0 : i32
    return %arg1, %c0_i32, %c0_i32_0 : i32, i32, i32
  }
  func.func @transform_14(%arg0: i32, %arg1: i32) -> (i32, i32, i32) {
    %c0_i32 = arith.constant 0 : i32
    %c0_i32_0 = arith.constant 0 : i32
    %c0_i32_1 = arith.constant 0 : i32
    return %arg1, %c0_i32, %c0_i32_0 : i32, i32, i32
  }
  func.func @transform_15(%arg0: i32, %arg1: i32) -> (i32, i32) {
    %c0_i32 = arith.constant 0 : i32
    %c0_i32_0 = arith.constant 0 : i32
    %c0_i32_1 = arith.constant 0 : i32
    return %c0_i32, %c0_i32_0 : i32, i32
  }
  func.func @transform_16(%arg0: i32, %arg1: i32) -> (i32, i32) {
    %c0_i32 = arith.constant 0 : i32
    %c0_i32_0 = arith.constant 0 : i32
    %c0_i32_1 = arith.constant 0 : i32
    return %c0_i32, %c0_i32_0 : i32, i32
  }
  func.func @transform_17(%arg0: i32, %arg1: i32) -> (i32, i32) {
    %c0_i32 = arith.constant 0 : i32
    %c0_i32_0 = arith.constant 0 : i32
    %c0_i32_1 = arith.constant 0 : i32
    return %c0_i32, %c0_i32_0 : i32, i32
  }
  func.func @transform_18(%arg0: i32, %arg1: i32) -> (i32, i32, i32) {
    %c0_i32 = arith.constant 0 : i32
    %c0_i32_0 = arith.constant 0 : i32
    %c0_i32_1 = arith.constant 0 : i32
    return %arg0, %c0_i32, %c0_i32_0 : i32, i32, i32
  }
}

</mosaic_0001>

<bundles_post_ra>
// kernel: tpu_custom_call.1
= control target key start
LH: loop header
LB: loop body
LE: loop exit
PB: predicated region body
PF: predicated region fallthrough
CT: control target
= control target key end

     0   :  { %s8063_s0 = inlined_call_operand.hbm [shape: bf16[2,16,64], index: 0, kind: input, shape index: {}]   ;;  %s8064_s1 = inlined_call_operand.hbm [shape: bf16[64,256], index: 1, kind: input, shape index: {}]   ;;  %s8065_s2 = inlined_call_operand.hbm [shape: f32[1,256], index: 2, kind: input, shape index: {}]   ;;  %s8066_s3 = inlined_call_operand.hbm [shape: f32[16,256], index: 3, kind: input, shape index: {}]   ;;  %s8067_s4 = inlined_call_operand.vmem [shape: f32[2,1,256], index: 4, kind: input, shape index: {}]   ;;  %s8068_s5 = inlined_call_operand.hbm [shape: f32[2,1,256], index: 5, kind: input, shape index: {}]   ;;  %s8069_s6 = inlined_call_operand.hbm [shape: bf16[2,256,768], index: 6, kind: input, shape index: {}]   ;;  %s8070_s7 = inlined_call_operand.hbm [shape: bf16[2,256,256], index: 7, kind: input, shape index: {}]   ;;  %s8071_s8 = inlined_call_operand.hbm [shape: f32[2,1,256], index: 8, kind: input, shape index: {}]   ;;  %s8072_s9 = inlined_call_operand.hbm [shape: f32[2,1,256], index: 9, kind: input, shape index: {}]   ;;  %s8073_s10 = inlined_call_operand.hbm [shape: f32[2,1,256], index: 10, kind: input, shape index: {}]   ;;  %s8074_s11 = inlined_call_operand.hbm [shape: bf16[2,256,1024], index: 11, kind: input, shape index: {}]   ;;  %s8075_s12 = inlined_call_operand.vmem [shape: f32[2,1,1024], index: 12, kind: input, shape index: {}]   ;;  %s8076_s13 = inlined_call_operand.hbm [shape: bf16[2,1024,256], index: 13, kind: input, shape index: {}]   ;;  %s8077_s14 = inlined_call_operand.vmem [shape: f32[2,1,256], index: 14, kind: input, shape index: {}]   ;;  %s8078_s15 = inlined_call_operand.vmem [shape: f32[1,256], index: 15, kind: input, shape index: {}]   ;;  %s8079_s16 = inlined_call_operand.vmem [shape: f32[1,256], index: 16, kind: input, shape index: {}]   ;;  %s8080_s17 = inlined_call_operand.hbm [shape: bf16[256,128], index: 17, kind: input, shape index: {}]   ;;  %s8081_s18 = inlined_call_operand.hbm [shape: f32[2,16,128], index: 18, kind: output, shape index: {}]  }
   0x1   :  { %8106 = sst [smem:[#allocation40_spill]] %s8063_s0 }
   0x2   :  { %8107 = sst [smem:[#allocation41_spill]] %s8064_s1 }
   0x3   :  { %8108 = sst [smem:[#allocation42_spill]] %s8065_s2 }
   0x4   :  { %8109 = sst [smem:[#allocation43_spill]] %s8066_s3 }
   0x5   :  { %8110 = sst [smem:[#allocation44_spill]] %s8067_s4 }
   0x6   :  { %8111 = sst [smem:[#allocation45_spill]] %s8068_s5 }
   0x7   :  { %8112 = sst [smem:[#allocation46_spill]] %s8069_s6 }
   0x8   :  { %8113 = sst [smem:[#allocation47_spill]] %s8070_s7 }
   0x9   :  { %8114 = sst [smem:[#allocation48_spill]] %s8071_s8 }
   0xa   :  { %8115 = sst [smem:[#allocation49_spill]] %s8072_s9 }
   0xb   :  { %8116 = sst [smem:[#allocation50_spill]] %s8073_s10 }
   0xc   :  { %8117 = sst [smem:[#allocation51_spill]] %s8074_s11 }
   0xd   :  { %8118 = sst [smem:[#allocation52_spill]] %s8075_s12 }
   0xe   :  { %8119 = sst [smem:[#allocation53_spill]] %s8076_s13 }
   0xf   :  { %8120 = sst [smem:[#allocation54_spill]] %s8077_s14 }
  0x10   :  { %8121 = sst [smem:[#allocation55_spill]] %s8078_s15 }
  0x11   :  { %8122 = sst [smem:[#allocation56_spill]] %s8079_s16 }
  0x12   :  { %8123 = sst [smem:[#allocation57_spill]] %s8080_s17 }
  0x13   :  { %8124 = sst [smem:[#allocation58_spill]] %s8081_s18 }
  0x14   :  { %23 = vsyncpa [#allocation4], 0 }
  0x15   :  { %25 = vsyncpa [#allocation4 + $0x1], 0 }
  0x16   :  { %26 = vsyncpa [#allocation7], 0 }
  0x17   :  { %27 = vsyncpa [#allocation10], 0 }
  0x18   :  { %28 = vsyncpa [#allocation5], 0 }
  0x19   :  { %30 = vsyncpa [#allocation5 + $0x1], 0  ;;  %s6953_s27 = smov 0   ;;  %s6955_s28 = smov 0  }
  0x1a   :  { %s6957_s29 = smov 0   ;;  %s6959_s30 = smov 0  }
  0x1b   :  { %s6961_s0 = smov 0   ;;  %s6963_s19 = smov 0  }
  0x1c   :  { %s6965_s1 = smov 0   ;;  %s6967_s20 = smov 0  }
  0x1d   :  { %s6969_s21 = smov 0   ;;  %s6971_s22 = smov 0  }
  0x1e   :  { %s6973_s2 = smov 0  }
  0x1f LB: > { %8125 = sst [smem:[#allocation27_spill]] %s6795_s29  ;;  %s5126_s23 = sadd.s32 4294967294, %s6827_s2   ;;  %s6827_s2 = sphi %s6973_s2, %s36_s2   ;;  %s6823_s22 = sphi %s6971_s22, %s8197_s22   ;;  %s6819_s21 = sphi %s6969_s21, %s8204_s21   ;;  %s6815_s20 = sphi %s6967_s20, %s8203_s20   ;;  %s6811_s1 = sphi %s6965_s1, %s8202_s1   ;;  %s6807_s19 = sphi %s6963_s19, %s8194_s19   ;;  %s6803_s0 = sphi %s6961_s0, %s8201_s0   ;;  %s6799_s30 = sphi %s6959_s30, %s8200_s30   ;;  %s6795_s29 = sphi %s6957_s29, %s8192_s29   ;;  %s6791_s28 = sphi %s6955_s28, %s8199_s28   ;;  %s6787_s27 = sphi %s6953_s27, %s8198_s27  }
  0x20   : > { %8126 = sst [smem:[#allocation28_spill]] %s6799_s30  ;;  %s45_s24 = sadd.s32 1, %s6819_s21 }
  0x21   : > { %8127 = sst [smem:[#allocation29_spill]] %s6807_s19  ;;  %p46_p0 = scmp.ge.s32.totalorder %s45_s24, 2 }
  0x22   : > { %8128 = sst [smem:[#allocation30_spill]] %s6811_s1  ;;  %s48_s25 = sadd.s32 1, %s6823_s22 }
  0x23   : > { %8129 = sst [smem:[#allocation31_spill]] %s6815_s20  ;;  %s55_s26 = sadd.s32 1, %s6807_s19 }
  0x24   : > { %8130 = sst [smem:[#allocation32_spill]] %s6823_s22  ;;  %p8085_p1 = scmp.ne.s32.totalorder %s6807_s19, %s6803_s0 }
  0x25   : > { %8131 = sst [smem:[#allocation33_spill]] %s6827_s2  ;;  %s8206_s24 = smov (%p46_p0, %s45_s24), 0 }
  0x26   : > { %8132 = sst [smem:[#allocation34_spill]] %s8206_s24  ;;  %s8208_s25 = smov (!%p46_p0, %s48_s25), %s6823_s22 }
  0x27   : > { %p63_p2 = scmp.eq.s32.totalorder %s6827_s2, 0  ;;  %p68_p3 = scmp.ne.s32.totalorder %s6803_s0, %s6799_s30 }
  0x28   : > { %p50_p4 = scmp.ge.s32.totalorder %s8208_s25, 2  ;;  %s167_s18 = ssub.s32 %s6819_s21, %s8206_s24 }
  0x29   : > { %p7027_p5 = por %p63_p2, %p8085_p1  ;;  %p7031_p6 = scmp.eq.s32.totalorder %s167_s18, 0 }
  0x2a   : > { %s8210_s25 = smov (%p50_p4, %s8208_s25), 0  ;;  %p510_p7 = scmp.eq.s32.totalorder %s5126_s23, 3 }
  0x2b   : > { %8135 = sst [smem:[#allocation35_spill]] %s8210_s25  ;;  %s52_s15 = ssub.s32 %s6823_s22, %s8210_s25 }
  0x2c   : > { %p53_p8 = scmp.eq.s32.totalorder %s52_s15, 0  ;;  %p7042_p9 = por %p510_p7, %p68_p3 }
  0x2d   : > { %p5745_p10 = scmp.lt.s32.totalorder %s6827_s2, 4  ;;  %s586_s18 = sand.u32 1, %s6827_s2  }
  0x2e   : > { %s8136_s24 = scalar_select %p7042_p9, 1, 0 }
  0x2f   : > { %s7048_s14 = scalar_select %p53_p8, %s6807_s19, %s55_s26  }
  0x30   : > { %8137 = sst [smem:[#allocation36_spill]] %s8136_s24  ;;  %s588_s12 = sand.u32 1, %s6807_s19  }
  0x31   : > { %8138 = sst [smem:[#allocation37_spill]] %s7048_s14  ;;  %s5133_s4 = sshll.u32 %s588_s12, 3 }
  0x32   : > { %s5594_s1 = sshll.u32 %s6823_s22, 7  ;;  %s8139_s3 = sld [smem:[#allocation40_spill]] }
  0x33   : > { %s590_s10 = scalar_lea.vmem [#allocation3], %s5133_s4  ;;  %p7060_p11 = pnand %p5745_p10, %p7027_p5 }
  0x34   : > { %s597_s23 = sshll.u32 %s590_s10, 4  ;;  %s7064_s26 = scalar_lea.sflag [#allocation4], %s586_s18  ;;  %s598_s23 = int_to_ptr.vmem [resolvable:$true] %s597_s23 }
  0x35   : > { %p6337_p12 = pneg %p7060_p11  ;;  %s6348_s12 = scalar_lea.vmem %s598_s23, 128 }
  0x36   : > { %p6349_p13 = scmp.ne.s32.totalorder %s598_s23, %s6348_s12  ;;  %s6829_s13 = smov [#allocation3]  }
  0x38   : > { %s596_s11 = scalar_lea.hbm %s8139_s3, %s5594_s1  ;;  %p6351_p0 = pnand %p6349_p13, %p6337_p12 }
  0x39   : > { %s6353_s3 = sshll.u32 %s6829_s13, 4  ;;  %s6354_s3 = int_to_ptr.vmem [resolvable:$false] %s6353_s3 }
  0x3a   : > { %p6352_p4 = pneg %p6351_p0  ;;  %s6355_s4 = scalar_lea.vmem %s6354_s3, 256 }
  0x3b   : > { %p6356_p7 = scmp.lt.s32.totalorder %s598_s23, %s6354_s3  ;;  %p6357_p8 = scmp.lt.s32.totalorder %s6355_s4, %s6348_s12 }
  0x3d   : > { %p6358_p1 = por %p6357_p8, %p6356_p7 }
  0x3f   : > { %p6359_p5 = pnand %p6358_p1, %p6352_p4 }
  0x41   : > { %6362 = shalt.err (!%p6359_p5)
}
  0x42   : > { %s8086_s10 = smov 64   ;;  %s8087_s17 = smov 4  }
  0x43   : > { %5712 = dma.hbm_to_vmem [thread:$0]  (!%p7060_p11), %s596_s11, 128, %s598_s23, %s7064_s26, %s8086_s10, %s8086_s10, %s8087_s17  }
  0x44   : > { %s170_s1 = sadd.s32 1, %s6795_s29  ;;  %p177_p1 = scmp.ne.s32.totalorder %s6795_s29, %s6791_s28 }
  0x45   : > { %s7078_s20 = scalar_select %p7031_p6, %s6795_s29, %s170_s1  }
  0x46   : > { %s7083_s18 = sand.u32 1, %s6795_s29   ;;  %s7089_s13 = sshll.u32 %s6819_s21, 5 }
  0x47   : > { %8141 = sst [smem:[#allocation38_spill]] %s7078_s20  ;;  %s7086_s12 = sshll.u32 %s7083_s18, 1 }
  0x48   : > { %p179_p12 = por %p177_p1, %p63_p2  ;;  %s8142_s5 = sld [smem:[#allocation45_spill]] }
  0x49   : > { %s618_s16 = scalar_lea.vmem [#allocation11], %s7086_s12  ;;  %s5657_s1 = smul.u32 768, %s7083_s18 }
  0x4a   : > { %s626_s23 = sshll.u32 %s618_s16, 4  ;;  %p7100_p6 = pnand %p5745_p10, %p179_p12  ;;  %s627_s23 = int_to_ptr.vmem [resolvable:$true] %s626_s23 }
  0x4b   : > { %s5658_s10 = smul.u32 12288, %s6819_s21  ;;  %s6376_s25 = scalar_lea.vmem %s627_s23, 32 }
  0x4c   : > { %p7108_p11 = pneg %p7100_p6  ;;  %p6377_p2 = scmp.ne.s32.totalorder %s627_s23, %s6376_s25 }
  0x4d   : > { %s6832_s15 = smov [#allocation11]  }
  0x4e   : > { %s624_s11 = scalar_lea.hbm %s8142_s5, %s7089_s13  ;;  %p6379_p13 = pnand %p6377_p2, %p7108_p11 }
  0x4f   : > { %s6381_s3 = sshll.u32 %s6832_s15, 4  ;;  %s6382_s3 = int_to_ptr.vmem [resolvable:$false] %s6381_s3 }
  0x50   : > { %p6380_p0 = pneg %p6379_p13  ;;  %s6383_s16 = scalar_lea.vmem %s6382_s3, 64 }
  0x51   : > { %p6384_p10 = scmp.lt.s32.totalorder %s627_s23, %s6382_s3  ;;  %p6385_p4 = scmp.lt.s32.totalorder %s6383_s16, %s6376_s25 }
  0x53   : > { %p6386_p7 = por %p6385_p4, %p6384_p10 }
  0x55   : > { %p6387_p8 = pnand %p6386_p7, %p6380_p0 }
  0x57   : > { %6390 = shalt.err (!%p6387_p8)
}
  0x58   : > { %5715 = dma.hbm_to_vmem [thread:$0]  (!%p7100_p6), %s624_s11, 32, %s627_s23, %s7064_s26  }
  0x59   : > { %s8145_s6 = sld [smem:[#allocation46_spill]]  ;;  %s637_s20 = scalar_lea.vmem [#allocation12], %s5657_s1 }
  0x5a   : > { %s644_s29 = sshll.u32 %s637_s20, 4  ;;  %s6833_s25 = smov [#allocation12]   ;;  %s645_s29 = int_to_ptr.vmem [resolvable:$true] %s644_s29 }
  0x5b   : > { %s6404_s15 = scalar_lea.vmem %s645_s29, 12288  ;;  %s6409_s3 = sshll.u32 %s6833_s25, 4  ;;  %s6410_s3 = int_to_ptr.vmem [resolvable:$false] %s6409_s3 }
  0x5c   : > { %p6405_p5 = scmp.ne.s32.totalorder %s645_s29, %s6404_s15  ;;  %s6411_s16 = scalar_lea.vmem %s6410_s3, 24576 }
  0x5d   : > { %p6412_p2 = scmp.lt.s32.totalorder %s645_s29, %s6410_s3  ;;  %p6413_p13 = scmp.lt.s32.totalorder %s6411_s16, %s6404_s15 }
  0x5e   : > { %p6407_p1 = pnand %p6405_p5, %p7108_p11 }
  0x5f   : > { %s643_s14 = scalar_lea.hbm %s8145_s6, %s5658_s10  ;;  %p6414_p0 = por %p6413_p13, %p6412_p2 }
  0x60   : > { %p6408_p12 = pneg %p6407_p1 }
  0x62   : > { %p6415_p10 = pnand %p6414_p0, %p6408_p12 }
  0x64   : > { %6418 = shalt.err (!%p6415_p10)
}
  0x65   : > { %s6834_s11 = smov 384   ;;  %s6835_s5 = smov 24  }
  0x66   : > { %5718 = dma.hbm_to_vmem [thread:$0]  (!%p7100_p6), %s643_s14, 12288, %s645_s29, %s7064_s26, %s6834_s11, %s6834_s11, %s6835_s5  }
  0x67   : > { %s5140_s22 = sshll.u32 %s7083_s18, 8  ;;  %s5596_s10 = sshll.u32 %s6819_s21, 12 }
  0x68   : > { %s8146_s7 = sld [smem:[#allocation47_spill]]  ;;  %s658_s25 = scalar_lea.vmem [#allocation13], %s5140_s22 }
  0x69   : > { %s665_s15 = sshll.u32 %s658_s25, 4  ;;  %s6836_s16 = smov [#allocation13]   ;;  %s666_s15 = int_to_ptr.vmem [resolvable:$true] %s665_s15 }
  0x6a   : > { %s6432_s3 = scalar_lea.vmem %s666_s15, 4096  ;;  %s6437_s6 = sshll.u32 %s6836_s16, 4  ;;  %s6438_s6 = int_to_ptr.vmem [resolvable:$false] %s6437_s6 }
  0x6b   : > { %p6433_p4 = scmp.ne.s32.totalorder %s666_s15, %s6432_s3  ;;  %s6439_s24 = scalar_lea.vmem %s6438_s6, 8192 }
  0x6c   : > { %p6440_p5 = scmp.lt.s32.totalorder %s666_s15, %s6438_s6  ;;  %p6441_p1 = scmp.lt.s32.totalorder %s6439_s24, %s6432_s3 }
  0x6d   : > { %p6435_p7 = pnand %p6433_p4, %p7108_p11 }
  0x6e   : > { %s664_s1 = scalar_lea.hbm %s8146_s7, %s5596_s10  ;;  %p6442_p12 = por %p6441_p1, %p6440_p5 }
  0x6f   : > { %p6436_p8 = pneg %p6435_p7 }
  0x71   : > { %p6443_p2 = pnand %p6442_p12, %p6436_p8 }
  0x73   : > { %6446 = shalt.err (!%p6443_p2)
}
  0x74   : > { %s8092_s14 = smov 128   ;;  %s8094_s29 = smov 8  }
  0x75   : > { %5721 = dma.hbm_to_vmem [thread:$0]  (!%p7100_p6), %s664_s1, 4096, %s666_s15, %s7064_s26, %s8092_s14, %s8092_s14, %s8094_s29  }
  0x76   : > { %s8147_s8 = sld [smem:[#allocation48_spill]]  ;;  %s679_s24 = scalar_lea.vmem [#allocation14], %s7086_s12 }
  0x77   : > { %s687_s22 = sshll.u32 %s679_s24, 4  ;;  %s6839_s20 = smov [#allocation14]   ;;  %s688_s22 = int_to_ptr.vmem [resolvable:$true] %s687_s22 }
  0x78   : > { %s6460_s10 = scalar_lea.vmem %s688_s22, 32  ;;  %s6465_s23 = sshll.u32 %s6839_s20, 4  ;;  %s6466_s23 = int_to_ptr.vmem [resolvable:$false] %s6465_s23 }
  0x79   : > { %p6461_p13 = scmp.ne.s32.totalorder %s688_s22, %s6460_s10  ;;  %s6467_s25 = scalar_lea.vmem %s6466_s23, 64 }
  0x7a   : > { %p6468_p4 = scmp.lt.s32.totalorder %s688_s22, %s6466_s23  ;;  %p6469_p7 = scmp.lt.s32.totalorder %s6467_s25, %s6460_s10 }
  0x7b   : > { %p6463_p0 = pnand %p6461_p13, %p7108_p11 }
  0x7c   : > { %s685_s6 = scalar_lea.hbm %s8147_s8, %s7089_s13  ;;  %p6470_p8 = por %p6469_p7, %p6468_p4 }
  0x7d   : > { %p6464_p10 = pneg %p6463_p0 }
  0x7f   : > { %p6471_p5 = pnand %p6470_p8, %p6464_p10 }
  0x81   : > { %6474 = shalt.err (!%p6471_p5)
}
  0x82   : > { %5724 = dma.hbm_to_vmem [thread:$0]  (!%p7100_p6), %s685_s6, 32, %s688_s22, %s7064_s26  }
  0x83   : > { %s8148_s9 = sld [smem:[#allocation49_spill]]  ;;  %s698_s16 = scalar_lea.vmem [#allocation15], %s7086_s12 }
  0x84   : > { %s706_s11 = sshll.u32 %s698_s16, 4  ;;  %s6840_s24 = smov [#allocation15]   ;;  %s707_s11 = int_to_ptr.vmem [resolvable:$true] %s706_s11 }
  0x85   : > { %s6488_s5 = scalar_lea.vmem %s707_s11, 32  ;;  %s6493_s10 = sshll.u32 %s6840_s24, 4  ;;  %s6494_s10 = int_to_ptr.vmem [resolvable:$false] %s6493_s10 }
  0x86   : > { %p6489_p1 = scmp.ne.s32.totalorder %s707_s11, %s6488_s5  ;;  %s6495_s20 = scalar_lea.vmem %s6494_s10, 64 }
  0x87   : > { %p6496_p13 = scmp.lt.s32.totalorder %s707_s11, %s6494_s10  ;;  %p6497_p0 = scmp.lt.s32.totalorder %s6495_s20, %s6488_s5 }
  0x88   : > { %p6491_p12 = pnand %p6489_p1, %p7108_p11 }
  0x89   : > { %s704_s3 = scalar_lea.hbm %s8148_s9, %s7089_s13  ;;  %p6498_p10 = por %p6497_p0, %p6496_p13 }
  0x8a   : > { %p6492_p2 = pneg %p6491_p12 }
  0x8c   : > { %p6499_p4 = pnand %p6498_p10, %p6492_p2 }
  0x8e   : > { %6502 = shalt.err (!%p6499_p4)
}
  0x8f   : > { %5727 = dma.hbm_to_vmem [thread:$0]  (!%p7100_p6), %s704_s3, 32, %s707_s11, %s7064_s26  }
  0x90   : > { %s7159_s6 = sadd.s32 4294967295, %s6827_s2   ;;  %p183_p8 = scmp.ne.s32.totalorder %s6791_s28, %s6787_s27 }
  0x91   : > { %p8099_p7 = scmp.eq.s32.totalorder %s7159_s6, 0  ;;  %p504_p5 = scmp.eq.s32.totalorder %s7159_s6, 3 }
  0x92   : > { %p5127_p1 = scmp.ge.s32.totalorder %s6827_s2, 1  ;;  %p8151_p13 = scmp.ne.s32.totalorder %s6807_s19, %s6803_s0 }
  0x93   : > { %p7171_p12 = por %p8099_p7, %p68_p3  ;;  %p7177_p2 = por %p183_p8, %p8099_p7 }
  0x94   : > { %p7184_p0 = por %p504_p5, %p8151_p13  ;;  %p517_p10 = scmp.lt.s32.totalorder %s6827_s2, 5 }
  0x95   : > { %s8149_s22 = scalar_select %p7171_p12, 1, 0 }
  0x96   : > { %s8150_s23 = scalar_select %p7177_p2, 1, 0 }
  0x97   : > { %s8152_s25 = scalar_select %p7184_p0, 1, 0 }
  0x98   : > { %p7189_p4 = pnand %p5127_p1, %p517_p10  ;;  %s6841_s1 = smov [#allocation6]  }
  0x99   : > { %8153 = sst [smem:[#allocation39_spill]] %s8152_s25  ;;  %s529_s15 = sshll.u32 %s6841_s1, 4  ;;  %s7193_s15 = int_to_ptr.vmem [resolvable:$true] %s529_s15 }
  0x9a   : > { %p5696_p3 = pneg %p7189_p4  ;;  %s8155_s11 = sld [smem:[#allocation50_spill]] }
  0x9b   : > { %s717_s24 = scalar_lea.vmem [#allocation16], %s7086_s12  ;;  %s6842_s1 = smov [#allocation16]  }
  0x9c   : > { %s725_s10 = sshll.u32 %s717_s24, 4  ;;  %p7204_p8 = pnand %p5696_p3, %p8099_p7  ;;  %s726_s10 = int_to_ptr.vmem [resolvable:$true] %s725_s10 }
  0x9d   : > { %s6516_s14 = scalar_lea.vmem %s726_s10, 32  ;;  %s6521_s29 = sshll.u32 %s6842_s1, 4  ;;  %s6522_s29 = int_to_ptr.vmem [resolvable:$false] %s6521_s29 }
  0x9e   : > { %p6517_p5 = scmp.ne.s32.totalorder %s726_s10, %s6516_s14  ;;  %s6523_s7 = scalar_lea.vmem %s6522_s29, 64 }
  0x9f   : > { %p6524_p10 = scmp.lt.s32.totalorder %s726_s10, %s6522_s29  ;;  %p6525_p9 = scmp.lt.s32.totalorder %s6523_s7, %s6516_s14 }
  0xa0   : > { %s723_s5 = scalar_lea.hbm %s8155_s11, %s7089_s13  ;;  %p6519_p1 = pnand %p6517_p5, %p7108_p11 }
  0xa1   : > { %p6526_p0 = por %p6525_p9, %p6524_p10 }
  0xa2   : > { %p6520_p13 = pneg %p6519_p1 }
  0xa4   : > { %p6527_p2 = pnand %p6526_p0, %p6520_p13 }
  0xa6   : > { %6530 = shalt.err (!%p6527_p2)
}
  0xa7   : > { %5730 = dma.hbm_to_vmem [thread:$0]  (!%p7100_p6), %s723_s5, 32, %s726_s10, %s7064_s26  }
  0xa8   : > { %s6843_s12 = smov [#allocation8]   ;;  %p6533_p3 = pneg %p7204_p8 }
  0xa9   : > { %s543_s13 = sshll.u32 %s6843_s12, 4  ;;  %s6542_s3 = scalar_lea.vmem %s7193_s15, 1024  ;;  %s544_s13 = int_to_ptr.vmem [resolvable:$true] %s543_s13 }
  0xaa   : > { %p6543_p5 = scmp.ne.s32.totalorder %s7193_s15, %s6542_s3  ;;  %p6550_p2 = scmp.lt.s32.totalorder %s7193_s15, %s7193_s15 }
  0xab   : > { %p6551_p1 = scmp.lt.s32.totalorder %s6542_s3, %s6542_s3 }
  0xac   : > { %p6545_p9 = pnand %p6543_p5, %p6533_p3 }
  0xad   : > { %p6552_p13 = por %p6551_p1, %p6550_p2 }
  0xae   : > { %p6546_p0 = pneg %p6545_p9 }
  0xb0   : > { %p6553_p10 = pnand %p6552_p13, %p6546_p0 }
  0xb2   : > { %6556 = shalt.err (!%p6553_p10)
}
  0xb3   : > { %s8157_s7 = smov 8   ;;  %s8158_s14 = smov 128  }
  0xb4   : > { %s8159_s11 = sld [smem:[#allocation41_spill]]  ;;  %s5152_s5 = sshll.u32 %s7083_s18, 10 }
  0xb5   : > { %s6568_s24 = scalar_lea.vmem %s544_s13, 32  ;;  %p6576_p2 = scmp.lt.s32.totalorder %s544_s13, %s544_s13 }
  0xb6   : > { %p6569_p5 = scmp.ne.s32.totalorder %s544_s13, %s6568_s24  ;;  %p6577_p1 = scmp.lt.s32.totalorder %s6568_s24, %s6568_s24 }
  0xb8   : > { %p6571_p9 = pnand %p6569_p5, %p6533_p3  ;;  %p6578_p13 = por %p6577_p1, %p6576_p2 }
  0xba   : > { %5699 = dma.hbm_to_vmem [thread:$0]  (!%p7204_p8), %s8159_s11, 1024, %s7193_s15, [#allocation7], %s8158_s14, %s8158_s14, %s8157_s7  }
  0xbb   : > { %p6572_p0 = pneg %p6571_p9 }
  0xbd   : > { %p6579_p10 = pnand %p6578_p13, %p6572_p0 }
  0xbf   : > { %6582 = shalt.err (!%p6579_p10)
}
  0xc0   : > { %s8160_s12 = sld [smem:[#allocation42_spill]]  ;;  %s5600_s15 = sshll.u32 %s6819_s21, 14 }
  0xc1   : > { %s8161_s16 = sld [smem:[#allocation51_spill]]  ;;  %s736_s24 = scalar_lea.vmem [#allocation17], %s5152_s5 }
  0xc2   : > { %s743_s8 = sshll.u32 %s736_s24, 4  ;;  %s6844_s10 = smov [#allocation17]   ;;  %s744_s8 = int_to_ptr.vmem [resolvable:$true] %s743_s8 }
  0xc3   : > { %s6596_s9 = scalar_lea.vmem %s744_s8, 16384  ;;  %s6601_s1 = sshll.u32 %s6844_s10, 4  ;;  %s6602_s1 = int_to_ptr.vmem [resolvable:$false] %s6601_s1 }
  0xc4   : > { %p6597_p5 = scmp.ne.s32.totalorder %s744_s8, %s6596_s9  ;;  %s6603_s19 = scalar_lea.vmem %s6602_s1, 32768 }
  0xc5   : > { %p6604_p2 = scmp.lt.s32.totalorder %s744_s8, %s6602_s1  ;;  %p6605_p1 = scmp.lt.s32.totalorder %s6603_s19, %s6596_s9 }
  0xc6   : > { %5702 = dma.hbm_to_vmem [thread:$0]  (!%p7204_p8), %s8160_s12, 32, %s544_s13, [#allocation7]  }
  0xc7   : > { %s742_s11 = scalar_lea.hbm %s8161_s16, %s5600_s15  ;;  %p6599_p9 = pnand %p6597_p5, %p7108_p11 }
  0xc8   : > { %p6606_p13 = por %p6605_p1, %p6604_p2 }
  0xc9   : > { %p6600_p0 = pneg %p6599_p9 }
  0xcb   : > { %p6607_p10 = pnand %p6606_p13, %p6600_p0 }
  0xcd   : > { %6610 = shalt.err (!%p6607_p10)
}
  0xce   : > { %s6845_s13 = smov 512   ;;  %s6846_s12 = smov 32  }
  0xcf   : > { %5733 = dma.hbm_to_vmem [thread:$0]  (!%p7100_p6), %s742_s11, 16384, %s744_s8, %s7064_s26, %s6845_s13, %s6845_s13, %s6846_s12  }
  0xd0   : > { %s6847_s3 = smov [#allocation9]  }
  0xd1   : > { %s553_s29 = sshll.u32 %s6847_s3, 4  ;;  %s554_s29 = int_to_ptr.vmem [resolvable:$true] %s553_s29 }
  0xd2   : > { %s6622_s16 = scalar_lea.vmem %s554_s29, 512  ;;  %p6630_p12 = scmp.lt.s32.totalorder %s554_s29, %s554_s29 }
  0xd3   : > { %p6623_p5 = scmp.ne.s32.totalorder %s554_s29, %s6622_s16  ;;  %p6631_p2 = scmp.lt.s32.totalorder %s6622_s16, %s6622_s16 }
  0xd5   : > { %p6625_p9 = pnand %p6623_p5, %p6533_p3  ;;  %p6632_p0 = por %p6631_p2, %p6630_p12 }
  0xd7   : > { %p6626_p7 = pneg %p6625_p9 }
  0xd9   : > { %p6633_p1 = pnand %p6632_p0, %p6626_p7 }
  0xdb   : > { %6636 = shalt.err (!%p6633_p1)
}
  0xdc   : > { %s6848_s9 = smov 256   ;;  %s6849_s8 = smov 16  }
  0xdd   : > { %s8162_s24 = sld [smem:[#allocation43_spill]]  ;;  %s6850_s10 = smov [#allocation19]  }
  0xde   : > { %s572_s1 = sshll.u32 %s6850_s10, 4  ;;  %s8163_s3 = sld [smem:[#allocation53_spill]]  ;;  %s573_s1 = int_to_ptr.vmem [resolvable:$true] %s572_s1 }
  0xdf   : > { %s764_s30 = scalar_lea.vmem [#allocation18], %s5152_s5  ;;  %s6648_s25 = scalar_lea.vmem %s573_s1, 2048 }
  0xe0   : > { %s771_s2 = sshll.u32 %s764_s30, 4  ;;  %p6649_p7 = scmp.ne.s32.totalorder %s573_s1, %s6648_s25  ;;  %s772_s2 = int_to_ptr.vmem [resolvable:$true] %s771_s2 }
  0xe1   : > { %p6656_p10 = scmp.lt.s32.totalorder %s573_s1, %s573_s1  ;;  %p6657_p5 = scmp.lt.s32.totalorder %s6648_s25, %s6648_s25 }
  0xe2   : > { %p6651_p12 = pnand %p6649_p7, %p6533_p3 }
  0xe3   : > { %5705 = dma.hbm_to_vmem [thread:$0]  (!%p7204_p8), %s8162_s24, 512, %s554_s29, [#allocation10], %s6848_s9, %s6848_s9, %s6849_s8  }
  0xe4   : > { %s7266_s16 = scalar_lea.hbm %s8163_s3, %s5600_s15  ;;  %p6652_p13 = pneg %p6651_p12 }
  0xe5   : > { %p6658_p9 = por %p6657_p5, %p6656_p10 }
  0xe7   : > { %p6659_p2 = pnand %p6658_p9, %p6652_p13 }
  0xe9   : > { %6662 = shalt.err (!%p6659_p2)
}
  0xea   : > { %s8164_s29 = smov 4   ;;  %s8165_s15 = smov 64  }
  0xeb   : > { %s8166_s5 = sld [smem:[#allocation57_spill]]  ;;  %s6676_s30 = scalar_lea.vmem %s772_s2, 16384 }
  0xec   : > { %p6677_p0 = scmp.ne.s32.totalorder %s772_s2, %s6676_s30  ;;  %s6851_s25 = smov [#allocation18]  }
  0xed   : > { %s6681_s8 = sshll.u32 %s6851_s25, 4  ;;  %s6682_s8 = int_to_ptr.vmem [resolvable:$false] %s6681_s8 }
  0xee   : > { %p6679_p3 = pnand %p6677_p0, %p7108_p11  ;;  %s6683_s19 = scalar_lea.vmem %s6682_s8, 32768 }
  0xef   : > { %p6684_p7 = scmp.lt.s32.totalorder %s772_s2, %s6682_s8  ;;  %p6685_p12 = scmp.lt.s32.totalorder %s6683_s19, %s6676_s30 }
  0xf0   : > { %p6680_p1 = pneg %p6679_p3 }
  0xf1   : > { %5708 = dma.hbm_to_vmem [thread:$0]  (!%p7204_p8), %s8166_s5, 2048, %s573_s1, [#allocation7], %s8165_s15, %s8165_s15, %s8164_s29  }
  0xf2   : > { %p6686_p13 = por %p6685_p12, %p6684_p7 }
  0xf4   : > { %p6687_p10 = pnand %p6686_p13, %p6680_p1 }
  0xf6   : > { %6690 = shalt.err (!%p6687_p10)
}
  0xf7   : > { %5736 = dma.hbm_to_vmem [thread:$0]  (!%p7100_p6), %s7266_s16, 16384, %s772_s2, %s7064_s26, %s8158_s14, %s8158_s14, %s8157_s7  }
  0xf8   : > { %790 = sbr.rel (%p7189_p4) target bundleno = 3318 (0xcf6), region = 92  ;;  %s792_s17 = sand.u32 (!%p7189_p4), 1, %s7159_s6  }
  0xf9   : > { %s7294_s20 = sand.u32 (!%p7189_p4), 1, %s6803_s0   ;;  %s793_s24 = scalar_lea.sflag (!%p7189_p4), [#allocation4], %s792_s17 }
  0xfa   : > { %s5159_s11 = sshll.u32 (!%p7189_p4), %s7294_s20, 3  ;;  %p8167_p11 = scmp.ne.s32.totalorder (!%p7189_p4), %s8149_s22, 0 }
  0xfb   : > { %s7297_s10 = scalar_lea.vmem (!%p7189_p4), [#allocation3], %s5159_s11 }
  0xfd   : > { %6762 = dma.done.wait (%p8167_p11), %s793_s24, 128  }
  0xfe   : > { %6764 = vsyncadd (%p8167_p11), %s793_s24, 4294967168  ;;  %p8168_p6 = scmp.eq.s32.totalorder %s7159_s6, 0 }
 0x100   : > { %6766 = dma.done.wait (%p8168_p6), [#allocation7], 1056   ;;  %p8169_p4 = pmov %p8168_p6 }
 0x102   : > { %6768 = vsyncadd (%p8169_p4), [#allocation7], 4294966240  ;;  %p8170_p8 = pmov %p8169_p4 }
 0x103   : > { %p8171_p5 = pmov %p8169_p4 }
 0x104   : > { %6770 = dma.done.wait (%p8170_p8), [#allocation10], 512  }
 0x105   : > { %6772 = vsyncadd (%p8171_p5), [#allocation10], 4294966784  ;;  %s815_s2 = sand.u32 1, %s6791_s28   ;;  %p8172_p9 = scmp.ne.s32.totalorder %s8150_s23, 0 }
 0x106   : > { %s7312_s26 = sshll.u32 %s815_s2, 1 }
 0x107   : > { %s817_s4 = scalar_lea.vmem [#allocation11], %s7312_s26 }
 0x108   : > { %6774 = dma.done.wait (%p8172_p9), %s793_s24, 49280  }
 0x109   : > { %6776 = vsyncadd (%p8172_p9), %s793_s24, 4294918016  ;;  %s5659_s22 = smul.u32 768, %s815_s2  ;;  %s5164_s27 = sshll.u32 %s815_s2, 8 }
 0x10a   : > { %s5168_s7 = sshll.u32 %s815_s2, 10  ;;  %s7321_s1 = scalar_lea.vmem [#allocation13], %s5164_s27 }
 0x10b   : > { %s7319_s14 = scalar_lea.vmem [#allocation12], %s5659_s22  ;;  %s844_s13 = scalar_lea.vmem [#allocation14], %s7312_s26 }
 0x10c   : > { %s853_s12 = scalar_lea.vmem [#allocation15], %s7312_s26  ;;  %s7326_s16 = scalar_lea.vmem [#allocation17], %s5168_s7 }
 0x10d   : > { %s7328_s29 = scalar_lea.vmem [#allocation18], %s5168_s7  ;;  %p8173_p2 = pmov %p8169_p4 }
 0x10f   : > { %6778 = dma.done.wait (%p8173_p2), [#allocation7], 2048   ;;  %p8174_p0 = pmov %p8173_p2 }
 0x110   : > { %s8175_s23 = sld [smem:[#allocation30_spill]]  ;;  %s5171_s15 = sshll.u32 %s7294_s20, 4 }
 0x111   : > { %6780 = vsyncadd (%p8174_p0), [#allocation7], 4294965248  ;;  %s8176_s8 = sld [smem:[#allocation44_spill]]  ;;  %s7352_s3 = scalar_lea.vmem [#allocation20], %s5171_s15 }
 0x112   : > { %s8177_s24 = sld [smem:[#allocation52_spill]] }
 0x113   : > { %s8178_s27 = sld [smem:[#allocation54_spill]] }
 0x116   : > { %p989_p3 = scmp.lt.s32.totalorder %s8175_s23, 1  ;;  %p5175_p1 = scmp.ne.s32.totalorder %s8175_s23, 0 }
 0x118   : > { %s990_s9 = scalar_select %p989_p3, %s8175_s23, 1 }
 0x119   : > { %1005 = sbr.rel (%p5175_p1) target bundleno = 507 (0x1fb), region = 148 }
 0x11a   : > { %s5172_s18 = sshll.u32 %s990_s9, 1  ;;  %s5173_s5 = sshll.u32 %s990_s9, 3 }
 0x11b   : > { %s7340_s19 = scalar_lea.vmem %s8176_s8, %s5172_s18  ;;  %s7345_s2 = scalar_lea.vmem %s8177_s24, %s5173_s5 }
 0x11c   : > { %s7350_s7 = scalar_lea.vmem %s8178_s27, %s5172_s18 }
 0x11e   : > { %v5858_v0 = vld [vmem:[#allocation6 + $0x34] ss:$8 sps:$4 sm:$0xff]   ;;  %v5860_v1 = vld [vmem:[#allocation6 + $0x30] ss:$8 sps:$4 sm:$0xff]   ;;  %v6852_v2 = vmov 0   ;;  %vm1061_vm0 = vcmask 523264   ;;  %v1110_v10 = vlaneseq }
 0x11f   : > { %1097 = vmatprep.mubr.bf16.mxu0 %v6852_v2  ;;  %1073 = vmatprep.subr.bf16.mxu0 %v5858_v0  ;;  %v5861_v3 = vld [vmem:[#allocation6 + $0x24] ss:$8 sps:$4 sm:$0xff]   ;;  %v5863_v4 = vld [vmem:[#allocation6 + $0x20] ss:$8 sps:$4 sm:$0xff]   ;;  %v5864_v5 = vld [vmem:[#allocation6 + $0x14] ss:$8 sps:$4 sm:$0xff]  }
 0x120   : > { %1074 = vmatpush1.bf16.msra.mxu0 %v5860_v1  ;;  %v5866_v6 = vld [vmem:[#allocation6 + $0x10] ss:$8 sps:$4 sm:$0xff]   ;;  %v5867_v7 = vld [vmem:[#allocation6 + $0x4] ss:$8 sps:$4 sm:$0xff]   ;;  %v5869_v8 = vld [vmem:[#allocation6] ss:$8 sps:$4 sm:$0xff]  }
 0x121   : > { %1075 = vmatprep.subr.bf16.mxu0 %v5861_v3  ;;  %v5870_v9 = vld [vmem:[%s7297_s10] sm:$0xff]   ;;  %v1111_v11 = vshrl.u32 %v1110_v10, 7  ;;  %v1108_v13 = vld [vmem:[#allocation8] sm:$0x3]  ;;  %v1124_v18 = vld [vmem:[#allocation9] sm:$0xff] }
 0x122   : > { %v1125_v21 = vld [vmem:[#allocation9 + $0x8] sm:$0xff]  ;;  %v1126_v25 = vld [vmem:[#allocation9 + $0x10] sm:$0xff]  ;;  %v1127_v29 = vld [vmem:[#allocation9 + $0x18] sm:$0xff] }
 0x123   : > { %v1112_v12 = vsub.s32 0, %v1111_v11  ;;  %v1116_v14 = vsub.s32 1, %v1111_v11 }
 0x124   : > { %1076 = vmatpush1.bf16.msra.mxu0 %v5863_v4 }
 0x125   : > { %1077 = vmatprep.subr.bf16.mxu0 %v5864_v5  ;;  %v1113_v15 = vrot.slane %v1108_v13, %v1112_v12  ;;  %v1117_v16 = vrot.slane %v1108_v13, %v1116_v14 }
 0x128   : > { %1078 = vmatpush1.bf16.msra.mxu0 %v5866_v6 }
 0x129   : > { %1079 = vmatprep.subr.bf16.mxu0 %v5867_v7 }
 0x12c   : > { %1080 = vmatpush1.bf16.msra.mxu0 %v5869_v8 }
 0x12f   : > { %5185 = vmatmul.mubr.msk.bf16.vlgmr.msra.gmra.mxu0 %vm1061_vm0, %v5870_v9 }
 0x1ef   : > { %v1099_v17 = vpop.f32.mrf.mxu0 }
 0x1f0   : > { %v1120_v19 = vadd.f32 %v1113_v15, %v1099_v17 }
 0x1f1   : > { %v1101_v20 = vpop.f32.mrf.mxu0 }
 0x1f2   : > { %v1128_v22 = vadd.f32 %v1124_v18, %v1120_v19  ;;  %v1121_v23 = vadd.f32 %v1117_v16, %v1101_v20 }
 0x1f3   : > { %v1103_v24 = vpop.f32.mrf.mxu0 }
 0x1f4   : > { %1132 = vst [vmem:[#allocation2 + $0x10] sm:$0xff] %v1128_v22  ;;  %v1129_v26 = vadd.f32 %v1125_v21, %v1121_v23  ;;  %v1122_v27 = vadd.f32 %v1113_v15, %v1103_v24 }
 0x1f5   : > { %v1105_v28 = vpop.f32.mrf.mxu0 }
 0x1f6   : > { %1133 = vst [vmem:[#allocation2] sm:$0xff] %v1129_v26  ;;  %v1130_v30 = vadd.f32 %v1126_v25, %v1122_v27  ;;  %v1123_v31 = vadd.f32 %v1117_v16, %v1105_v28 }
 0x1f8   : > { %1134 = vst [vmem:[#allocation2 + $0x18] sm:$0xff] %v1130_v30  ;;  %v1131_v32 = vadd.f32 %v1127_v29, %v1123_v31 }
 0x1fa   : > { %1135 = vst [vmem:[#allocation2 + $0x8] sm:$0xff] %v1131_v32 }
 0x1fb PF: > { %v7356_v33 = vld [vmem:[#allocation2 + $0x10] sm:$0xff]  ;;  %v5871_v39 = vld [vmem:[%s7319_s14 + $0x154] ss:$24 sps:$4 sm:$0xff]   ;;  %v5873_v40 = vld [vmem:[%s7319_s14 + $0x150] ss:$24 sps:$4 sm:$0xff]   ;;  %vm6854_vm1 = vmmov 0  }
 0x1fc   : > { %v5874_v41 = vld [vmem:[%s7319_s14 + $0x15c] ss:$24 sps:$4 sm:$0xff]   ;;  %v5876_v42 = vld [vmem:[%s7319_s14 + $0x158] ss:$24 sps:$4 sm:$0xff]   ;;  %1788 = vmatprep.subr.bf16.mxu0 %v5871_v39  ;;  %v5880_v44 = vld [vmem:[%s7319_s14 + $0x12c] ss:$24 sps:$4 sm:$0xff]  }
 0x1fd   : > { %v7358_v34 = vld [vmem:[#allocation2] sm:$0xff]  ;;  %v5877_v43 = vld [vmem:[%s7319_s14 + $0x124] ss:$24 sps:$4 sm:$0xff]   ;;  %1831 = vmatprep.subr.bf16.mxu1 %v5874_v41  ;;  %1789 = vmatpush1.bf16.msra.mxu0 %v5873_v40  ;;  %v5879_v45 = vld [vmem:[%s7319_s14 + $0x120] ss:$24 sps:$4 sm:$0xff]   ;;  %vm1966_vm2 = vcmask 130048  }
 0x1fe   : > { %v1147_v36 = vadd.f32 %v7358_v34, %v7356_v33  ;;  %1832 = vmatpush1.bf16.msra.mxu1 %v5876_v42  ;;  %v5882_v46 = vld [vmem:[%s7319_s14 + $0x128] ss:$24 sps:$4 sm:$0xff]   ;;  %1790 = vmatprep.subr.bf16.mxu0 %v5877_v43  ;;  %v5883_v47 = vld [vmem:[%s7319_s14 + $0xf4] ss:$24 sps:$4 sm:$0xff]   ;;  %v5888_v50 = vld [vmem:[%s7319_s14 + $0xf8] ss:$24 sps:$4 sm:$0xff]  }
 0x1ff   : > { %v7360_v35 = vld [vmem:[#allocation2 + $0x18] sm:$0xff]  ;;  %1833 = vmatprep.subr.bf16.mxu1 %v5880_v44  ;;  %v5886_v48 = vld [vmem:[%s7319_s14 + $0xfc] ss:$24 sps:$4 sm:$0xff]   ;;  %v5900_v58 = vld [vmem:[%s7319_s14 + $0x98] ss:$24 sps:$4 sm:$0xff]   ;;  %s8179_s10 = scalar_lea.vmem [#allocation16], %s7312_s26 }
 0x200   : > { %1148 = vadd.xlane.f32.xlu0 %v1147_v36  ;;  %v5885_v49 = vld [vmem:[%s7319_s14 + $0xf0] ss:$24 sps:$4 sm:$0xff]   ;;  %v5889_v51 = vld [vmem:[%s7319_s14 + $0xc4] ss:$24 sps:$4 sm:$0xff]   ;;  %v5891_v53 = vld [vmem:[%s7319_s14 + $0xc0] ss:$24 sps:$4 sm:$0xff]  }
 0x201   : > { %v7364_v37 = vld [vmem:[#allocation2 + $0x8] sm:$0xff]  ;;  %1791 = vmatpush1.bf16.msra.mxu0 %v5879_v45  ;;  %v5892_v52 = vld [vmem:[%s7319_s14 + $0xcc] ss:$24 sps:$4 sm:$0xff]   ;;  %v5894_v54 = vld [vmem:[%s7319_s14 + $0xc8] ss:$24 sps:$4 sm:$0xff]   ;;  %s8180_s26 = sld [smem:[#allocation30_spill]] }
 0x202   : > { %v1150_v38 = vadd.f32 %v7364_v37, %v7360_v35  ;;  %1834 = vmatpush1.bf16.msra.mxu1 %v5882_v46  ;;  %1792 = vmatprep.subr.bf16.mxu0 %v5883_v47  ;;  %v5895_v55 = vld [vmem:[%s7319_s14 + $0x94] ss:$24 sps:$4 sm:$0xff]   ;;  %v5897_v57 = vld [vmem:[%s7319_s14 + $0x90] ss:$24 sps:$4 sm:$0xff]   ;;  %v5901_v59 = vld [vmem:[%s7319_s14 + $0x64] ss:$24 sps:$4 sm:$0xff]  }
 0x203   : > { %1835 = vmatprep.subr.bf16.mxu1 %v5886_v48  ;;  %v5898_v56 = vld [vmem:[%s7319_s14 + $0x9c] ss:$24 sps:$4 sm:$0xff]   ;;  %v5904_v60 = vld [vmem:[%s7319_s14 + $0x6c] ss:$24 sps:$4 sm:$0xff]   ;;  %v5903_v61 = vld [vmem:[%s7319_s14 + $0x60] ss:$24 sps:$4 sm:$0xff]  }
 0x204   : > { %1151 = vadd.xlane.f32.xlu0 %v1150_v38  ;;  %v5906_v62 = vld [vmem:[%s7319_s14 + $0x68] ss:$24 sps:$4 sm:$0xff]   ;;  %v5907_v63 = vld [vmem:[%s7319_s14 + $0x34] ss:$24 sps:$4 sm:$0xff]   ;;  %v5912_v2 = vld [vmem:[%s7319_s14 + $0x38] ss:$24 sps:$4 sm:$0xff]  }
 0x205   : > { %1793 = vmatpush1.bf16.msra.mxu0 %v5885_v49  ;;  %v5910_v0 = vld [vmem:[%s7319_s14 + $0x3c] ss:$24 sps:$4 sm:$0xff]   ;;  %v5909_v1 = vld [vmem:[%s7319_s14 + $0x30] ss:$24 sps:$4 sm:$0xff]   ;;  %v5916_v4 = vld [vmem:[%s7319_s14 + $0xc] ss:$24 sps:$4 sm:$0xff]  }
 0x206   : > { %1836 = vmatpush1.bf16.msra.mxu1 %v5888_v50  ;;  %1794 = vmatprep.subr.bf16.mxu0 %v5889_v51  ;;  %v5913_v3 = vld [vmem:[%s7319_s14 + $0x4] ss:$24 sps:$4 sm:$0xff]   ;;  %v5915_v5 = vld [vmem:[%s7319_s14] ss:$24 sps:$4 sm:$0xff]   ;;  %v5919_v7 = vld [vmem:[%s7319_s14 + $0x2d4] ss:$24 sps:$4 sm:$0xff]  }
 0x207   : > { %1837 = vmatprep.subr.bf16.mxu1 %v5892_v52  ;;  %v5918_v6 = vld [vmem:[%s7319_s14 + $0x8] ss:$24 sps:$4 sm:$0xff]   ;;  %v5922_v8 = vld [vmem:[%s7319_s14 + $0x2dc] ss:$24 sps:$4 sm:$0xff]   ;;  %v5924_v24 = vld [vmem:[%s7319_s14 + $0x2d8] ss:$24 sps:$4 sm:$0xff]  }
 0x208   : > { %v5921_v9 = vld [vmem:[%s7319_s14 + $0x2d0] ss:$24 sps:$4 sm:$0xff]   ;;  %v5925_v25 = vld [vmem:[%s7319_s14 + $0x2a4] ss:$24 sps:$4 sm:$0xff]   ;;  %v5927_v26 = vld [vmem:[%s7319_s14 + $0x2a0] ss:$24 sps:$4 sm:$0xff]  }
 0x209   : > { %1795 = vmatpush1.bf16.msra.mxu0 %v5891_v53  ;;  %v5928_v27 = vld [vmem:[%s7319_s14 + $0x2ac] ss:$24 sps:$4 sm:$0xff]   ;;  %v5930_v28 = vld [vmem:[%s7319_s14 + $0x2a8] ss:$24 sps:$4 sm:$0xff]   ;;  %v5934_v31 = vld [vmem:[%s7319_s14 + $0x27c] ss:$24 sps:$4 sm:$0xff]  }
 0x20a   : > { %1838 = vmatpush1.bf16.msra.mxu1 %v5894_v54  ;;  %1796 = vmatprep.subr.bf16.mxu0 %v5895_v55  ;;  %v5931_v29 = vld [vmem:[%s7319_s14 + $0x274] ss:$24 sps:$4 sm:$0xff]   ;;  %v5933_v30 = vld [vmem:[%s7319_s14 + $0x270] ss:$24 sps:$4 sm:$0xff]   ;;  %v5949_v41 = vld [vmem:[%s7319_s14 + $0x1e4] ss:$24 sps:$4 sm:$0xff]  }
 0x20b   : > { %1839 = vmatprep.subr.bf16.mxu1 %v5898_v56  ;;  %v5936_v32 = vld [vmem:[%s7319_s14 + $0x278] ss:$24 sps:$4 sm:$0xff]   ;;  %v5942_v36 = vld [vmem:[%s7319_s14 + $0x248] ss:$24 sps:$4 sm:$0xff]   ;;  %v5946_v38 = vld [vmem:[%s7319_s14 + $0x21c] ss:$24 sps:$4 sm:$0xff]  }
 0x20c   : > { %v5945_v39 = vld [vmem:[%s7319_s14 + $0x210] ss:$24 sps:$4 sm:$0xff]   ;;  %v5952_v42 = vld [vmem:[%s7319_s14 + $0x1ec] ss:$24 sps:$4 sm:$0xff]   ;;  %v5951_v43 = vld [vmem:[%s7319_s14 + $0x1e0] ss:$24 sps:$4 sm:$0xff]  }
 0x20d   : > { %1797 = vmatpush1.bf16.msra.mxu0 %v5897_v57  ;;  %v5948_v40 = vld [vmem:[%s7319_s14 + $0x218] ss:$24 sps:$4 sm:$0xff]   ;;  %v5954_v44 = vld [vmem:[%s7319_s14 + $0x1e8] ss:$24 sps:$4 sm:$0xff]   ;;  %v5955_v45 = vld [vmem:[%s7319_s14 + $0x1b4] ss:$24 sps:$4 sm:$0xff]  }
 0x20e   : > { %1840 = vmatpush1.bf16.msra.mxu1 %v5900_v58  ;;  %1798 = vmatprep.subr.bf16.mxu0 %v5901_v59  ;;  %v5958_v46 = vld [vmem:[%s7319_s14 + $0x1bc] ss:$24 sps:$4 sm:$0xff]   ;;  %v5957_v47 = vld [vmem:[%s7319_s14 + $0x1b0] ss:$24 sps:$4 sm:$0xff]   ;;  %v5964_v50 = vld [vmem:[%s7319_s14 + $0x18c] ss:$24 sps:$4 sm:$0xff]  }
 0x20f   : > { %1841 = vmatprep.subr.bf16.mxu1 %v5904_v60  ;;  %v5960_v48 = vld [vmem:[%s7319_s14 + $0x1b8] ss:$24 sps:$4 sm:$0xff]   ;;  %v5961_v49 = vld [vmem:[%s7319_s14 + $0x184] ss:$24 sps:$4 sm:$0xff]   ;;  %v5966_v52 = vld [vmem:[%s7319_s14 + $0x188] ss:$24 sps:$4 sm:$0xff]   ;;  %v1181_v60 = vlaneseq }
 0x210   : > { %v5963_v51 = vld [vmem:[%s7319_s14 + $0x180] ss:$24 sps:$4 sm:$0xff]   ;;  %v5969_v53 = vld [vmem:[%s7319_s14 + $0x164] ss:$24 sps:$4 sm:$0xff]   ;;  %p5572_p7 = scmp.ne.s32.totalorder %s8180_s26, 1 }
 0x211   : > { %1799 = vmatpush1.bf16.msra.mxu0 %v5903_v61  ;;  %v7453_v61 = vshrl.u32 %v1181_v60, 7 }
 0x212   : > { %1842 = vmatpush1.bf16.msra.mxu1 %v5906_v62  ;;  %1800 = vmatprep.subr.bf16.mxu0 %v5907_v63 }
 0x213   : > { %1843 = vmatprep.subr.bf16.mxu1 %v5910_v0  ;;  %v7456_v62 = vsub.s32 1, %v7453_v61  ;;  %v7459_v63 = vsub.s32 0, %v7453_v61  ;;  %v1140_v0 = vld [vmem:[%s7340_s19] sm:$0x3] }
 0x215   : > { %1801 = vmatpush1.bf16.msra.mxu0 %v5909_v1 }
 0x216   : > { %1844 = vmatpush1.bf16.msra.mxu1 %v5912_v2  ;;  %1802 = vmatprep.subr.bf16.mxu0 %v5913_v3  ;;  %v1141_v2 = vld [vmem:[%s817_s4] sm:$0x3] }
 0x217   : > { %1845 = vmatprep.subr.bf16.mxu1 %v5916_v4  ;;  %v1188_v4 = vrot.slane %v1140_v0, %v7456_v62 }
 0x219   : > { %1803 = vmatpush1.bf16.msra.mxu0 %v5915_v5 }
 0x21a   : > { %1846 = vmatpush1.bf16.msra.mxu1 %v5918_v6  ;;  %1804 = vmatprep.subr.bf16.mxu0 %v5919_v7  ;;  %v1184_v6 = vrot.slane %v1140_v0, %v7459_v63 }
 0x21b   : > { %1847 = vmatprep.subr.bf16.mxu1 %v5922_v8  ;;  %v1203_v8 = vrot.slane %v1141_v2, %v7456_v62 }
 0x21d   : > { %1805 = vmatpush2.bf16.msra.mxu0 %v5921_v9  ;;  %v1199_v9 = vrot.slane %v1141_v2, %v7459_v63 }
 0x21e   : > { %1848 = vmatpush2.bf16.msra.mxu1 %v5924_v24  ;;  %1806 = vmatprep.subr.bf16.mxu0 %v5925_v25  ;;  %v5975_v25 = vld [vmem:[%s7319_s14 + $0x104] ss:$24 sps:$4 sm:$0xff]  }
 0x21f   : > { %1849 = vmatprep.subr.bf16.mxu1 %v5928_v27  ;;  %v5978_v27 = vld [vmem:[%s7319_s14 + $0xd4] ss:$24 sps:$4 sm:$0xff]  }
 0x221   : > { %1807 = vmatpush2.bf16.msra.mxu0 %v5927_v26  ;;  %v5973_v26 = vld [vmem:[%s7319_s14 + $0x100] ss:$24 sps:$4 sm:$0xff]  }
 0x222   : > { %1850 = vmatpush2.bf16.msra.mxu1 %v5930_v28  ;;  %1808 = vmatprep.subr.bf16.mxu0 %v5931_v29  ;;  %v5976_v28 = vld [vmem:[%s7319_s14 + $0xd0] ss:$24 sps:$4 sm:$0xff]   ;;  %v5981_v29 = vld [vmem:[%s7319_s14 + $0xa4] ss:$24 sps:$4 sm:$0xff]  }
 0x223   : > { %1851 = vmatprep.subr.bf16.mxu1 %v5934_v31  ;;  %v5984_v31 = vld [vmem:[%s7319_s14 + $0x74] ss:$24 sps:$4 sm:$0xff]  }
 0x225   : > { %1809 = vmatpush2.bf16.msra.mxu0 %v5933_v30  ;;  %v5979_v30 = vld [vmem:[%s7319_s14 + $0xa0] ss:$24 sps:$4 sm:$0xff]  }
 0x226   : > { %1852 = vmatpush2.bf16.msra.mxu1 %v5936_v32  ;;  %v5982_v32 = vld [vmem:[%s7319_s14 + $0x70] ss:$24 sps:$4 sm:$0xff]  }
 0x289   : > { %v1149_v10 = vpop.xlane.xlu0 %1148 }
 0x28a   : > { %v1154_v11 = vmul.f32 0.00390625, %v1149_v10 }
 0x28c   : > { %v7404_v12 = vsub.f32 %v7356_v33, %v1154_v11  ;;  %v7407_v13 = vsub.f32 %v7358_v34, %v1154_v11  ;;  %v5937_v33 = vld [vmem:[%s7319_s14 + $0x244] ss:$24 sps:$4 sm:$0xff]   ;;  %v5939_v34 = vld [vmem:[%s7319_s14 + $0x240] ss:$24 sps:$4 sm:$0xff]  }
 0x28d   : > { %v1152_v14 = vpop.xlane.xlu0 %1151  ;;  %1810 = vmatprep.subr.bf16.mxu0 %v5937_v33  ;;  %v5987_v33 = vld [vmem:[%s7319_s14 + $0x44] ss:$24 sps:$4 sm:$0xff]  }
 0x28e   : > { %v1155_v15 = vmul.f32 0.00390625, %v1152_v14  ;;  %v1160_v16 = vmul.f32 %v7404_v12, %v7404_v12  ;;  %v1161_v17 = vmul.f32 %v7407_v13, %v7407_v13  ;;  %1811 = vmatpush2.bf16.msra.mxu0 %v5939_v34  ;;  %v5985_v34 = vld [vmem:[%s7319_s14 + $0x40] ss:$24 sps:$4 sm:$0xff]  }
 0x290   : > { %v7414_v18 = vsub.f32 %v7360_v35, %v1155_v15  ;;  %v7417_v19 = vsub.f32 %v7364_v37, %v1155_v15  ;;  %v1164_v20 = vadd.f32 %v1161_v17, %v1160_v16  ;;  %v5940_v35 = vld [vmem:[%s7319_s14 + $0x24c] ss:$24 sps:$4 sm:$0xff]  }
 0x291   : > { %v5943_v37 = vld [vmem:[%s7319_s14 + $0x214] ss:$24 sps:$4 sm:$0xff]   ;;  %1853 = vmatprep.subr.bf16.mxu1 %v5940_v35 }
 0x292   : > { %1165 = vadd.xlane.f32.xlu1 %v1164_v20  ;;  %v1162_v21 = vmul.f32 %v7414_v18, %v7414_v18  ;;  %v1163_v22 = vmul.f32 %v7417_v19, %v7417_v19  ;;  %1854 = vmatpush2.bf16.msra.mxu1 %v5942_v36  ;;  %v5990_v35 = vld [vmem:[%s7319_s14 + $0x14] ss:$24 sps:$4 sm:$0xff]   ;;  %v5988_v36 = vld [vmem:[%s7319_s14 + $0x10] ss:$24 sps:$4 sm:$0xff]  }
 0x293   : > { %1812 = vmatprep.subr.bf16.mxu0 %v5943_v37  ;;  %1855 = vmatprep.subr.bf16.mxu1 %v5946_v38  ;;  %v5993_v37 = vld [vmem:[%s7319_s14 + $0x2e4] ss:$24 sps:$4 sm:$0xff]   ;;  %v5991_v38 = vld [vmem:[%s7319_s14 + $0x2e0] ss:$24 sps:$4 sm:$0xff]  }
 0x294   : > { %v1167_v23 = vadd.f32 %v1163_v22, %v1162_v21  ;;  %1813 = vmatpush2.bf16.msra.mxu0 %v5945_v39  ;;  %v5996_v39 = vld [vmem:[%s7319_s14 + $0x2b4] ss:$24 sps:$4 sm:$0xff]  }
 0x295   : > { %1814 = vmatprep.subr.bf16.mxu0 %v5949_v41  ;;  %v5999_v41 = vld [vmem:[%s7319_s14 + $0x284] ss:$24 sps:$4 sm:$0xff]  }
 0x296   : > { %1168 = vadd.xlane.f32.xlu1 %v1167_v23  ;;  %1856 = vmatpush2.bf16.msra.mxu1 %v5948_v40  ;;  %v5967_v23 = vld [vmem:[%s7319_s14 + $0x160] ss:$24 sps:$4 sm:$0xff]   ;;  %v5994_v40 = vld [vmem:[%s7319_s14 + $0x2b0] ss:$24 sps:$4 sm:$0xff]  }
 0x297   : > { %1857 = vmatprep.subr.bf16.mxu1 %v5952_v42  ;;  %v5997_v42 = vld [vmem:[%s7319_s14 + $0x280] ss:$24 sps:$4 sm:$0xff]  }
 0x298   : > { %1815 = vmatpush2.bf16.msra.mxu0 %v5951_v43  ;;  %v6002_v43 = vld [vmem:[%s7319_s14 + $0x254] ss:$24 sps:$4 sm:$0xff]  }
 0x299   : > { %1816 = vmatprep.subr.bf16.mxu0 %v5955_v45  ;;  %v6005_v45 = vld [vmem:[%s7319_s14 + $0x224] ss:$24 sps:$4 sm:$0xff]  }
 0x29a   : > { %1858 = vmatpush2.bf16.msra.mxu1 %v5954_v44  ;;  %v6000_v44 = vld [vmem:[%s7319_s14 + $0x250] ss:$24 sps:$4 sm:$0xff]  }
 0x29b   : > { %1859 = vmatprep.subr.bf16.mxu1 %v5958_v46  ;;  %v6003_v46 = vld [vmem:[%s7319_s14 + $0x220] ss:$24 sps:$4 sm:$0xff]  }
 0x29c   : > { %1817 = vmatpush2.bf16.msra.mxu0 %v5957_v47  ;;  %v6008_v47 = vld [vmem:[%s7319_s14 + $0x1f4] ss:$24 sps:$4 sm:$0xff]  }
 0x29d   : > { %1818 = vmatprep.subr.bf16.mxu0 %v5961_v49  ;;  %v6011_v49 = vld [vmem:[%s7319_s14 + $0x1c4] ss:$24 sps:$4 sm:$0xff]  }
 0x29e   : > { %1860 = vmatpush2.bf16.msra.mxu1 %v5960_v48  ;;  %v6006_v48 = vld [vmem:[%s7319_s14 + $0x1f0] ss:$24 sps:$4 sm:$0xff]  }
 0x29f   : > { %1861 = vmatprep.subr.bf16.mxu1 %v5964_v50  ;;  %v6009_v50 = vld [vmem:[%s7319_s14 + $0x1c0] ss:$24 sps:$4 sm:$0xff]  }
 0x2a0   : > { %1819 = vmatpush2.bf16.msra.mxu0 %v5963_v51  ;;  %v6014_v51 = vld [vmem:[%s7319_s14 + $0x194] ss:$24 sps:$4 sm:$0xff]  }
 0x2a1   : > { %1874 = vmatprep.subr.bf16.mxu0 %v5969_v53  ;;  %v6853_v53 = vmov 0.0  }
 0x2a2   : > { %1862 = vmatpush2.bf16.msra.mxu1 %v5966_v52  ;;  %v6012_v52 = vld [vmem:[%s7319_s14 + $0x190] ss:$24 sps:$4 sm:$0xff]  }
 0x2a3   : > { %5645 = vmatprep.subr.bf16.mxu1 %v6853_v53 }
 0x31b   : > { %v1166_v54 = vpop.xlane.xlu1 %1165 }
 0x31c   : > { %v1170_v55 = vmul.f32 0.00390625, %v1166_v54 }
 0x31e   : > { %v1172_v56 = vadd.f32 1e-05, %v1170_v55 }
 0x31f   : > { %v1169_v57 = vpop.xlane.xlu1 %1168 }
 0x320   : > { %6255 = vrsqrt.f32 %v1172_v56  ;;  %v1171_v58 = vmul.f32 0.00390625, %v1169_v57 }
 0x322   : > { %v1173_v59 = vadd.f32 1e-05, %v1171_v58 }
 0x324   : > { %6257 = vrsqrt.f32 %v1173_v59 }
 0x32d   : > { %v6256_v1 = vpop.eup %6255 }
 0x32e   : > { %v1177_v3 = vmul.f32 %v6256_v1, %v7407_v13  ;;  %v1176_v5 = vmul.f32 %v6256_v1, %v7404_v12 }
 0x330   : > { %v1192_v11 = vmul.f32 %v1188_v4, %v1177_v3  ;;  %v1191_v15 = vmul.f32 %v1184_v6, %v1176_v5 }
 0x331   : > { %v6258_v7 = vpop.eup %6257 }
 0x332   : > { %v1179_v10 = vmul.f32 %v6258_v7, %v7417_v19  ;;  %v1178_v14 = vmul.f32 %v6258_v7, %v7414_v18  ;;  %v1207_v17 = vadd.f32 %v1203_v8, %v1192_v11  ;;  %v1206_v20 = vadd.f32 %v1199_v9, %v1191_v15  ;;  %v5972_v19 = vld [vmem:[%s7319_s14 + $0x134] ss:$24 sps:$4 sm:$0xff]   ;;  %v5970_v18 = vld [vmem:[%s7319_s14 + $0x130] ss:$24 sps:$4 sm:$0xff]  }
 0x334   : > { %v1194_v13 = vmul.f32 %v1188_v4, %v1179_v10  ;;  %v1193_v16 = vmul.f32 %v1184_v6, %v1178_v14 }
 0x336   : > { %v1209_v12 = vadd.f32 %v1203_v8, %v1194_v13  ;;  %v1208_v21 = vadd.f32 %v1199_v9, %v1193_v16 }
 0x338   : > { %v1211_v22 = vpack.c.bf16 %v1209_v12, %v1207_v17  ;;  %v7473_v24 = vpack.c.bf16 %v1208_v21, %v1206_v20 }
 0x33a   : > { %1820 = vmatprep.mubr.bf16.mxu0 %v1211_v22  ;;  %1863 = vmatprep.mubr.bf16.mxu1 %v1211_v22 }
 0x33b   : > { %1821 = vmatmul.mubr.bf16.vlgmr.msra.gmra.mxu0 %v7473_v24  ;;  %1864 = vmatmul.mubr.bf16.vlgmr.msra.gmra.mxu1 %v7473_v24 }
 0x33c   : > { %1875 = vmatpush1.bf16.msra.mxu0 %v5967_v23  ;;  %1906 = vmatprep.mubr.bf16.mxu0 %v1211_v22 }
 0x33d   : > { %1876 = vmatprep.subr.bf16.mxu0 %v5972_v19  ;;  %5647 = vmatprep.mubr.msk.bf16.mxu1 %vm6854_vm1, %v6853_v53 }
 0x340   : > { %1877 = vmatpush1.bf16.msra.mxu0 %v5970_v18 }
 0x341   : > { %1878 = vmatprep.subr.bf16.mxu0 %v5975_v25 }
 0x344   : > { %1879 = vmatpush1.bf16.msra.mxu0 %v5973_v26 }
 0x345   : > { %1880 = vmatprep.subr.bf16.mxu0 %v5978_v27 }
 0x348   : > { %1881 = vmatpush1.bf16.msra.mxu0 %v5976_v28 }
 0x349   : > { %1882 = vmatprep.subr.bf16.mxu0 %v5981_v29 }
 0x34c   : > { %1883 = vmatpush1.bf16.msra.mxu0 %v5979_v30 }
 0x34d   : > { %1884 = vmatprep.subr.bf16.mxu0 %v5984_v31 }
 0x350   : > { %1885 = vmatpush1.bf16.msra.mxu0 %v5982_v32 }
 0x351   : > { %1886 = vmatprep.subr.bf16.mxu0 %v5987_v33 }
 0x354   : > { %1887 = vmatpush1.bf16.msra.mxu0 %v5985_v34 }
 0x355   : > { %1888 = vmatprep.subr.bf16.mxu0 %v5990_v35 }
 0x358   : > { %1889 = vmatpush1.bf16.msra.mxu0 %v5988_v36 }
 0x359   : > { %1890 = vmatprep.subr.bf16.mxu0 %v5993_v37 }
 0x35c   : > { %1891 = vmatpush2.bf16.msra.mxu0 %v5991_v38 }
 0x35d   : > { %1892 = vmatprep.subr.bf16.mxu0 %v5996_v39 }
 0x360   : > { %1893 = vmatpush2.bf16.msra.mxu0 %v5994_v40 }
 0x361   : > { %1894 = vmatprep.subr.bf16.mxu0 %v5999_v41 }
 0x364   : > { %1895 = vmatpush2.bf16.msra.mxu0 %v5997_v42 }
 0x365   : > { %1896 = vmatprep.subr.bf16.mxu0 %v6002_v43 }
 0x368   : > { %1897 = vmatpush2.bf16.msra.mxu0 %v6000_v44 }
 0x369   : > { %1898 = vmatprep.subr.bf16.mxu0 %v6005_v45 }
 0x36c   : > { %1899 = vmatpush2.bf16.msra.mxu0 %v6003_v46 }
 0x36d   : > { %1900 = vmatprep.subr.bf16.mxu0 %v6008_v47  ;;  %v6017_v47 = vld [vmem:[%s7321_s1 + $0x74] ss:$8 sps:$4 sm:$0xff]  }
 0x370   : > { %1901 = vmatpush2.bf16.msra.mxu0 %v6006_v48 }
 0x371   : > { %1902 = vmatprep.subr.bf16.mxu0 %v6011_v49 }
 0x374   : > { %1903 = vmatpush2.bf16.msra.mxu0 %v6009_v50 }
 0x375   : > { %1904 = vmatprep.subr.bf16.mxu0 %v6014_v51 }
 0x378   : > { %1905 = vmatpush2.bf16.msra.mxu0 %v6012_v52 }
 0x379   : > { %5633 = vmatprep.subr.bf16.mxu0 %v6853_v53 }
 0x37b   : > { %1907 = vmatmul.mubr.bf16.vlgmr.msra.gmra.mxu0 %v7473_v24 }
 0x37c   : > { %5635 = vmatprep.mubr.msk.bf16.mxu0 %vm6854_vm1, %v6853_v53 }
 0x3fb   : > { %v1822_v54 = vpop.f32.mrf.mxu0  ;;  %v1865_v55 = vpop.f32.mrf.mxu1 }
 0x3fd   : > { %v1867_v56 = vpop.f32.mrf.mxu1  ;;  %v1824_v57 = vpop.f32.mrf.mxu0 }
 0x3ff   : > { %v1869_v58 = vpop.f32.mrf.mxu1  ;;  %v1826_v0 = vpop.f32.mrf.mxu0 }
 0x400   : > { %v1919_v59 = vpack.c.bf16 %v1869_v58, %v1865_v55  ;;  %v1917_v3 = vpack.c.bf16 %v1826_v0, %v1822_v54 }
 0x401   : > { %v1871_v60 = vpop.f32.mrf.mxu1  ;;  %v1828_v2 = vpop.f32.mrf.mxu0 }
 0x402   : > { %v1920_v1 = vpack.c.bf16 %v1871_v60, %v1867_v56  ;;  %5634 = vmatpush3.bf16.xpose.msra.mxu0 %v1919_v59  ;;  %v1918_v4 = vpack.c.bf16 %v1828_v2, %v1824_v57  ;;  %v6015_v57 = vld [vmem:[%s7321_s1 + $0x70] ss:$8 sps:$4 sm:$0xff]   ;;  %v6020_v59 = vld [vmem:[%s7321_s1 + $0x64] ss:$8 sps:$4 sm:$0xff]   ;;  %v6018_v2 = vld [vmem:[%s7321_s1 + $0x60] ss:$8 sps:$4 sm:$0xff]  }
 0x403   : > { %5639 = vmatprep.subr.bf16.mxu0 %v6853_v53 }
 0x404   : > { %5646 = vmatpush3.bf16.xpose.msra.mxu1 %v1920_v1 }
 0x405   : > { %5651 = vmatprep.subr.bf16.mxu1 %v6853_v53 }
 0x409   : > { %5636 = vmatmul.mubr.bf16.vlgmr.msra.gmra.mxu0 %v1917_v3 }
 0x40a   : > { %5641 = vmatprep.mubr.msk.bf16.mxu0 %vm6854_vm1, %v6853_v53 }
 0x40b   : > { %5648 = vmatmul.mubr.bf16.vlgmr.msra.gmra.mxu1 %v1918_v4  ;;  %v6023_v4 = vld [vmem:[%s7321_s1 + $0x54] ss:$8 sps:$4 sm:$0xff]  }
 0x40c   : > { %5653 = vmatprep.mubr.msk.bf16.mxu1 %vm6854_vm1, %v6853_v53 }
 0x43b   : > { %v1908_v5 = vpop.f32.mrf.mxu0 }
 0x43d   : > { %v1910_v6 = vpop.f32.mrf.mxu0 }
 0x43f   : > { %v1912_v7 = vpop.f32.mrf.mxu0 }
 0x440   : > { %v1921_v8 = vpack.c.bf16 %v1912_v7, %v1908_v5  ;;  %v6021_v5 = vld [vmem:[%s7321_s1 + $0x50] ss:$8 sps:$4 sm:$0xff]   ;;  %v6024_v7 = vld [vmem:[%s7321_s1 + $0x40] ss:$8 sps:$4 sm:$0xff]  }
 0x441   : > { %v1914_v9 = vpop.f32.mrf.mxu0 }
 0x442   : > { %v1922_v10 = vpack.c.bf16 %v1914_v9, %v1910_v6  ;;  %5640 = vmatpush3.bf16.msra.mxu0 %v1921_v8  ;;  %v6026_v6 = vld [vmem:[%s7321_s1 + $0x44] ss:$8 sps:$4 sm:$0xff]   ;;  %v6029_v8 = vld [vmem:[%s7321_s1 + $0x34] ss:$8 sps:$4 sm:$0xff]   ;;  %v6027_v9 = vld [vmem:[%s7321_s1 + $0x30] ss:$8 sps:$4 sm:$0xff]  }
 0x444   : > { %5652 = vmatpush3.bf16.msra.mxu1 %v1922_v10  ;;  %v6032_v10 = vld [vmem:[%s7321_s1 + $0x24] ss:$8 sps:$4 sm:$0xff]  }
 0x445   : > { %2349 = vmatprep.subr.bf16.mxu1 %v6017_v47 }
 0x4c9   : > { %v1957_v11 = vpop.f32.mrf.mxu0 }
 0x4ca   : > { %v1964_v12 = vmul.f32 0.088388346, %v1957_v11  ;;  %v6030_v11 = vld [vmem:[%s7321_s1 + $0x20] ss:$8 sps:$4 sm:$0xff]  }
 0x4cb   : > { %v5637_v14 = vpop.f32.mrf.mxu0  ;;  %v2068_v15 = vpop.f32.mrf.mxu1 }
 0x4cc   : > { %v2075_v13 = vmul.f32 0.088388346, %v2068_v15  ;;  %v1967_v25 = vsel %vm1966_vm2, %v1964_v12, -inf  ;;  %v6035_v14 = vld [vmem:[%s7321_s1 + $0x14] ss:$8 sps:$4 sm:$0xff]  }
 0x4cd   : > { %v1960_v16 = vpop.f32.mrf.mxu0  ;;  %v5649_v17 = vpop.f32.mrf.mxu1  ;;  %v6033_v15 = vld [vmem:[%s7321_s1 + $0x10] ss:$8 sps:$4 sm:$0xff]  }
 0x4ce   : > { %v2077_v20 = vsel %vm1966_vm2, %v2075_v13, -inf  ;;  %v1965_v19 = vmul.f32 0.088388346, %v1960_v16  ;;  %v6036_v16 = vld [vmem:[%s7321_s1] ss:$8 sps:$4 sm:$0xff]  }
 0x4cf   : > { %2078 = vmax.xlane.f32.xlu0 %v2077_v20  ;;  %v5638_v21 = vpop.f32.mrf.mxu0  ;;  %v2071_v22 = vpop.f32.mrf.mxu1  ;;  %v6041_v17 = vld [vmem:[%s7321_s1 + $0xf4] ss:$8 sps:$4 sm:$0xff]   ;;  %v6044_v20 = vld [vmem:[%s7321_s1 + $0xe4] ss:$8 sps:$4 sm:$0xff]  }
 0x4d0   : > { %v2076_v23 = vmul.f32 0.088388346, %v2071_v22  ;;  %v1970_v26 = vsel %vm1966_vm2, %v1965_v19, -inf  ;;  %v6042_v21 = vld [vmem:[%s7321_s1 + $0xe0] ss:$8 sps:$4 sm:$0xff]  }
 0x4d1   : > { %v5650_v24 = vpop.f32.mrf.mxu1  ;;  %v6047_v22 = vld [vmem:[%s7321_s1 + $0xd4] ss:$8 sps:$4 sm:$0xff]  }
 0x4d2   : > { %v2080_v18 = vsel %vm1966_vm2, %v2076_v23, -inf  ;;  %v6050_v24 = vld [vmem:[%s7321_s1 + $0xc4] ss:$8 sps:$4 sm:$0xff]  }
 0x4d3   : > { %2081 = vmax.xlane.f32.xlu1 %v2080_v18  ;;  %1968 = vmax.xlane.f32.xlu0 %v1967_v25  ;;  %v6053_v18 = vld [vmem:[%s7321_s1 + $0xb4] ss:$8 sps:$4 sm:$0xff]   ;;  %v6051_v25 = vld [vmem:[%s7321_s1 + $0xb0] ss:$8 sps:$4 sm:$0xff]  }
 0x4d7   : > { %1971 = vmax.xlane.f32.xlu1 %v1970_v26  ;;  %v6056_v26 = vld [vmem:[%s7321_s1 + $0xa4] ss:$8 sps:$4 sm:$0xff]  }
 0x558   : > { %v2079_v27 = vpop.xlane.xlu0 %2078 }
 0x559   : > { %v2083_v28 = vsub.f32 %v2075_v13, %v2079_v27  ;;  %v6038_v13 = vld [vmem:[%s7321_s1 + $0x4] ss:$8 sps:$4 sm:$0xff]   ;;  %v6054_v27 = vld [vmem:[%s7321_s1 + $0xa0] ss:$8 sps:$4 sm:$0xff]  }
 0x55b   : > { %v2085_v29 = vmul.f32 1.442695, %v2083_v28  ;;  %v6057_v28 = vld [vmem:[%s7321_s1 + $0x90] ss:$8 sps:$4 sm:$0xff]  }
 0x55c   : > { %v2082_v30 = vpop.xlane.xlu1 %2081  ;;  %v1969_v31 = vpop.xlane.xlu0 %1968 }
 0x55d   : > { %6259 = vpow2.f32 %v2085_v29  ;;  %v2084_v32 = vsub.f32 %v2076_v23, %v2082_v30  ;;  %v1973_v33 = vsub.f32 %v1964_v12, %v1969_v31  ;;  %v6039_v12 = vld [vmem:[%s7321_s1 + $0xf0] ss:$8 sps:$4 sm:$0xff]   ;;  %v6059_v29 = vld [vmem:[%s7321_s1 + $0x94] ss:$8 sps:$4 sm:$0xff]   ;;  %v6060_v30 = vld [vmem:[%s7321_s1 + $0x80] ss:$8 sps:$4 sm:$0xff]  }
 0x55e   : > { %v6045_v23 = vld [vmem:[%s7321_s1 + $0xd0] ss:$8 sps:$4 sm:$0xff]   ;;  %v6062_v31 = vld [vmem:[%s7321_s1 + $0x84] ss:$8 sps:$4 sm:$0xff]  }
 0x55f   : > { %v2087_v34 = vmul.f32 1.442695, %v2084_v32  ;;  %v1975_v35 = vmul.f32 1.442695, %v1973_v33 }
 0x560   : > { %v1972_v36 = vpop.xlane.xlu1 %1971 }
 0x561   : > { %6261 = vpow2.f32 %v2087_v34  ;;  %v1974_v37 = vsub.f32 %v1965_v19, %v1972_v36  ;;  %v6048_v19 = vld [vmem:[%s7321_s1 + $0xc0] ss:$8 sps:$4 sm:$0xff]   ;;  %s8181_s1 = sld [smem:[#allocation55_spill]] (!%p5572_p7) }
 0x562   : > { %6263 = vpow2.f32 %v1975_v35 }
 0x563   : > { %v1977_v38 = vmul.f32 1.442695, %v1974_v37 }
 0x565   : > { %6265 = vpow2.f32 %v1977_v38 }
 0x56a   : > { %v6260_v39 = vpop.eup %6259 }
 0x56b   : > { %v2089_v40 = vsel %vm1966_vm2, %v6260_v39, 0.0 }
 0x56c   : > { %2090 = vadd.xlane.f32.xlu0 %v2089_v40 }
 0x56e   : > { %v6262_v41 = vpop.eup %6261 }
 0x56f   : > { %v6264_v42 = vpop.eup %6263  ;;  %v2092_v43 = vsel %vm1966_vm2, %v6262_v41, 0.0 }
 0x570   : > { %v1979_v44 = vsel %vm1966_vm2, %v6264_v42, 0.0  ;;  %2093 = vadd.xlane.f32.xlu1 %v2092_v43 }
 0x571   : > { %1980 = vadd.xlane.f32.xlu0 %v1979_v44 }
 0x572   : > { %v6266_v45 = vpop.eup %6265 }
 0x573   : > { %v1982_v46 = vsel %vm1966_vm2, %v6266_v45, 0.0 }
 0x574   : > { %1983 = vadd.xlane.f32.xlu1 %v1982_v46 }
 0x5f5   : > { %v2091_v48 = vpop.xlane.xlu0 %2090 }
 0x5f6   : > { %6267 = vrcp.f32 %v2091_v48 }
 0x5f9   : > { %v2094_v49 = vpop.xlane.xlu1 %2093 }
 0x5fa   : > { %v1981_v50 = vpop.xlane.xlu0 %1980  ;;  %6269 = vrcp.f32 %v2094_v49 }
 0x5fb   : > { %6271 = vrcp.f32 %v1981_v50  ;;  %v6311_v50 = vld [vmem:[#allocation2 + $0x10] sm:$0xff] }
 0x5fd   : > { %v1984_v51 = vpop.xlane.xlu1 %1983 }
 0x5fe   : > { %6273 = vrcp.f32 %v1984_v51 }
 0x603   : > { %v6268_v52 = vpop.eup %6267 }
 0x604   : > { %v2097_v54 = vmul.f32 %v6268_v52, %v6260_v39  ;;  %v6312_v52 = vld [vmem:[#allocation2] sm:$0xff] }
 0x607   : > { %v6270_v53 = vpop.eup %6269 }
 0x608   : > { %v2098_v55 = vmul.f32 %v6270_v53, %v6262_v41  ;;  %v6272_v56 = vpop.eup %6271 }
 0x609   : > { %v1987_v0 = vmul.f32 %v6272_v56, %v6264_v42  ;;  %v1144_v42 = vld [vmem:[%s844_s13] sm:$0x3] }
 0x60a   : > { %v2099_v58 = vpack.c.bf16 %v2098_v55, %v2097_v54  ;;  %v2182_v43 = vrot.slane %v1144_v42, %v7459_v63  ;;  %v2186_v44 = vrot.slane %v1144_v42, %v7456_v62  ;;  %v2477_v42 = vld [vmem:[%s7326_s16 + $0x88] sm:$0xff] }
 0x60b   : > { %v6274_v60 = vpop.eup %6273 }
 0x60c   : > { %5654 = vmatmul.mubr.msk.bf16.vlgmr.msra.gmra.mxu1 %vm1966_vm2, %v2099_v58  ;;  %v1988_v1 = vmul.f32 %v6274_v60, %v6266_v45  ;;  %v6313_v58 = vld [vmem:[#allocation2 + $0x18] sm:$0xff]  ;;  %v6314_v60 = vld [vmem:[#allocation2 + $0x8] sm:$0xff] }
 0x60d   : > { %2350 = vmatpush1.bf16.msra.mxu1 %v6015_v57 }
 0x60e   : > { %v1989_v3 = vpack.c.bf16 %v1988_v1, %v1987_v0  ;;  %2351 = vmatprep.subr.bf16.mxu1 %v6020_v59 }
 0x610   : > { %5642 = vmatmul.mubr.msk.bf16.vlgmr.msra.gmra.mxu0 %vm1966_vm2, %v1989_v3  ;;  %v2520_v3 = vld [vmem:[%s7326_s16 + $0x1e0] sm:$0xff] }
 0x611   : > { %2352 = vmatpush1.bf16.msra.mxu1 %v6018_v2  ;;  %v2516_v2 = vld [vmem:[%s7326_s16 + $0x1c0] sm:$0xff] }
 0x612   : > { %2353 = vmatprep.subr.bf16.mxu1 %v6023_v4  ;;  %v2517_v4 = vld [vmem:[%s7326_s16 + $0x1c8] sm:$0xff] }
 0x615   : > { %2354 = vmatpush1.bf16.msra.mxu1 %v6021_v5  ;;  %v5372_v5 = vcombine.low %v2516_v2, %v2520_v3 }
 0x616   : > { %2355 = vmatprep.subr.bf16.mxu1 %v6026_v6  ;;  %v5373_v6 = vcombine.high %v2516_v2, %v2520_v3  ;;  %v2465_v2 = vld [vmem:[%s7326_s16 + $0x28] sm:$0xff] }
 0x618   : > { %3269 = vmatprep.subr.bf16.mxu0 %v5373_v6 }
 0x619   : > { %2356 = vmatpush1.bf16.msra.mxu1 %v6024_v7  ;;  %v2521_v7 = vld [vmem:[%s7326_s16 + $0x1e8] sm:$0xff]  ;;  %3270 = vmatpush1.bf16.msra.mxu0 %v5372_v5 }
 0x61a   : > { %2357 = vmatprep.subr.bf16.mxu1 %v6029_v8  ;;  %v2508_v8 = vld [vmem:[%s7326_s16 + $0x180] sm:$0xff] }
 0x61d   : > { %2358 = vmatpush1.bf16.msra.mxu1 %v6027_v9  ;;  %v2512_v9 = vld [vmem:[%s7326_s16 + $0x1a0] sm:$0xff] }
 0x61e   : > { %2359 = vmatprep.subr.bf16.mxu1 %v6032_v10  ;;  %v5374_v10 = vcombine.low %v2517_v4, %v2521_v7 }
 0x621   : > { %2360 = vmatpush1.bf16.msra.mxu1 %v6030_v11  ;;  %v5375_v11 = vcombine.high %v2517_v4, %v2521_v7  ;;  %v2580_v7 = vld [vmem:[%s7326_s16 + $0x3c0] sm:$0xff] }
 0x622   : > { %2361 = vmatprep.subr.bf16.mxu1 %v6035_v14  ;;  %v5365_v14 = vcombine.high %v2508_v8, %v2512_v9 }
 0x624   : > { %3271 = vmatprep.subr.bf16.mxu0 %v5365_v14 }
 0x625   : > { %2362 = vmatpush1.bf16.msra.mxu1 %v6033_v15  ;;  %v2509_v15 = vld [vmem:[%s7326_s16 + $0x188] sm:$0xff] }
 0x626   : > { %2363 = vmatprep.subr.bf16.mxu1 %v6038_v13  ;;  %v2513_v13 = vld [vmem:[%s7326_s16 + $0x1a8] sm:$0xff] }
 0x629   : > { %2364 = vmatpush1.bf16.msra.mxu1 %v6036_v16  ;;  %v2500_v16 = vld [vmem:[%s7326_s16 + $0x140] sm:$0xff] }
 0x62a   : > { %2365 = vmatprep.subr.bf16.mxu1 %v6041_v17  ;;  %v5367_v17 = vcombine.high %v2509_v15, %v2513_v13 }
 0x62d   : > { %2366 = vmatpush2.bf16.msra.mxu1 %v6039_v12  ;;  %v2504_v12 = vld [vmem:[%s7326_s16 + $0x160] sm:$0xff] }
 0x62e   : > { %2367 = vmatprep.subr.bf16.mxu1 %v6044_v20  ;;  %v2501_v20 = vld [vmem:[%s7326_s16 + $0x148] sm:$0xff] }
 0x631   : > { %2368 = vmatpush2.bf16.msra.mxu1 %v6042_v21  ;;  %v2505_v21 = vld [vmem:[%s7326_s16 + $0x168] sm:$0xff] }
 0x632   : > { %2369 = vmatprep.subr.bf16.mxu1 %v6047_v22  ;;  %v5364_v22 = vcombine.low %v2508_v8, %v2512_v9  ;;  %v2584_v8 = vld [vmem:[%s7326_s16 + $0x3e0] sm:$0xff]  ;;  %v2581_v9 = vld [vmem:[%s7326_s16 + $0x3c8] sm:$0xff] }
 0x634   : > { %3272 = vmatpush1.bf16.msra.mxu0 %v5364_v22 }
 0x635   : > { %2370 = vmatpush2.bf16.msra.mxu1 %v6045_v23  ;;  %v5366_v23 = vcombine.low %v2509_v15, %v2513_v13  ;;  %v5437_v15 = vcombine.high %v2580_v7, %v2584_v8 }
 0x636   : > { %2371 = vmatprep.subr.bf16.mxu1 %v6050_v24  ;;  %v5357_v24 = vcombine.high %v2500_v16, %v2504_v12 }
 0x638   : > { %3273 = vmatprep.subr.bf16.mxu0 %v5357_v24 }
 0x639   : > { %2372 = vmatpush2.bf16.msra.mxu1 %v6048_v19  ;;  %v5359_v19 = vcombine.high %v2501_v20, %v2505_v21 }
 0x63a   : > { %2373 = vmatprep.subr.bf16.mxu1 %v6053_v18  ;;  %v2492_v18 = vld [vmem:[%s7326_s16 + $0x100] sm:$0xff] }
 0x63d   : > { %2374 = vmatpush2.bf16.msra.mxu1 %v6051_v25  ;;  %v2496_v25 = vld [vmem:[%s7326_s16 + $0x120] sm:$0xff] }
 0x63e   : > { %2375 = vmatprep.subr.bf16.mxu1 %v6056_v26  ;;  %v2493_v26 = vld [vmem:[%s7326_s16 + $0x108] sm:$0xff] }
 0x641   : > { %2376 = vmatpush2.bf16.msra.mxu1 %v6054_v27  ;;  %v2497_v27 = vld [vmem:[%s7326_s16 + $0x128] sm:$0xff] }
 0x642   : > { %2377 = vmatprep.subr.bf16.mxu1 %v6059_v29  ;;  %v5358_v29 = vcombine.low %v2501_v20, %v2505_v21 }
 0x645   : > { %2378 = vmatpush2.bf16.msra.mxu1 %v6057_v28  ;;  %v5356_v28 = vcombine.low %v2500_v16, %v2504_v12  ;;  %v5436_v16 = vcombine.low %v2580_v7, %v2584_v8  ;;  %v2545_v7 = vld [vmem:[%s7326_s16 + $0x2a8] sm:$0xff] }
 0x646   : > { %2379 = vmatprep.subr.bf16.mxu1 %v6062_v31  ;;  %v5351_v31 = vcombine.high %v2493_v26, %v2497_v27 }
 0x647   : > { %3274 = vmatpush1.bf16.msra.mxu0 %v5356_v28 }
 0x649   : > { %2380 = vmatpush2.bf16.msra.mxu1 %v6060_v30  ;;  %v5349_v30 = vcombine.high %v2492_v18, %v2496_v25 }
 0x64a   : > { %3312 = vmatprep.subr.bf16.mxu1 %v5375_v11 }
 0x64b   : > { %3275 = vmatprep.subr.bf16.mxu0 %v5349_v30 }
 0x6cc   : > { %v2137_v32 = vpop.f32.mrf.mxu1 }
 0x6ce   : > { %v5655_v33 = vpop.f32.mrf.mxu1 }
 0x6cf   : > { %v2488_v33 = vld [vmem:[%s7326_s16 + $0xe0] sm:$0xff] }
 0x6d0   : > { %v2027_v34 = vpop.f32.mrf.mxu0  ;;  %v2140_v35 = vpop.f32.mrf.mxu1 }
 0x6d1   : > { %v2145_v36 = vpack.c.bf16 %v2140_v35, %v2137_v32  ;;  %v2484_v32 = vld [vmem:[%s7326_s16 + $0xc0] sm:$0xff]  ;;  %v2489_v35 = vld [vmem:[%s7326_s16 + $0xe8] sm:$0xff] }
 0x6d2   : > { %v5643_v37 = vpop.f32.mrf.mxu0  ;;  %v5656_v38 = vpop.f32.mrf.mxu1 }
 0x6d3   : > { %2381 = vmatprep.mubr.bf16.mxu1 %v2145_v36  ;;  %v5348_v36 = vcombine.low %v2492_v18, %v2496_v25  ;;  %v5350_v37 = vcombine.low %v2493_v26, %v2497_v27  ;;  %v5341_v38 = vcombine.high %v2484_v32, %v2488_v33 }
 0x6d4   : > { %v2030_v39 = vpop.f32.mrf.mxu0 }
 0x6d5   : > { %v2144_v40 = vpack.c.bf16 %v2030_v39, %v2027_v34  ;;  %v2485_v34 = vld [vmem:[%s7326_s16 + $0xc8] sm:$0xff]  ;;  %3276 = vmatpush1.bf16.msra.mxu0 %v5348_v36 }
 0x6d6   : > { %v5644_v41 = vpop.f32.mrf.mxu0  ;;  %v5343_v39 = vcombine.high %v2485_v34, %v2489_v35  ;;  %3277 = vmatprep.subr.bf16.mxu0 %v5341_v38 }
 0x6d7   : > { %2382 = vmatmul.mubr.bf16.vlgmr.msra.gmra.mxu1 %v2144_v40  ;;  %v2476_v40 = vld [vmem:[%s7326_s16 + $0x80] sm:$0xff] }
 0x6d8   : > { %3313 = vmatpush1.bf16.msra.mxu1 %v5374_v10  ;;  %v2480_v41 = vld [vmem:[%s7326_s16 + $0xa0] sm:$0xff]  ;;  %v2585_v10 = vld [vmem:[%s7326_s16 + $0x3e8] sm:$0xff] }
 0x6d9   : > { %3314 = vmatprep.subr.bf16.mxu1 %v5367_v17  ;;  %v5439_v13 = vcombine.high %v2581_v9, %v2585_v10  ;;  %v5438_v17 = vcombine.low %v2581_v9, %v2585_v10 }
 0x6dc   : > { %3315 = vmatpush1.bf16.msra.mxu1 %v5366_v23 }
 0x6dd   : > { %3316 = vmatprep.subr.bf16.mxu1 %v5359_v19 }
 0x6e0   : > { %3317 = vmatpush1.bf16.msra.mxu1 %v5358_v29 }
 0x6e1   : > { %3318 = vmatprep.subr.bf16.mxu1 %v5351_v31  ;;  %v2572_v31 = vld [vmem:[%s7326_s16 + $0x380] sm:$0xff] }
 0x6e4   : > { %3319 = vmatpush1.bf16.msra.mxu1 %v5350_v37 }
 0x6e5   : > { %3320 = vmatprep.subr.bf16.mxu1 %v5343_v39  ;;  %v2564_v39 = vld [vmem:[%s7326_s16 + $0x340] sm:$0xff] }
 0x797   : > { %v2383_v45 = vpop.f32.mrf.mxu1 }
 0x798   : > { %v2384_v46 = vadd.f32 %v2383_v45, %v2182_v43  ;;  %v5342_v45 = vcombine.low %v2485_v34, %v2489_v35  ;;  %v2577_v35 = vld [vmem:[%s7326_s16 + $0x3a8] sm:$0xff] }
 0x799   : > { %v2385_v47 = vpop.f32.mrf.mxu1 }
 0x79a   : > { %v2386_v48 = vadd.f32 %v2385_v47, %v2186_v44  ;;  %v7558_v51 = vadd.f32 %v6311_v50, %v2384_v46  ;;  %v5333_v46 = vcombine.high %v2476_v40, %v2480_v41  ;;  %v2469_v50 = vld [vmem:[%s7326_s16 + $0x48] sm:$0xff]  ;;  %3321 = vmatpush1.bf16.msra.mxu1 %v5342_v45 }
 0x79b   : > { %v2387_v49 = vpop.f32.mrf.mxu1 }
 0x79c   : > { %v7560_v53 = vadd.f32 %v6312_v52, %v2386_v48  ;;  %v2388_v54 = vadd.f32 %v2387_v49, %v2182_v43  ;;  %v2481_v43 = vld [vmem:[%s7326_s16 + $0xa8] sm:$0xff]  ;;  %v2468_v48 = vld [vmem:[%s7326_s16 + $0x40] sm:$0xff] }
 0x79d   : > { %v2389_v55 = vpop.f32.mrf.mxu1  ;;  %v5335_v47 = vcombine.high %v2477_v42, %v2481_v43  ;;  %v2472_v49 = vld [vmem:[%s7326_s16 + $0x60] sm:$0xff]  ;;  %v2473_v52 = vld [vmem:[%s7326_s16 + $0x68] sm:$0xff] }
 0x79e   : > { %v2390_v56 = vadd.f32 %v2389_v55, %v2186_v44  ;;  %v2396_v57 = vadd.f32 %v7560_v53, %v7558_v51  ;;  %v7564_v59 = vadd.f32 %v6313_v58, %v2388_v54  ;;  %v5340_v44 = vcombine.low %v2484_v32, %v2488_v33  ;;  %v2460_v58 = vld [vmem:[%s7326_s16] sm:$0xff]  ;;  %v2573_v33 = vld [vmem:[%s7326_s16 + $0x388] sm:$0xff] }
 0x79f   : > { %v5332_v54 = vcombine.low %v2476_v40, %v2480_v41  ;;  %v5334_v55 = vcombine.low %v2477_v42, %v2481_v43  ;;  %3322 = vmatprep.subr.bf16.mxu1 %v5335_v47  ;;  %v5324_v3 = vcombine.low %v2468_v48, %v2472_v49  ;;  %v5326_v4 = vcombine.low %v2469_v50, %v2473_v52  ;;  %v2576_v32 = vld [vmem:[%s7326_s16 + $0x3a0] sm:$0xff]  ;;  %v2565_v41 = vld [vmem:[%s7326_s16 + $0x348] sm:$0xff] }
 0x7a0   : > { %v7566_v0 = vadd.f32 %v6314_v60, %v2390_v56  ;;  %2397 = vadd.xlane.f32.xlu0 %v2396_v57  ;;  %3278 = vmatpush1.bf16.msra.mxu0 %v5340_v44  ;;  %v5325_v56 = vcombine.high %v2468_v48, %v2472_v49  ;;  %v5327_v57 = vcombine.high %v2469_v50, %v2473_v52  ;;  %v2464_v60 = vld [vmem:[%s7326_s16 + $0x20] sm:$0xff]  ;;  %v2569_v43 = vld [vmem:[%s7326_s16 + $0x368] sm:$0xff] }
 0x7a1   : > { %3279 = vmatprep.subr.bf16.mxu0 %v5333_v46  ;;  %3323 = vmatpush1.bf16.msra.mxu1 %v5334_v55  ;;  %v5317_v5 = vcombine.high %v2460_v58, %v2464_v60  ;;  %v5316_v11 = vcombine.low %v2460_v58, %v2464_v60  ;;  %v5429_v34 = vcombine.high %v2572_v31, %v2576_v32  ;;  %v2568_v40 = vld [vmem:[%s7326_s16 + $0x360] sm:$0xff]  ;;  %v2557_v49 = vld [vmem:[%s7326_s16 + $0x308] sm:$0xff] }
 0x7a2   : > { %v2399_v1 = vadd.f32 %v7566_v0, %v7564_v59  ;;  %3324 = vmatprep.subr.bf16.mxu1 %v5327_v57  ;;  %v5428_v36 = vcombine.low %v2572_v31, %v2576_v32  ;;  %v5430_v37 = vcombine.low %v2573_v33, %v2577_v35  ;;  %v5431_v38 = vcombine.high %v2573_v33, %v2577_v35  ;;  %v2556_v47 = vld [vmem:[%s7326_s16 + $0x300] sm:$0xff]  ;;  %v2522_v35 = vld [vmem:[%s7326_s16 + $0x1f0] sm:$0xff] }
 0x7a3   : > { %v5421_v42 = vcombine.high %v2564_v39, %v2568_v40  ;;  %v5420_v44 = vcombine.low %v2564_v39, %v2568_v40  ;;  %v5422_v45 = vcombine.low %v2565_v41, %v2569_v43  ;;  %v5423_v46 = vcombine.high %v2565_v41, %v2569_v43  ;;  %v2560_v48 = vld [vmem:[%s7326_s16 + $0x320] sm:$0xff] }
 0x7a4   : > { %2400 = vadd.xlane.f32.xlu1 %v2399_v1  ;;  %v2461_v1 = vld [vmem:[%s7326_s16 + $0x8] sm:$0xff]  ;;  %3280 = vmatpush1.bf16.msra.mxu0 %v5332_v54  ;;  %v5412_v50 = vcombine.low %v2556_v47, %v2560_v48  ;;  %v5413_v52 = vcombine.high %v2556_v47, %v2560_v48  ;;  %v2548_v55 = vld [vmem:[%s7326_s16 + $0x2c0] sm:$0xff]  ;;  %v1142_v48 = vld [vmem:[%s853_s12] sm:$0x3] }
 0x7a5   : > { %3281 = vmatprep.subr.bf16.mxu0 %v5325_v56  ;;  %v5319_v6 = vcombine.high %v2461_v1, %v2465_v2  ;;  %3325 = vmatpush1.bf16.msra.mxu1 %v5326_v4  ;;  %v5318_v14 = vcombine.low %v2461_v1, %v2465_v2  ;;  %v2561_v54 = vld [vmem:[%s7326_s16 + $0x328] sm:$0xff]  ;;  %v2552_v56 = vld [vmem:[%s7326_s16 + $0x2e0] sm:$0xff] }
 0x7a6   : > { %v5414_v57 = vcombine.low %v2557_v49, %v2561_v54  ;;  %v5415_v58 = vcombine.high %v2557_v49, %v2561_v54  ;;  %v5405_v60 = vcombine.high %v2548_v55, %v2552_v56  ;;  %v2549_v1 = vld [vmem:[%s7326_s16 + $0x2c8] sm:$0xff]  ;;  %v5404_v8 = vcombine.low %v2548_v55, %v2552_v56 }
 0x7a7   : > { %3326 = vmatprep.subr.bf16.mxu1 %v5319_v6  ;;  %v2553_v2 = vld [vmem:[%s7326_s16 + $0x2e8] sm:$0xff]  ;;  %v2436_v54 = vrot.slane %v1142_v48, %v7456_v62  ;;  %v2432_v56 = vrot.slane %v1142_v48, %v7459_v63 }
 0x7a8   : > { %3282 = vmatpush1.bf16.msra.mxu0 %v5324_v3  ;;  %v2540_v3 = vld [vmem:[%s7326_s16 + $0x280] sm:$0xff]  ;;  %v5407_v4 = vcombine.high %v2549_v1, %v2553_v2  ;;  %v2541_v6 = vld [vmem:[%s7326_s16 + $0x288] sm:$0xff]  ;;  %v5406_v9 = vcombine.low %v2549_v1, %v2553_v2 }
 0x7a9   : > { %3283 = vmatprep.subr.bf16.mxu0 %v5317_v5  ;;  %3327 = vmatpush1.bf16.msra.mxu1 %v5318_v14  ;;  %v2544_v5 = vld [vmem:[%s7326_s16 + $0x2a0] sm:$0xff] }
 0x7aa   : > { %3328 = vmatprep.subr.bf16.mxu1 %v5439_v13  ;;  %v5397_v10 = vcombine.high %v2540_v3, %v2544_v5  ;;  %v2532_v14 = vld [vmem:[%s7326_s16 + $0x240] sm:$0xff]  ;;  %v2533_v13 = vld [vmem:[%s7326_s16 + $0x248] sm:$0xff] }
 0x7ac   : > { %3284 = vmatpush1.bf16.msra.mxu0 %v5316_v11  ;;  %v5399_v11 = vcombine.high %v2541_v6, %v2545_v7 }
 0x7ad   : > { %3285 = vmatprep.subr.bf16.mxu0 %v5437_v15  ;;  %3329 = vmatpush2.bf16.msra.mxu1 %v5438_v17  ;;  %v2536_v15 = vld [vmem:[%s7326_s16 + $0x260] sm:$0xff]  ;;  %v5396_v17 = vcombine.low %v2540_v3, %v2544_v5 }
 0x7ae   : > { %3330 = vmatprep.subr.bf16.mxu1 %v5431_v38  ;;  %v2523_v38 = vld [vmem:[%s7326_s16 + $0x1f8] sm:$0xff] }
 0x7b0   : > { %3286 = vmatpush2.bf16.msra.mxu0 %v5436_v16  ;;  %v2537_v16 = vld [vmem:[%s7326_s16 + $0x268] sm:$0xff] }
 0x7b1   : > { %3287 = vmatprep.subr.bf16.mxu0 %v5429_v34  ;;  %3331 = vmatpush2.bf16.msra.mxu1 %v5430_v37  ;;  %v2518_v34 = vld [vmem:[%s7326_s16 + $0x1d0] sm:$0xff] }
 0x7b2   : > { %3332 = vmatprep.subr.bf16.mxu1 %v5423_v46  ;;  %v5377_v37 = vcombine.high %v2518_v34, %v2522_v35  ;;  %v5376_v39 = vcombine.low %v2518_v34, %v2522_v35  ;;  %v2486_v35 = vld [vmem:[%s7326_s16 + $0xd0] sm:$0xff] }
 0x7b4   : > { %3288 = vmatpush2.bf16.msra.mxu0 %v5428_v36  ;;  %v2519_v36 = vld [vmem:[%s7326_s16 + $0x1d8] sm:$0xff] }
 0x7b5   : > { %3289 = vmatprep.subr.bf16.mxu0 %v5421_v42  ;;  %3333 = vmatpush2.bf16.msra.mxu1 %v5422_v45  ;;  %v5378_v40 = vcombine.low %v2519_v36, %v2523_v38  ;;  %v5379_v41 = vcombine.high %v2519_v36, %v2523_v38  ;;  %v2490_v36 = vld [vmem:[%s7326_s16 + $0xf0] sm:$0xff]  ;;  %v2491_v38 = vld [vmem:[%s7326_s16 + $0xf8] sm:$0xff] }
 0x7b6   : > { %3334 = vmatprep.subr.bf16.mxu1 %v5415_v58 }
 0x7b8   : > { %3290 = vmatpush2.bf16.msra.mxu0 %v5420_v44 }
 0x7b9   : > { %3291 = vmatprep.subr.bf16.mxu0 %v5413_v52  ;;  %3335 = vmatpush2.bf16.msra.mxu1 %v5414_v57 }
 0x7ba   : > { %3336 = vmatprep.subr.bf16.mxu1 %v5407_v4 }
 0x7bc   : > { %3292 = vmatpush2.bf16.msra.mxu0 %v5412_v50  ;;  %v1143_v50 = vld [vmem:[%s8179_s10] sm:$0x3] }
 0x7bd   : > { %3293 = vmatprep.subr.bf16.mxu0 %v5405_v60  ;;  %3337 = vmatpush2.bf16.msra.mxu1 %v5406_v9  ;;  %v2451_v58 = vrot.slane %v1143_v50, %v7456_v62  ;;  %v2447_v60 = vrot.slane %v1143_v50, %v7459_v63  ;;  %v2510_v9 = vld [vmem:[%s7326_s16 + $0x190] sm:$0xff] }
 0x7be   : > { %3338 = vmatprep.subr.bf16.mxu1 %v5399_v11  ;;  %v2511_v11 = vld [vmem:[%s7326_s16 + $0x198] sm:$0xff] }
 0x7c0   : > { %3294 = vmatpush2.bf16.msra.mxu0 %v5404_v8 }
 0x7c1   : > { %3295 = vmatprep.subr.bf16.mxu0 %v5397_v10  ;;  %v2514_v10 = vld [vmem:[%s7326_s16 + $0x1b0] sm:$0xff] }
 0x7c4   : > { %3296 = vmatpush2.bf16.msra.mxu0 %v5396_v17  ;;  %v2506_v17 = vld [vmem:[%s7326_s16 + $0x170] sm:$0xff] }
 0x829   : > { %v2398_v12 = vpop.xlane.xlu0 %2397 }
 0x82a   : > { %v2402_v20 = vmul.f32 0.00390625, %v2398_v12  ;;  %v5398_v12 = vcombine.low %v2541_v6, %v2545_v7 }
 0x82c   : > { %v7607_v21 = vsub.f32 %v7558_v51, %v2402_v20  ;;  %v7610_v22 = vsub.f32 %v7560_v53, %v2402_v20  ;;  %v5389_v20 = vcombine.high %v2532_v14, %v2536_v15  ;;  %3339 = vmatpush2.bf16.msra.mxu1 %v5398_v12  ;;  %v2503_v12 = vld [vmem:[%s7326_s16 + $0x158] sm:$0xff] }
 0x82d   : > { %v2401_v23 = vpop.xlane.xlu1 %2400 }
 0x82e   : > { %v2403_v24 = vmul.f32 0.00390625, %v2401_v23  ;;  %v2408_v19 = vmul.f32 %v7607_v21, %v7607_v21  ;;  %v2409_v18 = vmul.f32 %v7610_v22, %v7610_v22  ;;  %v5391_v23 = vcombine.high %v2533_v13, %v2537_v16  ;;  %3297 = vmatprep.subr.bf16.mxu0 %v5389_v20  ;;  %v2507_v20 = vld [vmem:[%s7326_s16 + $0x178] sm:$0xff] }
 0x830   : > { %v7617_v25 = vsub.f32 %v7564_v59, %v2403_v24  ;;  %v7620_v26 = vsub.f32 %v7566_v0, %v2403_v24  ;;  %v2412_v27 = vadd.f32 %v2409_v18, %v2408_v19  ;;  %v2524_v24 = vld [vmem:[%s7326_s16 + $0x200] sm:$0xff]  ;;  %v2525_v18 = vld [vmem:[%s7326_s16 + $0x208] sm:$0xff]  ;;  %3340 = vmatprep.subr.bf16.mxu1 %v5391_v23  ;;  %v5368_v23 = vcombine.low %v2510_v9, %v2514_v10 }
 0x831   : > { %v2528_v19 = vld [vmem:[%s7326_s16 + $0x220] sm:$0xff] }
 0x832   : > { %2413 = vadd.xlane.f32.xlu0 %v2412_v27  ;;  %v2410_v28 = vmul.f32 %v7617_v25, %v7617_v25  ;;  %v2411_v29 = vmul.f32 %v7620_v26, %v7620_v26  ;;  %v2529_v27 = vld [vmem:[%s7326_s16 + $0x228] sm:$0xff]  ;;  %v5380_v32 = vcombine.low %v2524_v24, %v2528_v19 }
 0x833   : > { %v5383_v31 = vcombine.high %v2525_v18, %v2529_v27  ;;  %v5382_v33 = vcombine.low %v2525_v18, %v2529_v27  ;;  %v5363_v18 = vcombine.high %v2503_v12, %v2507_v20  ;;  %v2494_v27 = vld [vmem:[%s7326_s16 + $0x110] sm:$0xff] }
 0x834   : > { %v2415_v30 = vadd.f32 %v2411_v29, %v2410_v28  ;;  %v5388_v28 = vcombine.low %v2532_v14, %v2536_v15  ;;  %v5390_v29 = vcombine.low %v2533_v13, %v2537_v16  ;;  %v2515_v14 = vld [vmem:[%s7326_s16 + $0x1b8] sm:$0xff]  ;;  %v2502_v13 = vld [vmem:[%s7326_s16 + $0x150] sm:$0xff] }
 0x835   : > { %v5371_v16 = vcombine.high %v2511_v11, %v2515_v14 }
 0x836   : > { %2416 = vadd.xlane.f32.xlu1 %v2415_v30  ;;  %v5381_v30 = vcombine.high %v2524_v24, %v2528_v19  ;;  %3298 = vmatpush2.bf16.msra.mxu0 %v5388_v28  ;;  %v5370_v24 = vcombine.low %v2511_v11, %v2515_v14  ;;  %v5361_v19 = vcombine.high %v2502_v13, %v2506_v17  ;;  %v2498_v28 = vld [vmem:[%s7326_s16 + $0x130] sm:$0xff]  ;;  %v2587_v11 = vld [vmem:[%s7326_s16 + $0x3f8] sm:$0xff] }
 0x837   : > { %3341 = vmatpush2.bf16.msra.mxu1 %v5390_v29  ;;  %v2495_v29 = vld [vmem:[%s7326_s16 + $0x118] sm:$0xff] }
 0x838   : > { %3299 = vmatprep.subr.bf16.mxu0 %v5381_v30  ;;  %3342 = vmatprep.subr.bf16.mxu1 %v5383_v31  ;;  %v2499_v30 = vld [vmem:[%s7326_s16 + $0x138] sm:$0xff]  ;;  %v5360_v31 = vcombine.low %v2502_v13, %v2506_v17  ;;  %v2578_v17 = vld [vmem:[%s7326_s16 + $0x3b0] sm:$0xff] }
 0x839   : > { %v5355_v34 = vcombine.high %v2495_v29, %v2499_v30 }
 0x83a   : > { %3300 = vmatpush2.bf16.msra.mxu0 %v5380_v32  ;;  %v5362_v32 = vcombine.low %v2503_v12, %v2507_v20  ;;  %v2575_v12 = vld [vmem:[%s7326_s16 + $0x398] sm:$0xff] }
 0x83b   : > { %3343 = vmatpush2.bf16.msra.mxu1 %v5382_v33  ;;  %3355 = vmatprep.subr.bf16.mxu0 %v5377_v37  ;;  %v5353_v33 = vcombine.high %v2494_v27, %v2498_v28  ;;  %v2487_v37 = vld [vmem:[%s7326_s16 + $0xd8] sm:$0xff] }
 0x83c   : > { %3398 = vmatprep.subr.bf16.mxu1 %v5379_v41  ;;  %v5345_v41 = vcombine.high %v2486_v35, %v2490_v36  ;;  %v5346_v48 = vcombine.low %v2487_v37, %v2491_v38  ;;  %v2579_v20 = vld [vmem:[%s7326_s16 + $0x3b8] sm:$0xff] }
 0x8bb   : > { %v2414_v42 = vpop.xlane.xlu0 %2413 }
 0x8bc   : > { %v2418_v43 = vmul.f32 0.00390625, %v2414_v42  ;;  %v5347_v42 = vcombine.high %v2487_v37, %v2491_v38  ;;  %v2559_v37 = vld [vmem:[%s7326_s16 + $0x318] sm:$0xff] }
 0x8bd   : > { %v2563_v38 = vld [vmem:[%s7326_s16 + $0x338] sm:$0xff] }
 0x8be   : > { %v2420_v44 = vadd.f32 1e-05, %v2418_v43  ;;  %v2478_v43 = vld [vmem:[%s7326_s16 + $0x90] sm:$0xff] }
 0x8bf   : > { %v2417_v45 = vpop.xlane.xlu1 %2416 }
 0x8c0   : > { %6275 = vrsqrt.f32 %v2420_v44  ;;  %v2419_v46 = vmul.f32 0.00390625, %v2417_v45  ;;  %v2482_v44 = vld [vmem:[%s7326_s16 + $0xb0] sm:$0xff]  ;;  %v2479_v45 = vld [vmem:[%s7326_s16 + $0x98] sm:$0xff] }
 0x8c2   : > { %v2421_v47 = vadd.f32 1e-05, %v2419_v46  ;;  %v2483_v46 = vld [vmem:[%s7326_s16 + $0xb8] sm:$0xff] }
 0x8c3   : > { %v5339_v50 = vcombine.high %v2479_v45, %v2483_v46 }
 0x8c4   : > { %6277 = vrsqrt.f32 %v2421_v47  ;;  %v5344_v47 = vcombine.low %v2486_v35, %v2490_v36  ;;  %v2558_v35 = vld [vmem:[%s7326_s16 + $0x310] sm:$0xff] }
 0x8c5   : > { %v2562_v36 = vld [vmem:[%s7326_s16 + $0x330] sm:$0xff] }
 0x8cd   : > { %v6276_v49 = vpop.eup %6275 }
 0x8ce   : > { %v2425_v52 = vmul.f32 %v6276_v49, %v7610_v22  ;;  %v2424_v55 = vmul.f32 %v6276_v49, %v7607_v21  ;;  %v5337_v49 = vcombine.high %v2478_v43, %v2482_v44 }
 0x8d0   : > { %v2440_v2 = vmul.f32 %v2436_v54, %v2425_v52  ;;  %v2439_v3 = vmul.f32 %v2432_v56, %v2424_v55  ;;  %v2470_v52 = vld [vmem:[%s7326_s16 + $0x50] sm:$0xff]  ;;  %v2471_v55 = vld [vmem:[%s7326_s16 + $0x58] sm:$0xff] }
 0x8d1   : > { %v6278_v57 = vpop.eup %6277 }
 0x8d2   : > { %v2427_v1 = vmul.f32 %v6278_v57, %v7620_v26  ;;  %v2426_v22 = vmul.f32 %v6278_v57, %v7617_v25  ;;  %v2455_v21 = vadd.f32 %v2451_v58, %v2440_v2  ;;  %v2454_v7 = vadd.f32 %v2447_v60, %v2439_v3  ;;  %v2462_v2 = vld [vmem:[%s7326_s16 + $0x10] sm:$0xff]  ;;  %v2463_v3 = vld [vmem:[%s7326_s16 + $0x18] sm:$0xff] }
 0x8d3   : > { %v5369_v25 = vcombine.high %v2510_v9, %v2514_v10  ;;  %v5336_v57 = vcombine.low %v2478_v43, %v2482_v44  ;;  %v2586_v9 = vld [vmem:[%s7326_s16 + $0x3f0] sm:$0xff]  ;;  %v2583_v10 = vld [vmem:[%s7326_s16 + $0x3d8] sm:$0xff] }
 0x8d4   : > { %v2442_v4 = vmul.f32 %v2436_v54, %v2427_v1  ;;  %v2441_v5 = vmul.f32 %v2432_v56, %v2426_v22  ;;  %v2474_v54 = vld [vmem:[%s7326_s16 + $0x70] sm:$0xff]  ;;  %v2475_v56 = vld [vmem:[%s7326_s16 + $0x78] sm:$0xff] }
 0x8d5   : > { %v5331_v1 = vcombine.high %v2471_v55, %v2475_v56  ;;  %v2466_v22 = vld [vmem:[%s7326_s16 + $0x30] sm:$0xff] }
 0x8d6   : > { %v2457_v6 = vadd.f32 %v2451_v58, %v2442_v4  ;;  %v2456_v8 = vadd.f32 %v2447_v60, %v2441_v5  ;;  %v5338_v58 = vcombine.low %v2479_v45, %v2483_v46  ;;  %v5329_v60 = vcombine.high %v2470_v52, %v2474_v54  ;;  %v2467_v4 = vld [vmem:[%s7326_s16 + $0x38] sm:$0xff]  ;;  %v2550_v43 = vld [vmem:[%s7326_s16 + $0x2d0] sm:$0xff] }
 0x8d7   : > { %v5328_v5 = vcombine.low %v2470_v52, %v2474_v54  ;;  %v5320_v14 = vcombine.low %v2462_v2, %v2466_v22  ;;  %v2554_v44 = vld [vmem:[%s7326_s16 + $0x2f0] sm:$0xff]  ;;  %v2551_v45 = vld [vmem:[%s7326_s16 + $0x2d8] sm:$0xff] }
 0x8d8   : > { %v2459_v15 = vpack.c.bf16 %v2457_v6, %v2455_v21  ;;  %v7674_v26 = vpack.c.bf16 %v2456_v8, %v2454_v7  ;;  %v5330_v21 = vcombine.low %v2471_v55, %v2475_v56  ;;  %v5321_v6 = vcombine.high %v2462_v2, %v2466_v22  ;;  %v2582_v8 = vld [vmem:[%s7326_s16 + $0x3d0] sm:$0xff]  ;;  %v2555_v46 = vld [vmem:[%s7326_s16 + $0x2f8] sm:$0xff] }
 0x8d9   : > { %v5323_v7 = vcombine.high %v2463_v3, %v2467_v4  ;;  %v5441_v13 = vcombine.high %v2582_v8, %v2586_v9  ;;  %v2542_v52 = vld [vmem:[%s7326_s16 + $0x290] sm:$0xff]  ;;  %v2543_v55 = vld [vmem:[%s7326_s16 + $0x298] sm:$0xff] }
 0x8da   : > { %3301 = vmatprep.mubr.bf16.mxu0 %v2459_v15  ;;  %3344 = vmatprep.mubr.bf16.mxu1 %v2459_v15  ;;  %v2546_v54 = vld [vmem:[%s7326_s16 + $0x2b0] sm:$0xff]  ;;  %v2547_v56 = vld [vmem:[%s7326_s16 + $0x2b8] sm:$0xff] }
 0x8db   : > { %3302 = vmatmul.mubr.bf16.vlgmr.msra.gmra.mxu0 %v7674_v26  ;;  %3345 = vmatmul.mubr.bf16.vlgmr.msra.gmra.mxu1 %v7674_v26  ;;  %v2534_v2 = vld [vmem:[%s7326_s16 + $0x250] sm:$0xff] }
 0x8dc   : > { %3356 = vmatpush1.bf16.msra.mxu0 %v5376_v39  ;;  %3399 = vmatpush1.bf16.msra.mxu1 %v5378_v40  ;;  %v5352_v39 = vcombine.low %v2494_v27, %v2498_v28  ;;  %v5354_v40 = vcombine.low %v2495_v29, %v2499_v30  ;;  %v2566_v27 = vld [vmem:[%s7326_s16 + $0x350] sm:$0xff]  ;;  %v2567_v29 = vld [vmem:[%s7326_s16 + $0x358] sm:$0xff] }
 0x8dd   : > { %3387 = vmatprep.mubr.bf16.mxu0 %v2459_v15  ;;  %3430 = vmatprep.mubr.bf16.mxu1 %v2459_v15  ;;  %v5322_v15 = vcombine.low %v2463_v3, %v2467_v4  ;;  %v2570_v28 = vld [vmem:[%s7326_s16 + $0x370] sm:$0xff]  ;;  %v2571_v30 = vld [vmem:[%s7326_s16 + $0x378] sm:$0xff] }
 0x8de   : > { %3357 = vmatprep.subr.bf16.mxu0 %v5369_v25  ;;  %3400 = vmatprep.subr.bf16.mxu1 %v5371_v16  ;;  %v5443_v25 = vcombine.high %v2583_v10, %v2587_v11  ;;  %v2574_v16 = vld [vmem:[%s7326_s16 + $0x390] sm:$0xff]  ;;  %v2535_v3 = vld [vmem:[%s7326_s16 + $0x258] sm:$0xff] }
 0x8df   : > { %v2538_v22 = vld [vmem:[%s7326_s16 + $0x270] sm:$0xff]  ;;  %v2539_v4 = vld [vmem:[%s7326_s16 + $0x278] sm:$0xff] }
 0x8e0   : > { %3358 = vmatpush1.bf16.msra.mxu0 %v5368_v23  ;;  %3401 = vmatpush1.bf16.msra.mxu1 %v5370_v24  ;;  %v5440_v23 = vcombine.low %v2582_v8, %v2586_v9  ;;  %v5442_v24 = vcombine.low %v2583_v10, %v2587_v11  ;;  %v2526_v8 = vld [vmem:[%s7326_s16 + $0x210] sm:$0xff]  ;;  %v2527_v10 = vld [vmem:[%s7326_s16 + $0x218] sm:$0xff] }
 0x8e1   : > { %3359 = vmatprep.subr.bf16.mxu0 %v5361_v19  ;;  %3402 = vmatprep.subr.bf16.mxu1 %v5363_v18  ;;  %v5433_v19 = vcombine.high %v2574_v16, %v2578_v17  ;;  %v5435_v18 = vcombine.high %v2575_v12, %v2579_v20  ;;  %v2530_v9 = vld [vmem:[%s7326_s16 + $0x230] sm:$0xff]  ;;  %v2531_v11 = vld [vmem:[%s7326_s16 + $0x238] sm:$0xff]  ;;  %s8182_s16 = sld [smem:[#allocation56_spill]] (!%p5572_p7) }
 0x8e4   : > { %3360 = vmatpush1.bf16.msra.mxu0 %v5360_v31  ;;  %3403 = vmatpush1.bf16.msra.mxu1 %v5362_v32  ;;  %v5432_v31 = vcombine.low %v2574_v16, %v2578_v17  ;;  %v5434_v32 = vcombine.low %v2575_v12, %v2579_v20  ;;  %v5384_v16 = vcombine.low %v2526_v8, %v2530_v9  ;;  %v6065_v12 = vld [vmem:[%s7328_s29 + $0x74] ss:$8 sps:$4 sm:$0xff]  }
 0x8e5   : > { %3361 = vmatprep.subr.bf16.mxu0 %v5353_v33  ;;  %3404 = vmatprep.subr.bf16.mxu1 %v5355_v34  ;;  %v5425_v33 = vcombine.high %v2566_v27, %v2570_v28  ;;  %v5427_v34 = vcombine.high %v2567_v29, %v2571_v30  ;;  %v5386_v17 = vcombine.low %v2527_v10, %v2531_v11  ;;  %v6068_v20 = vld [vmem:[%s7328_s29 + $0x174] ss:$8 sps:$4 sm:$0xff]  }
 0x8e8   : > { %3362 = vmatpush1.bf16.msra.mxu0 %v5352_v39  ;;  %3405 = vmatpush1.bf16.msra.mxu1 %v5354_v40  ;;  %v5424_v39 = vcombine.low %v2566_v27, %v2570_v28  ;;  %v5426_v40 = vcombine.low %v2567_v29, %v2571_v30  ;;  %v6069_v27 = vld [vmem:[%s7328_s29 + $0x60] ss:$8 sps:$4 sm:$0xff]   ;;  %v6077_v29 = vld [vmem:[%s7328_s29 + $0x54] ss:$8 sps:$4 sm:$0xff]  }
 0x8e9   : > { %3363 = vmatprep.subr.bf16.mxu0 %v5345_v41  ;;  %3406 = vmatprep.subr.bf16.mxu1 %v5347_v42  ;;  %v5417_v41 = vcombine.high %v2558_v35, %v2562_v36  ;;  %v5419_v42 = vcombine.high %v2559_v37, %v2563_v38  ;;  %v6072_v28 = vld [vmem:[%s7328_s29 + $0x160] ss:$8 sps:$4 sm:$0xff]   ;;  %v6080_v30 = vld [vmem:[%s7328_s29 + $0x154] ss:$8 sps:$4 sm:$0xff]  }
 0x8ec   : > { %3364 = vmatpush1.bf16.msra.mxu0 %v5344_v47  ;;  %3407 = vmatpush1.bf16.msra.mxu1 %v5346_v48  ;;  %v5416_v47 = vcombine.low %v2558_v35, %v2562_v36  ;;  %v5418_v48 = vcombine.low %v2559_v37, %v2563_v38  ;;  %v6084_v35 = vld [vmem:[%s7328_s29 + $0x140] ss:$8 sps:$4 sm:$0xff]   ;;  %v6089_v36 = vld [vmem:[%s7328_s29 + $0x34] ss:$8 sps:$4 sm:$0xff]   ;;  %v6087_v38 = vld [vmem:[%s7328_s29 + $0x30] ss:$8 sps:$4 sm:$0xff]  }
 0x8ed   : > { %3365 = vmatprep.subr.bf16.mxu0 %v5337_v49  ;;  %3408 = vmatprep.subr.bf16.mxu1 %v5339_v50  ;;  %v5409_v49 = vcombine.high %v2550_v43, %v2554_v44  ;;  %v5411_v50 = vcombine.high %v2551_v45, %v2555_v46  ;;  %v6092_v37 = vld [vmem:[%s7328_s29 + $0x134] ss:$8 sps:$4 sm:$0xff]  }
 0x8f0   : > { %3366 = vmatpush1.bf16.msra.mxu0 %v5336_v57  ;;  %3409 = vmatpush1.bf16.msra.mxu1 %v5338_v58  ;;  %v5408_v57 = vcombine.low %v2550_v43, %v2554_v44  ;;  %v5410_v58 = vcombine.low %v2551_v45, %v2555_v46  ;;  %v6096_v43 = vld [vmem:[%s7328_s29 + $0x120] ss:$8 sps:$4 sm:$0xff]   ;;  %v6101_v44 = vld [vmem:[%s7328_s29 + $0x14] ss:$8 sps:$4 sm:$0xff]   ;;  %v6099_v46 = vld [vmem:[%s7328_s29 + $0x10] ss:$8 sps:$4 sm:$0xff]  }
 0x8f1   : > { %3367 = vmatprep.subr.bf16.mxu0 %v5329_v60  ;;  %3410 = vmatprep.subr.bf16.mxu1 %v5331_v1  ;;  %v5401_v60 = vcombine.high %v2542_v52, %v2546_v54  ;;  %v5403_v1 = vcombine.high %v2543_v55, %v2547_v56  ;;  %v6104_v45 = vld [vmem:[%s7328_s29 + $0x114] ss:$8 sps:$4 sm:$0xff]  }
 0x8f4   : > { %3368 = vmatpush1.bf16.msra.mxu0 %v5328_v5  ;;  %3411 = vmatpush1.bf16.msra.mxu1 %v5330_v21  ;;  %v5400_v5 = vcombine.low %v2542_v52, %v2546_v54  ;;  %v5402_v21 = vcombine.low %v2543_v55, %v2547_v56  ;;  %v6108_v52 = vld [vmem:[%s7328_s29 + $0x100] ss:$8 sps:$4 sm:$0xff]   ;;  %v6113_v54 = vld [vmem:[%s7328_s29 + $0xf4] ss:$8 sps:$4 sm:$0xff]   ;;  %v6111_v56 = vld [vmem:[%s7328_s29 + $0xf0] ss:$8 sps:$4 sm:$0xff]  }
 0x8f5   : > { %3369 = vmatprep.subr.bf16.mxu0 %v5321_v6  ;;  %3412 = vmatprep.subr.bf16.mxu1 %v5323_v7  ;;  %v5393_v6 = vcombine.high %v2534_v2, %v2538_v22  ;;  %v5395_v7 = vcombine.high %v2535_v3, %v2539_v4  ;;  %v6116_v55 = vld [vmem:[%s7328_s29 + $0x1f4] ss:$8 sps:$4 sm:$0xff]  }
 0x8f8   : > { %3370 = vmatpush1.bf16.msra.mxu0 %v5320_v14  ;;  %3413 = vmatpush1.bf16.msra.mxu1 %v5322_v15  ;;  %v5392_v14 = vcombine.low %v2534_v2, %v2538_v22  ;;  %v5394_v15 = vcombine.low %v2535_v3, %v2539_v4  ;;  %v6120_v2 = vld [vmem:[%s7328_s29 + $0x1e0] ss:$8 sps:$4 sm:$0xff]   ;;  %v6125_v22 = vld [vmem:[%s7328_s29 + $0xd4] ss:$8 sps:$4 sm:$0xff]   ;;  %v6123_v4 = vld [vmem:[%s7328_s29 + $0xd0] ss:$8 sps:$4 sm:$0xff]  }
 0x8f9   : > { %3371 = vmatprep.subr.bf16.mxu0 %v5441_v13  ;;  %3414 = vmatprep.subr.bf16.mxu1 %v5443_v25  ;;  %v5385_v13 = vcombine.high %v2526_v8, %v2530_v9  ;;  %v5387_v25 = vcombine.high %v2527_v10, %v2531_v11  ;;  %v6128_v3 = vld [vmem:[%s7328_s29 + $0x1d4] ss:$8 sps:$4 sm:$0xff]   ;;  %v6132_v8 = vld [vmem:[%s7328_s29 + $0x1c0] ss:$8 sps:$4 sm:$0xff]   ;;  %v6135_v11 = vld [vmem:[%s7328_s29 + $0xb0] ss:$8 sps:$4 sm:$0xff]  }
 0x8fa   : > { %v6137_v9 = vld [vmem:[%s7328_s29 + $0xb4] ss:$8 sps:$4 sm:$0xff]  }
 0x8fb   : > { %v6140_v10 = vld [vmem:[%s7328_s29 + $0x1b4] ss:$8 sps:$4 sm:$0xff]  }
 0x8fc   : > { %3372 = vmatpush2.bf16.msra.mxu0 %v5440_v23  ;;  %3415 = vmatpush2.bf16.msra.mxu1 %v5442_v24  ;;  %v6063_v23 = vld [vmem:[%s7328_s29 + $0x70] ss:$8 sps:$4 sm:$0xff]  }
 0x8fd   : > { %3373 = vmatprep.subr.bf16.mxu0 %v5433_v19  ;;  %3416 = vmatprep.subr.bf16.mxu1 %v5435_v18  ;;  %v6066_v24 = vld [vmem:[%s7328_s29 + $0x170] ss:$8 sps:$4 sm:$0xff]   ;;  %v6071_v19 = vld [vmem:[%s7328_s29 + $0x64] ss:$8 sps:$4 sm:$0xff]  }
 0x8fe   : > { %v6074_v18 = vld [vmem:[%s7328_s29 + $0x164] ss:$8 sps:$4 sm:$0xff]  }
 0x900   : > { %3374 = vmatpush2.bf16.msra.mxu0 %v5432_v31  ;;  %3417 = vmatpush2.bf16.msra.mxu1 %v5434_v32  ;;  %v6075_v31 = vld [vmem:[%s7328_s29 + $0x50] ss:$8 sps:$4 sm:$0xff]  }
 0x901   : > { %3375 = vmatprep.subr.bf16.mxu0 %v5425_v33  ;;  %3418 = vmatprep.subr.bf16.mxu1 %v5427_v34  ;;  %v6078_v32 = vld [vmem:[%s7328_s29 + $0x150] ss:$8 sps:$4 sm:$0xff]   ;;  %v6086_v33 = vld [vmem:[%s7328_s29 + $0x144] ss:$8 sps:$4 sm:$0xff]   ;;  %v6081_v34 = vld [vmem:[%s7328_s29 + $0x40] ss:$8 sps:$4 sm:$0xff]  }
 0x904   : > { %3376 = vmatpush2.bf16.msra.mxu0 %v5424_v39  ;;  %3419 = vmatpush2.bf16.msra.mxu1 %v5426_v40  ;;  %v6090_v39 = vld [vmem:[%s7328_s29 + $0x130] ss:$8 sps:$4 sm:$0xff]   ;;  %v6095_v40 = vld [vmem:[%s7328_s29 + $0x24] ss:$8 sps:$4 sm:$0xff]  }
 0x905   : > { %3377 = vmatprep.subr.bf16.mxu0 %v5417_v41  ;;  %3420 = vmatprep.subr.bf16.mxu1 %v5419_v42  ;;  %v6098_v41 = vld [vmem:[%s7328_s29 + $0x124] ss:$8 sps:$4 sm:$0xff]   ;;  %v6093_v42 = vld [vmem:[%s7328_s29 + $0x20] ss:$8 sps:$4 sm:$0xff]  }
 0x908   : > { %3378 = vmatpush2.bf16.msra.mxu0 %v5416_v47  ;;  %3421 = vmatpush2.bf16.msra.mxu1 %v5418_v48  ;;  %v6102_v47 = vld [vmem:[%s7328_s29 + $0x110] ss:$8 sps:$4 sm:$0xff]   ;;  %v6107_v48 = vld [vmem:[%s7328_s29 + $0x4] ss:$8 sps:$4 sm:$0xff]  }
 0x909   : > { %3379 = vmatprep.subr.bf16.mxu0 %v5409_v49  ;;  %3422 = vmatprep.subr.bf16.mxu1 %v5411_v50  ;;  %v6110_v49 = vld [vmem:[%s7328_s29 + $0x104] ss:$8 sps:$4 sm:$0xff]   ;;  %v6105_v50 = vld [vmem:[%s7328_s29] ss:$8 sps:$4 sm:$0xff]  }
 0x90c   : > { %3380 = vmatpush2.bf16.msra.mxu0 %v5408_v57  ;;  %3423 = vmatpush2.bf16.msra.mxu1 %v5410_v58  ;;  %v6114_v57 = vld [vmem:[%s7328_s29 + $0x1f0] ss:$8 sps:$4 sm:$0xff]   ;;  %v6119_v58 = vld [vmem:[%s7328_s29 + $0xe4] ss:$8 sps:$4 sm:$0xff]  }
 0x90d   : > { %3381 = vmatprep.subr.bf16.mxu0 %v5401_v60  ;;  %3424 = vmatprep.subr.bf16.mxu1 %v5403_v1  ;;  %v6122_v60 = vld [vmem:[%s7328_s29 + $0x1e4] ss:$8 sps:$4 sm:$0xff]   ;;  %v6117_v1 = vld [vmem:[%s7328_s29 + $0xe0] ss:$8 sps:$4 sm:$0xff]  }
 0x910   : > { %3382 = vmatpush2.bf16.msra.mxu0 %v5400_v5  ;;  %3425 = vmatpush2.bf16.msra.mxu1 %v5402_v21  ;;  %v6126_v5 = vld [vmem:[%s7328_s29 + $0x1d0] ss:$8 sps:$4 sm:$0xff]   ;;  %v6131_v21 = vld [vmem:[%s7328_s29 + $0xc4] ss:$8 sps:$4 sm:$0xff]  }
 0x911   : > { %3383 = vmatprep.subr.bf16.mxu0 %v5393_v6  ;;  %3426 = vmatprep.subr.bf16.mxu1 %v5395_v7  ;;  %v6134_v6 = vld [vmem:[%s7328_s29 + $0x1c4] ss:$8 sps:$4 sm:$0xff]   ;;  %v6129_v7 = vld [vmem:[%s7328_s29 + $0xc0] ss:$8 sps:$4 sm:$0xff]  }
 0x914   : > { %3384 = vmatpush2.bf16.msra.mxu0 %v5392_v14  ;;  %3427 = vmatpush2.bf16.msra.mxu1 %v5394_v15  ;;  %v6138_v14 = vld [vmem:[%s7328_s29 + $0x1b0] ss:$8 sps:$4 sm:$0xff]   ;;  %v6143_v15 = vld [vmem:[%s7328_s29 + $0xa4] ss:$8 sps:$4 sm:$0xff]  }
 0x915   : > { %3385 = vmatprep.subr.bf16.mxu0 %v5385_v13  ;;  %3428 = vmatprep.subr.bf16.mxu1 %v5387_v25  ;;  %v6146_v13 = vld [vmem:[%s7328_s29 + $0x1a4] ss:$8 sps:$4 sm:$0xff]   ;;  %v6141_v25 = vld [vmem:[%s7328_s29 + $0xa0] ss:$8 sps:$4 sm:$0xff]  }
 0x918   : > { %3386 = vmatpush2.bf16.msra.mxu0 %v5384_v16  ;;  %3429 = vmatpush2.bf16.msra.mxu1 %v5386_v17  ;;  %v6144_v16 = vld [vmem:[%s7328_s29 + $0x1a0] ss:$8 sps:$4 sm:$0xff]   ;;  %v6149_v17 = vld [vmem:[%s7328_s29 + $0x94] ss:$8 sps:$4 sm:$0xff]  }
 0x919   : > { %4372 = vmatprep.subr.bf16.mxu0 %v6065_v12  ;;  %4415 = vmatprep.subr.bf16.mxu1 %v6068_v20  ;;  %v6152_v12 = vld [vmem:[%s7328_s29 + $0x194] ss:$8 sps:$4 sm:$0xff]   ;;  %v6147_v20 = vld [vmem:[%s7328_s29 + $0x90] ss:$8 sps:$4 sm:$0xff]  }
 0x91b   : > { %3388 = vmatmul.mubr.bf16.vlgmr.msra.gmra.mxu0 %v7674_v26  ;;  %3431 = vmatmul.mubr.bf16.vlgmr.msra.gmra.mxu1 %v7674_v26  ;;  %v6083_v26 = vld [vmem:[%s7328_s29 + $0x44] ss:$8 sps:$4 sm:$0xff]  }
 0x91c   : > { %4373 = vmatpush1.bf16.msra.mxu0 %v6063_v23  ;;  %4416 = vmatpush1.bf16.msra.mxu1 %v6066_v24  ;;  %v6150_v23 = vld [vmem:[%s7328_s29 + $0x190] ss:$8 sps:$4 sm:$0xff]   ;;  %v6155_v24 = vld [vmem:[%s7328_s29 + $0x84] ss:$8 sps:$4 sm:$0xff]  }
 0x91d   : > { %4374 = vmatprep.subr.bf16.mxu0 %v6071_v19  ;;  %4417 = vmatprep.subr.bf16.mxu1 %v6074_v18  ;;  %v6158_v19 = vld [vmem:[%s7328_s29 + $0x184] ss:$8 sps:$4 sm:$0xff]   ;;  %v6153_v18 = vld [vmem:[%s7328_s29 + $0x80] ss:$8 sps:$4 sm:$0xff]  }
 0x920   : > { %4375 = vmatpush1.bf16.msra.mxu0 %v6069_v27  ;;  %4418 = vmatpush1.bf16.msra.mxu1 %v6072_v28  ;;  %v6156_v27 = vld [vmem:[%s7328_s29 + $0x180] ss:$8 sps:$4 sm:$0xff]   ;;  %v6161_v28 = vld [vmem:[%s7328_s29 + $0x274] ss:$8 sps:$4 sm:$0xff]  }
 0x921   : > { %4376 = vmatprep.subr.bf16.mxu0 %v6077_v29  ;;  %4419 = vmatprep.subr.bf16.mxu1 %v6080_v30  ;;  %v6164_v29 = vld [vmem:[%s7328_s29 + $0x374] ss:$8 sps:$4 sm:$0xff]   ;;  %v2599_v30 = vsub.s32 2, %v7453_v61 }
 0x924   : > { %4377 = vmatpush1.bf16.msra.mxu0 %v6075_v31  ;;  %4420 = vmatpush1.bf16.msra.mxu1 %v6078_v32  ;;  %v7804_v31 = vld [vmem:[%s7345_s2] sm:$0xff]  ;;  %v2603_v32 = vsub.s32 3, %v7453_v61 }
 0x925   : > { %4378 = vmatprep.subr.bf16.mxu0 %v6083_v26  ;;  %4421 = vmatprep.subr.bf16.mxu1 %v6086_v33  ;;  %v2592_v26 = vrot.slane %v7804_v31, %v7459_v63  ;;  %v2600_v33 = vrot.slane %v7804_v31, %v2599_v30 }
 0x928   : > { %4379 = vmatpush1.bf16.msra.mxu0 %v6081_v34  ;;  %4422 = vmatpush1.bf16.msra.mxu1 %v6084_v35 }
 0x929   : > { %4380 = vmatprep.subr.bf16.mxu0 %v6089_v36  ;;  %4423 = vmatprep.subr.bf16.mxu1 %v6092_v37  ;;  %v2596_v36 = vrot.slane %v7804_v31, %v7456_v62  ;;  %v2604_v37 = vrot.slane %v7804_v31, %v2603_v32 }
 0x92c   : > { %4381 = vmatpush1.bf16.msra.mxu0 %v6087_v38  ;;  %4424 = vmatpush1.bf16.msra.mxu1 %v6090_v39 }
 0x92d   : > { %4382 = vmatprep.subr.bf16.mxu0 %v6095_v40  ;;  %4425 = vmatprep.subr.bf16.mxu1 %v6098_v41 }
 0x930   : > { %4383 = vmatpush1.bf16.msra.mxu0 %v6093_v42  ;;  %4426 = vmatpush1.bf16.msra.mxu1 %v6096_v43 }
 0x931   : > { %4384 = vmatprep.subr.bf16.mxu0 %v6101_v44  ;;  %4427 = vmatprep.subr.bf16.mxu1 %v6104_v45 }
 0x934   : > { %4385 = vmatpush1.bf16.msra.mxu0 %v6099_v46  ;;  %4428 = vmatpush1.bf16.msra.mxu1 %v6102_v47 }
 0x935   : > { %4386 = vmatprep.subr.bf16.mxu0 %v6107_v48  ;;  %4429 = vmatprep.subr.bf16.mxu1 %v6110_v49 }
 0x938   : > { %4387 = vmatpush1.bf16.msra.mxu0 %v6105_v50  ;;  %4430 = vmatpush1.bf16.msra.mxu1 %v6108_v52 }
 0x939   : > { %4388 = vmatprep.subr.bf16.mxu0 %v6113_v54  ;;  %4431 = vmatprep.subr.bf16.mxu1 %v6116_v55 }
 0x93c   : > { %4389 = vmatpush2.bf16.msra.mxu0 %v6111_v56  ;;  %4432 = vmatpush2.bf16.msra.mxu1 %v6114_v57 }
 0x93d   : > { %4390 = vmatprep.subr.bf16.mxu0 %v6119_v58  ;;  %4433 = vmatprep.subr.bf16.mxu1 %v6122_v60 }
 0x940   : > { %4391 = vmatpush2.bf16.msra.mxu0 %v6117_v1  ;;  %4434 = vmatpush2.bf16.msra.mxu1 %v6120_v2 }
 0x941   : > { %4392 = vmatprep.subr.bf16.mxu0 %v6125_v22  ;;  %4435 = vmatprep.subr.bf16.mxu1 %v6128_v3 }
 0x944   : > { %4393 = vmatpush2.bf16.msra.mxu0 %v6123_v4  ;;  %4436 = vmatpush2.bf16.msra.mxu1 %v6126_v5 }
 0x945   : > { %4394 = vmatprep.subr.bf16.mxu0 %v6131_v21  ;;  %4437 = vmatprep.subr.bf16.mxu1 %v6134_v6 }
 0x948   : > { %4395 = vmatpush2.bf16.msra.mxu0 %v6129_v7  ;;  %4438 = vmatpush2.bf16.msra.mxu1 %v6132_v8 }
 0x949   : > { %4396 = vmatprep.subr.bf16.mxu0 %v6137_v9  ;;  %4439 = vmatprep.subr.bf16.mxu1 %v6140_v10 }
 0x94c   : > { %4397 = vmatpush2.bf16.msra.mxu0 %v6135_v11  ;;  %4440 = vmatpush2.bf16.msra.mxu1 %v6138_v14 }
 0x94d   : > { %4398 = vmatprep.subr.bf16.mxu0 %v6143_v15  ;;  %4441 = vmatprep.subr.bf16.mxu1 %v6146_v13 }
 0x950   : > { %4399 = vmatpush2.bf16.msra.mxu0 %v6141_v25  ;;  %4442 = vmatpush2.bf16.msra.mxu1 %v6144_v16 }
 0x951   : > { %4400 = vmatprep.subr.bf16.mxu0 %v6149_v17  ;;  %4443 = vmatprep.subr.bf16.mxu1 %v6152_v12 }
 0x954   : > { %4401 = vmatpush2.bf16.msra.mxu0 %v6147_v20  ;;  %4444 = vmatpush2.bf16.msra.mxu1 %v6150_v23 }
 0x955   : > { %4402 = vmatprep.subr.bf16.mxu0 %v6155_v24  ;;  %4445 = vmatprep.subr.bf16.mxu1 %v6158_v19 }
 0x958   : > { %4403 = vmatpush2.bf16.msra.mxu0 %v6153_v18  ;;  %4446 = vmatpush2.bf16.msra.mxu1 %v6156_v27 }
 0x959   : > { %4458 = vmatprep.subr.bf16.mxu0 %v6161_v28  ;;  %4501 = vmatprep.subr.bf16.mxu1 %v6164_v29 }
 0x99b   : > { %v3303_v34 = vpop.f32.mrf.mxu0  ;;  %v3346_v35 = vpop.f32.mrf.mxu1 }
 0x99c   : > { %v7813_v38 = vadd.f32 %v3303_v34, %v2592_v26  ;;  %v7815_v39 = vadd.f32 %v3346_v35, %v2600_v33 }
 0x99d   : > { %v3305_v40 = vpop.f32.mrf.mxu0  ;;  %v3348_v41 = vpop.f32.mrf.mxu1 }
 0x99e   : > { %v3457_v42 = vmul.f32 %v7813_v38, %v7813_v38  ;;  %v3459_v43 = vmul.f32 %v7815_v39, %v7815_v39  ;;  %v7821_v44 = vadd.f32 %v3305_v40, %v2596_v36  ;;  %v7823_v45 = vadd.f32 %v3348_v41, %v2604_v37 }
 0x99f   : > { %v3307_v46 = vpop.f32.mrf.mxu0  ;;  %v3350_v47 = vpop.f32.mrf.mxu1 }
 0x9a0   : > { %v3473_v48 = vmul.f32 %v3457_v42, %v7813_v38  ;;  %v3475_v49 = vmul.f32 %v3459_v43, %v7815_v39  ;;  %v3308_v50 = vadd.f32 %v3307_v46, %v2592_v26  ;;  %v7827_v52 = vadd.f32 %v3350_v47, %v2600_v33 }
 0x9a1   : > { %v3458_v54 = vmul.f32 %v7821_v44, %v7821_v44  ;;  %v3460_v55 = vmul.f32 %v7823_v45, %v7823_v45  ;;  %v3309_v56 = vpop.f32.mrf.mxu0  ;;  %v3352_v1 = vpop.f32.mrf.mxu1 }
 0x9a2   : > { %v3489_v57 = vmul.f32 0.044715, %v3473_v48  ;;  %v3491_v58 = vmul.f32 0.044715, %v3475_v49  ;;  %v3465_v60 = vmul.f32 %v3308_v50, %v3308_v50  ;;  %v3467_v3 = vmul.f32 %v7827_v52, %v7827_v52 }
 0x9a3   : > { %v3474_v2 = vmul.f32 %v3458_v54, %v7821_v44  ;;  %v3476_v22 = vmul.f32 %v3460_v55, %v7823_v45  ;;  %v3310_v21 = vadd.f32 %v3309_v56, %v2596_v36  ;;  %v3353_v9 = vadd.f32 %v3352_v1, %v2604_v37 }
 0x9a4   : > { %v3505_v4 = vadd.f32 %v3489_v57, %v7813_v38  ;;  %v3481_v5 = vmul.f32 %v3465_v60, %v3308_v50  ;;  %v3483_v8 = vmul.f32 %v3467_v3, %v7827_v52  ;;  %v3507_v11 = vadd.f32 %v3491_v58, %v7815_v39 }
 0x9a5   : > { %v3490_v6 = vmul.f32 0.044715, %v3474_v2  ;;  %v3492_v7 = vmul.f32 0.044715, %v3476_v22  ;;  %v3466_v15 = vmul.f32 %v3310_v21, %v3310_v21  ;;  %v3468_v17 = vmul.f32 %v3353_v9, %v3353_v9 }
 0x9a6   : > { %v3521_v10 = vmul.f32 0.7978846, %v3505_v4  ;;  %v3497_v14 = vmul.f32 0.044715, %v3481_v5  ;;  %v3499_v16 = vmul.f32 0.044715, %v3483_v8 }
 0x9a7   : > { %v3506_v13 = vadd.f32 %v3490_v6, %v7821_v44  ;;  %v3508_v25 = vadd.f32 %v3492_v7, %v7823_v45  ;;  %v3482_v20 = vmul.f32 %v3466_v15, %v3310_v21  ;;  %v3484_v28 = vmul.f32 %v3468_v17, %v3353_v9  ;;  %v6165_v17 = vld [vmem:[%s7328_s29 + $0x260] ss:$8 sps:$4 sm:$0xff]  }
 0x9a8   : > { %v3513_v12 = vadd.f32 %v3497_v14, %v3308_v50  ;;  %v3515_v19 = vadd.f32 %v3499_v16, %v7827_v52  ;;  %6279 = vtanh.f32 %v3521_v10  ;;  %v3523_v29 = vmul.f32 0.7978846, %v3507_v11  ;;  %v6170_v16 = vld [vmem:[%s7328_s29 + $0x364] ss:$8 sps:$4 sm:$0xff]  }
 0x9a9   : > { %v3522_v23 = vmul.f32 0.7978846, %v3506_v13  ;;  %v3524_v24 = vmul.f32 0.7978846, %v3508_v25  ;;  %v3498_v27 = vmul.f32 0.044715, %v3482_v20 }
 0x9aa   : > { %v3529_v18 = vmul.f32 0.7978846, %v3513_v12  ;;  %v3531_v30 = vmul.f32 0.7978846, %v3515_v19  ;;  %v3500_v26 = vmul.f32 0.044715, %v3484_v28 }
 0x9ab   : > { %6281 = vtanh.f32 %v3522_v23  ;;  %v3514_v32 = vadd.f32 %v3498_v27, %v3310_v21  ;;  %v3441_v49 = vmul.f32 0.5, %v7813_v38  ;;  %v3449_v54 = vmul.f32 0.5, %v3308_v50  ;;  %v6167_v13 = vld [vmem:[%s7328_s29 + $0x264] ss:$8 sps:$4 sm:$0xff]   ;;  %v6173_v12 = vld [vmem:[%s7328_s29 + $0x254] ss:$8 sps:$4 sm:$0xff]  }
 0x9ac   : > { %6283 = vtanh.f32 %v3524_v24  ;;  %v3516_v34 = vadd.f32 %v3500_v26, %v3353_v9  ;;  %v3442_v57 = vmul.f32 0.5, %v7821_v44  ;;  %v3450_v58 = vmul.f32 0.5, %v3310_v21  ;;  %v6168_v20 = vld [vmem:[%s7328_s29 + $0x360] ss:$8 sps:$4 sm:$0xff]   ;;  %v6176_v23 = vld [vmem:[%s7328_s29 + $0x354] ss:$8 sps:$4 sm:$0xff]  }
 0x9ad   : > { %6285 = vtanh.f32 %v3529_v18  ;;  %v3530_v33 = vmul.f32 0.7978846, %v3514_v32  ;;  %v3451_v22 = vmul.f32 0.5, %v7827_v52  ;;  %v3444_v3 = vmul.f32 0.5, %v7823_v45  ;;  %v6159_v52 = vld [vmem:[%s7328_s29 + $0x270] ss:$8 sps:$4 sm:$0xff]  }
 0x9ae   : > { %6287 = vtanh.f32 %v3531_v30  ;;  %v3532_v35 = vmul.f32 0.7978846, %v3516_v34  ;;  %v3452_v50 = vmul.f32 0.5, %v3353_v9  ;;  %v3443_v44 = vmul.f32 0.5, %v7815_v39  ;;  %v6162_v9 = vld [vmem:[%s7328_s29 + $0x370] ss:$8 sps:$4 sm:$0xff]  }
 0x9af   : > { %6289 = vtanh.f32 %v3523_v29  ;;  %v6171_v24 = vld [vmem:[%s7328_s29 + $0x250] ss:$8 sps:$4 sm:$0xff]   ;;  %v6179_v19 = vld [vmem:[%s7328_s29 + $0x244] ss:$8 sps:$4 sm:$0xff]   ;;  %v6177_v28 = vld [vmem:[%s7328_s29 + $0x240] ss:$8 sps:$4 sm:$0xff]  }
 0x9b0   : > { %6291 = vtanh.f32 %v3530_v33  ;;  %v6174_v18 = vld [vmem:[%s7328_s29 + $0x350] ss:$8 sps:$4 sm:$0xff]   ;;  %v6182_v27 = vld [vmem:[%s7328_s29 + $0x344] ss:$8 sps:$4 sm:$0xff]   ;;  %v6185_v29 = vld [vmem:[%s7328_s29 + $0x234] ss:$8 sps:$4 sm:$0xff]  }
 0x9b1   : > { %6293 = vtanh.f32 %v3532_v35  ;;  %v6180_v30 = vld [vmem:[%s7328_s29 + $0x340] ss:$8 sps:$4 sm:$0xff]   ;;  %v6188_v32 = vld [vmem:[%s7328_s29 + $0x334] ss:$8 sps:$4 sm:$0xff]   ;;  %v6183_v26 = vld [vmem:[%s7328_s29 + $0x230] ss:$8 sps:$4 sm:$0xff]  }
 0x9b2   : > { %v6191_v33 = vld [vmem:[%s7328_s29 + $0x224] ss:$8 sps:$4 sm:$0xff]   ;;  %v6186_v34 = vld [vmem:[%s7328_s29 + $0x330] ss:$8 sps:$4 sm:$0xff]   ;;  %v2607_v35 = vsub.s32 4, %v7453_v61 }
 0x9b5   : > { %v6280_v36 = vpop.eup %6279 }
 0x9b6   : > { %v3553_v55 = vadd.f32 1.0, %v6280_v36  ;;  %v2615_v36 = vsub.s32 6, %v7453_v61 }
 0x9b8   : > { %v6282_v37 = vpop.eup %6281  ;;  %v3569_v21 = vmul.f32 %v3553_v55, %v3441_v49  ;;  %v6200_v49 = vld [vmem:[%s7328_s29 + $0x314] ss:$8 sps:$4 sm:$0xff]  }
 0x9b9   : > { %v6284_v40 = vpop.eup %6283  ;;  %v3554_v47 = vadd.f32 1.0, %v6282_v37  ;;  %v6194_v37 = vld [vmem:[%s7328_s29 + $0x324] ss:$8 sps:$4 sm:$0xff]  }
 0x9ba   : > { %v6286_v41 = vpop.eup %6285  ;;  %v3556_v1 = vadd.f32 1.0, %v6284_v40  ;;  %v6189_v40 = vld [vmem:[%s7328_s29 + $0x220] ss:$8 sps:$4 sm:$0xff]  }
 0x9bb   : > { %v6288_v42 = vpop.eup %6287  ;;  %v3561_v43 = vadd.f32 1.0, %v6286_v41  ;;  %v3570_v6 = vmul.f32 %v3554_v47, %v3442_v57  ;;  %v6197_v41 = vld [vmem:[%s7328_s29 + $0x214] ss:$8 sps:$4 sm:$0xff]   ;;  %v2608_v47 = vrot.slane %v7804_v31, %v2607_v35 }
 0x9bc   : > { %v6290_v46 = vpop.eup %6289  ;;  %v3563_v56 = vadd.f32 1.0, %v6288_v42  ;;  %v3572_v11 = vmul.f32 %v3556_v1, %v3444_v3  ;;  %v2611_v42 = vsub.s32 5, %v7453_v61 }
 0x9bd   : > { %v6292_v48 = vpop.eup %6291  ;;  %v3577_v4 = vmul.f32 %v3561_v43, %v3449_v54  ;;  %v3555_v5 = vadd.f32 1.0, %v6290_v46  ;;  %v2619_v43 = vsub.s32 7, %v7453_v61  ;;  %v6192_v46 = vld [vmem:[%s7328_s29 + $0x320] ss:$8 sps:$4 sm:$0xff]   ;;  %v6195_v54 = vld [vmem:[%s7328_s29 + $0x210] ss:$8 sps:$4 sm:$0xff]  }
 0x9be   : > { %v3562_v60 = vadd.f32 1.0, %v6292_v48  ;;  %v6294_v2 = vpop.eup %6293  ;;  %v3579_v8 = vmul.f32 %v3563_v56, %v3451_v22  ;;  %v2616_v48 = vrot.slane %v7804_v31, %v2615_v36  ;;  %v2612_v57 = vrot.slane %v7804_v31, %v2611_v42 }
 0x9bf   : > { %v3564_v7 = vadd.f32 1.0, %v6294_v2  ;;  %v3585_v45 = vpack.c.bf16 %v3577_v4, %v3569_v21  ;;  %v3571_v15 = vmul.f32 %v3555_v5, %v3443_v44  ;;  %v2620_v61 = vrot.slane %v7804_v31, %v2619_v43  ;;  %v6198_v2 = vld [vmem:[%s7328_s29 + $0x310] ss:$8 sps:$4 sm:$0xff]   ;;  %v6206_v4 = vld [vmem:[%s7328_s29 + $0x304] ss:$8 sps:$4 sm:$0xff]  }
 0x9c0   : > { %v3578_v38 = vmul.f32 %v3562_v60, %v3450_v58  ;;  %v6203_v58 = vld [vmem:[%s7328_s29 + $0x204] ss:$8 sps:$4 sm:$0xff]   ;;  %v6201_v31 = vld [vmem:[%s7328_s29 + $0x200] ss:$8 sps:$4 sm:$0xff]   ;;  %v6209_v21 = vld [vmem:[%s7328_s29 + $0x2f4] ss:$8 sps:$4 sm:$0xff]  }
 0x9c1   : > { %v3580_v14 = vmul.f32 %v3564_v7, %v3452_v50  ;;  %v3587_v39 = vpack.c.bf16 %v3579_v8, %v3571_v15 }
 0x9c2   : > { %v3586_v10 = vpack.c.bf16 %v3578_v38, %v3570_v6 }
 0x9c3   : > { %v3588_v25 = vpack.c.bf16 %v3580_v14, %v3572_v11 }
 0x9c4   : > { %4404 = vmatprep.mubr.bf16.mxu0 %v3586_v10 }
 0x9c5   : > { %4405 = vmatmul.mubr.bf16.vlgmr.msra.gmra.mxu0 %v3585_v45  ;;  %4447 = vmatprep.mubr.bf16.mxu1 %v3588_v25  ;;  %v6212_v25 = vld [vmem:[%s7328_s29 + $0x3f4] ss:$8 sps:$4 sm:$0xff]  }
 0x9c6   : > { %4459 = vmatpush1.bf16.msra.mxu0 %v6159_v52  ;;  %4448 = vmatmul.mubr.bf16.vlgmr.msra.gmra.mxu1 %v3587_v39  ;;  %v6204_v52 = vld [vmem:[%s7328_s29 + $0x300] ss:$8 sps:$4 sm:$0xff]  }
 0x9c7   : > { %4460 = vmatprep.subr.bf16.mxu0 %v6167_v13  ;;  %4502 = vmatpush1.bf16.msra.mxu1 %v6162_v9 }
 0x9c8   : > { %4503 = vmatprep.subr.bf16.mxu1 %v6170_v16 }
 0x9ca   : > { %4461 = vmatpush1.bf16.msra.mxu0 %v6165_v17 }
 0x9cb   : > { %4462 = vmatprep.subr.bf16.mxu0 %v6173_v12  ;;  %4504 = vmatpush1.bf16.msra.mxu1 %v6168_v20  ;;  %v6207_v12 = vld [vmem:[%s7328_s29 + $0x2f0] ss:$8 sps:$4 sm:$0xff]  }
 0x9cc   : > { %4505 = vmatprep.subr.bf16.mxu1 %v6176_v23 }
 0x9ce   : > { %4463 = vmatpush1.bf16.msra.mxu0 %v6171_v24 }
 0x9cf   : > { %4464 = vmatprep.subr.bf16.mxu0 %v6179_v19  ;;  %4506 = vmatpush1.bf16.msra.mxu1 %v6174_v18  ;;  %v6215_v19 = vld [vmem:[%s7328_s29 + $0x2e4] ss:$8 sps:$4 sm:$0xff]  }
 0x9d0   : > { %4507 = vmatprep.subr.bf16.mxu1 %v6182_v27 }
 0x9d2   : > { %4465 = vmatpush1.bf16.msra.mxu0 %v6177_v28 }
 0x9d3   : > { %4466 = vmatprep.subr.bf16.mxu0 %v6185_v29  ;;  %4508 = vmatpush1.bf16.msra.mxu1 %v6180_v30  ;;  %v6210_v29 = vld [vmem:[%s7328_s29 + $0x3f0] ss:$8 sps:$4 sm:$0xff]  }
 0x9d4   : > { %4509 = vmatprep.subr.bf16.mxu1 %v6188_v32 }
 0x9d6   : > { %4467 = vmatpush1.bf16.msra.mxu0 %v6183_v26 }
 0x9d7   : > { %4468 = vmatprep.subr.bf16.mxu0 %v6191_v33  ;;  %4510 = vmatpush1.bf16.msra.mxu1 %v6186_v34  ;;  %v6218_v34 = vld [vmem:[%s7328_s29 + $0x3e4] ss:$8 sps:$4 sm:$0xff]  }
 0x9d8   : > { %4511 = vmatprep.subr.bf16.mxu1 %v6194_v37 }
 0x9da   : > { %4469 = vmatpush1.bf16.msra.mxu0 %v6189_v40 }
 0x9db   : > { %v3389_v55 = vpop.f32.mrf.mxu0  ;;  %v3432_v56 = vpop.f32.mrf.mxu1  ;;  %4470 = vmatprep.subr.bf16.mxu0 %v6197_v41  ;;  %4512 = vmatpush1.bf16.msra.mxu1 %v6192_v46  ;;  %v6213_v41 = vld [vmem:[%s7328_s29 + $0x2e0] ss:$8 sps:$4 sm:$0xff]  }
 0x9dc   : > { %v7882_v60 = vadd.f32 %v3389_v55, %v2608_v47  ;;  %v7884_v1 = vadd.f32 %v3432_v56, %v2616_v48  ;;  %4513 = vmatprep.subr.bf16.mxu1 %v6200_v49  ;;  %v6216_v55 = vld [vmem:[%s7328_s29 + $0x3e0] ss:$8 sps:$4 sm:$0xff]  }
 0x9dd   : > { %v3391_v22 = vpop.f32.mrf.mxu0  ;;  %v3434_v3 = vpop.f32.mrf.mxu1 }
 0x9de   : > { %v3461_v5 = vmul.f32 %v7882_v60, %v7882_v60  ;;  %v3463_v6 = vmul.f32 %v7884_v1, %v7884_v1  ;;  %4471 = vmatpush1.bf16.msra.mxu0 %v6195_v54  ;;  %v7893_v38 = vadd.f32 %v3391_v22, %v2612_v57  ;;  %v7895_v50 = vadd.f32 %v3434_v3, %v2620_v61 }
 0x9df   : > { %v3393_v7 = vpop.f32.mrf.mxu0  ;;  %v3436_v44 = vpop.f32.mrf.mxu1  ;;  %4472 = vmatprep.subr.bf16.mxu0 %v6203_v58  ;;  %4514 = vmatpush1.bf16.msra.mxu1 %v6198_v2  ;;  %v6224_v58 = vld [vmem:[%s7328_s29 + $0x3d4] ss:$8 sps:$4 sm:$0xff]  }
 0x9e0   : > { %v3477_v8 = vmul.f32 %v3461_v5, %v7882_v60  ;;  %v3479_v10 = vmul.f32 %v3463_v6, %v7884_v1  ;;  %v7900_v11 = vadd.f32 %v3393_v7, %v2608_v47  ;;  %v7902_v14 = vadd.f32 %v3436_v44, %v2616_v48  ;;  %4515 = vmatprep.subr.bf16.mxu1 %v6206_v4  ;;  %v6221_v48 = vld [vmem:[%s7328_s29 + $0x2d4] ss:$8 sps:$4 sm:$0xff]   ;;  %v6219_v4 = vld [vmem:[%s7328_s29 + $0x2d0] ss:$8 sps:$4 sm:$0xff]  }
 0x9e1   : > { %v3462_v45 = vmul.f32 %v7893_v38, %v7893_v38  ;;  %v3464_v15 = vmul.f32 %v7895_v50, %v7895_v50  ;;  %v3395_v13 = vpop.f32.mrf.mxu0  ;;  %v3438_v17 = vpop.f32.mrf.mxu1 }
 0x9e2   : > { %v3493_v9 = vmul.f32 0.044715, %v3477_v8  ;;  %v3495_v39 = vmul.f32 0.044715, %v3479_v10  ;;  %v3469_v16 = vmul.f32 %v7900_v11, %v7900_v11  ;;  %4473 = vmatpush1.bf16.msra.mxu0 %v6201_v31  ;;  %v3471_v24 = vmul.f32 %v7902_v14, %v7902_v14  ;;  %v6227_v31 = vld [vmem:[%s7328_s29 + $0x2c4] ss:$8 sps:$4 sm:$0xff]  }
 0x9e3   : > { %v3478_v20 = vmul.f32 %v3462_v45, %v7893_v38  ;;  %v3480_v23 = vmul.f32 %v3464_v15, %v7895_v50  ;;  %4474 = vmatprep.subr.bf16.mxu0 %v6209_v21  ;;  %4516 = vmatpush1.bf16.msra.mxu1 %v6204_v52  ;;  %v7920_v28 = vadd.f32 %v3395_v13, %v2612_v57  ;;  %v6222_v21 = vld [vmem:[%s7328_s29 + $0x3d0] ss:$8 sps:$4 sm:$0xff]   ;;  %v6230_v8 = vld [vmem:[%s7328_s29 + $0x3c4] ss:$8 sps:$4 sm:$0xff]   ;;  %v6225_v45 = vld [vmem:[%s7328_s29 + $0x2c0] ss:$8 sps:$4 sm:$0xff]  }
 0x9e4   : > { %v3509_v18 = vadd.f32 %v3493_v9, %v7882_v60  ;;  %v3485_v27 = vmul.f32 %v3469_v16, %v7900_v11  ;;  %v3487_v26 = vmul.f32 %v3471_v24, %v7902_v14  ;;  %v7924_v33 = vadd.f32 %v3438_v17, %v2620_v61  ;;  %4517 = vmatprep.subr.bf16.mxu1 %v6212_v25  ;;  %v6233_v15 = vld [vmem:[%s7328_s29 + $0x2b4] ss:$8 sps:$4 sm:$0xff]   ;;  %v6228_v25 = vld [vmem:[%s7328_s29 + $0x3c0] ss:$8 sps:$4 sm:$0xff]   ;;  %v6239_v16 = vld [vmem:[%s7328_s29 + $0x2a4] ss:$8 sps:$4 sm:$0xff]  }
 0x9e5   : > { %v3494_v30 = vmul.f32 0.044715, %v3478_v20  ;;  %v3496_v32 = vmul.f32 0.044715, %v3480_v23  ;;  %v3511_v36 = vadd.f32 %v3495_v39, %v7884_v1  ;;  %v3470_v40 = vmul.f32 %v7920_v28, %v7920_v28  ;;  %v6236_v9 = vld [vmem:[%s7328_s29 + $0x3b4] ss:$8 sps:$4 sm:$0xff]  }
 0x9e6   : > { %v3525_v35 = vmul.f32 0.7978846, %v3509_v18  ;;  %v3501_v37 = vmul.f32 0.044715, %v3485_v27  ;;  %4475 = vmatpush2.bf16.msra.mxu0 %v6207_v12  ;;  %v3503_v46 = vmul.f32 0.044715, %v3487_v26  ;;  %v3472_v47 = vmul.f32 %v7924_v33, %v7924_v33 }
 0x9e7   : > { %v3510_v42 = vadd.f32 %v3494_v30, %v7893_v38  ;;  %v3512_v43 = vadd.f32 %v3496_v32, %v7895_v50  ;;  %4476 = vmatprep.subr.bf16.mxu0 %v6215_v19  ;;  %v3486_v54 = vmul.f32 %v3470_v40, %v7920_v28  ;;  %4518 = vmatpush2.bf16.msra.mxu1 %v6210_v29  ;;  %v3527_v5 = vmul.f32 0.7978846, %v3511_v36  ;;  %v6231_v39 = vld [vmem:[%s7328_s29 + $0x2b0] ss:$8 sps:$4 sm:$0xff]   ;;  %v6242_v12 = vld [vmem:[%s7328_s29 + $0x3a4] ss:$8 sps:$4 sm:$0xff]  }
 0x9e8   : > { %v3517_v49 = vadd.f32 %v3501_v37, %v7900_v11  ;;  %v3519_v61 = vadd.f32 %v3503_v46, %v7902_v14  ;;  %4519 = vmatprep.subr.bf16.mxu1 %v6218_v34  ;;  %6295 = vtanh.f32 %v3525_v35  ;;  %v3488_v3 = vmul.f32 %v3472_v47, %v7924_v33  ;;  %v6234_v17 = vld [vmem:[%s7328_s29 + $0x3b0] ss:$8 sps:$4 sm:$0xff]   ;;  %v6237_v20 = vld [vmem:[%s7328_s29 + $0x2a0] ss:$8 sps:$4 sm:$0xff]   ;;  %v6245_v24 = vld [vmem:[%s7328_s29 + $0x294] ss:$8 sps:$4 sm:$0xff]  }
 0x9e9   : > { %v3526_v56 = vmul.f32 0.7978846, %v3510_v42  ;;  %v3528_v57 = vmul.f32 0.7978846, %v3512_v43  ;;  %v3502_v22 = vmul.f32 0.044715, %v3486_v54 }
 0x9ea   : > { %v3533_v2 = vmul.f32 0.7978846, %v3517_v49  ;;  %4477 = vmatpush2.bf16.msra.mxu0 %v6213_v41  ;;  %v3535_v6 = vmul.f32 0.7978846, %v3519_v61  ;;  %v3504_v44 = vmul.f32 0.044715, %v3488_v3 }
 0x9eb   : > { %6297 = vtanh.f32 %v3526_v56  ;;  %4478 = vmatprep.subr.bf16.mxu0 %v6221_v48  ;;  %v3518_v7 = vadd.f32 %v3502_v22, %v7920_v28  ;;  %4520 = vmatpush2.bf16.msra.mxu1 %v6216_v55  ;;  %v6240_v18 = vld [vmem:[%s7328_s29 + $0x3a0] ss:$8 sps:$4 sm:$0xff]   ;;  %v6248_v29 = vld [vmem:[%s7328_s29 + $0x394] ss:$8 sps:$4 sm:$0xff]   ;;  %v6243_v32 = vld [vmem:[%s7328_s29 + $0x290] ss:$8 sps:$4 sm:$0xff]  }
 0x9ec   : > { %6299 = vtanh.f32 %v3528_v57  ;;  %4521 = vmatprep.subr.bf16.mxu1 %v6224_v58  ;;  %v3520_v52 = vadd.f32 %v3504_v44, %v7924_v33  ;;  %v6251_v34 = vld [vmem:[%s7328_s29 + $0x284] ss:$8 sps:$4 sm:$0xff]   ;;  %v6246_v37 = vld [vmem:[%s7328_s29 + $0x390] ss:$8 sps:$4 sm:$0xff]   ;;  %v3445_v42 = vmul.f32 0.5, %v7882_v60  ;;  %v3453_v43 = vmul.f32 0.5, %v7900_v11 }
 0x9ed   : > { %6301 = vtanh.f32 %v3533_v2  ;;  %v3534_v10 = vmul.f32 0.7978846, %v3518_v7  ;;  %v6254_v46 = vld [vmem:[%s7328_s29 + $0x384] ss:$8 sps:$4 sm:$0xff]   ;;  %v6249_v49 = vld [vmem:[%s7328_s29 + $0x280] ss:$8 sps:$4 sm:$0xff]  }
 0x9ee   : > { %6303 = vtanh.f32 %v3535_v6  ;;  %4479 = vmatpush2.bf16.msra.mxu0 %v6219_v4  ;;  %v3536_v13 = vmul.f32 0.7978846, %v3520_v52  ;;  %v3446_v54 = vmul.f32 0.5, %v7893_v38  ;;  %v3454_v55 = vmul.f32 0.5, %v7920_v28  ;;  %v6252_v22 = vld [vmem:[%s7328_s29 + $0x380] ss:$8 sps:$4 sm:$0xff]  }
 0x9ef   : > { %6305 = vtanh.f32 %v3527_v5  ;;  %4480 = vmatprep.subr.bf16.mxu0 %v6227_v31  ;;  %4522 = vmatpush2.bf16.msra.mxu1 %v6222_v21  ;;  %v3455_v58 = vmul.f32 0.5, %v7902_v14  ;;  %v3448_v60 = vmul.f32 0.5, %v7895_v50  ;;  %v3456_v5 = vmul.f32 0.5, %v7924_v33  ;;  %v1146_v52 = vld [vmem:[%s7350_s7] sm:$0x3] }
 0x9f0   : > { %6307 = vtanh.f32 %v3534_v10  ;;  %4523 = vmatprep.subr.bf16.mxu1 %v6230_v8  ;;  %v3447_v38 = vmul.f32 0.5, %v7884_v1 }
 0x9f1   : > { %6309 = vtanh.f32 %v3536_v13 }
 0x9f2   : > { %4481 = vmatpush2.bf16.msra.mxu0 %v6225_v45 }
 0x9f3   : > { %4482 = vmatprep.subr.bf16.mxu0 %v6233_v15  ;;  %4524 = vmatpush2.bf16.msra.mxu1 %v6228_v25  ;;  %v3725_v15 = vrot.slane %v1146_v52, %v7459_v63  ;;  %v3729_v25 = vrot.slane %v1146_v52, %v7456_v62 }
 0x9f4   : > { %4525 = vmatprep.subr.bf16.mxu1 %v6236_v9 }
 0x9f5   : > { %v6296_v23 = vpop.eup %6295 }
 0x9f6   : > { %4483 = vmatpush2.bf16.msra.mxu0 %v6231_v39  ;;  %v3557_v47 = vadd.f32 1.0, %v6296_v23 }
 0x9f7   : > { %4484 = vmatprep.subr.bf16.mxu0 %v6239_v16  ;;  %4526 = vmatpush2.bf16.msra.mxu1 %v6234_v17 }
 0x9f8   : > { %v6298_v19 = vpop.eup %6297  ;;  %4527 = vmatprep.subr.bf16.mxu1 %v6242_v12  ;;  %v3573_v28 = vmul.f32 %v3557_v47, %v3445_v42 }
 0x9f9   : > { %v6300_v27 = vpop.eup %6299  ;;  %v3558_v40 = vadd.f32 1.0, %v6298_v19 }
 0x9fa   : > { %v6302_v30 = vpop.eup %6301  ;;  %4485 = vmatpush2.bf16.msra.mxu0 %v6237_v20  ;;  %v3560_v57 = vadd.f32 1.0, %v6300_v27 }
 0x9fb   : > { %v6304_v26 = vpop.eup %6303  ;;  %4486 = vmatprep.subr.bf16.mxu0 %v6245_v24  ;;  %v3565_v35 = vadd.f32 1.0, %v6302_v30  ;;  %4528 = vmatpush2.bf16.msra.mxu1 %v6240_v18  ;;  %v3574_v3 = vmul.f32 %v3558_v40, %v3446_v54 }
 0x9fc   : > { %v6306_v36 = vpop.eup %6305  ;;  %4529 = vmatprep.subr.bf16.mxu1 %v6248_v29  ;;  %v3567_v48 = vadd.f32 1.0, %v6304_v26  ;;  %v3576_v7 = vmul.f32 %v3560_v57, %v3448_v60 }
 0x9fd   : > { %v6308_v41 = vpop.eup %6307  ;;  %v3581_v11 = vmul.f32 %v3565_v35, %v3453_v43  ;;  %v3559_v2 = vadd.f32 1.0, %v6306_v36 }
 0x9fe   : > { %4487 = vmatpush2.bf16.msra.mxu0 %v6243_v32  ;;  %v3566_v56 = vadd.f32 1.0, %v6308_v41  ;;  %v6310_v61 = vpop.eup %6309  ;;  %v3583_v31 = vmul.f32 %v3567_v48, %v3455_v58 }
 0x9ff   : > { %4488 = vmatprep.subr.bf16.mxu0 %v6251_v34  ;;  %4530 = vmatpush2.bf16.msra.mxu1 %v6246_v37  ;;  %v3568_v6 = vadd.f32 1.0, %v6310_v61  ;;  %v3589_v50 = vpack.c.bf16 %v3581_v11, %v3573_v28  ;;  %v3575_v21 = vmul.f32 %v3559_v2, %v3447_v38 }
 0xa00   : > { %v3582_v4 = vmul.f32 %v3566_v56, %v3454_v55  ;;  %4531 = vmatprep.subr.bf16.mxu1 %v6254_v46 }
 0xa01   : > { %v3584_v44 = vmul.f32 %v3568_v6, %v3456_v5  ;;  %v3591_v10 = vpack.c.bf16 %v3583_v31, %v3575_v21 }
 0xa02   : > { %4489 = vmatpush2.bf16.msra.mxu0 %v6249_v49  ;;  %v3590_v14 = vpack.c.bf16 %v3582_v4, %v3574_v3 }
 0xa03   : > { %4532 = vmatpush2.bf16.msra.mxu1 %v6252_v22  ;;  %v3592_v8 = vpack.c.bf16 %v3584_v44, %v3576_v7 }
 0xa04   : > { %4490 = vmatprep.mubr.bf16.mxu0 %v3590_v14 }
 0xa05   : > { %4491 = vmatmul.mubr.bf16.vlgmr.msra.gmra.mxu0 %v3589_v50  ;;  %4533 = vmatprep.mubr.bf16.mxu1 %v3592_v8 }
 0xa06   : > { %4534 = vmatmul.mubr.bf16.vlgmr.msra.gmra.mxu1 %v3591_v10 }
 0xa85   : > { %v4406_v33 = vpop.f32.mrf.mxu0 }
 0xa86   : > { %v4449_v1 = vpop.f32.mrf.mxu1  ;;  %v4407_v39 = vadd.f32 %v4406_v33, %v3725_v15 }
 0xa87   : > { %v4408_v45 = vpop.f32.mrf.mxu0 }
 0xa88   : > { %v4451_v13 = vpop.f32.mrf.mxu1  ;;  %v4409_v17 = vadd.f32 %v4408_v45, %v3729_v25  ;;  %v4450_v20 = vadd.f32 %v4449_v1, %v4407_v39 }
 0xa89   : > { %v4410_v9 = vpop.f32.mrf.mxu0 }
 0xa8a   : > { %v4453_v16 = vpop.f32.mrf.mxu1  ;;  %v4411_v23 = vadd.f32 %v4410_v9, %v3725_v15  ;;  %v4452_v18 = vadd.f32 %v4451_v13, %v4409_v17 }
 0xa8b   : > { %v4412_v12 = vpop.f32.mrf.mxu0 }
 0xa8c   : > { %v4455_v24 = vpop.f32.mrf.mxu1  ;;  %v4413_v27 = vadd.f32 %v4412_v12, %v3729_v25  ;;  %v4454_v26 = vadd.f32 %v4453_v16, %v4411_v23 }
 0xa8e   : > { %v4456_v40 = vadd.f32 %v4455_v24, %v4413_v27 }
 0xac5   : > { %v4492_v19 = vpop.f32.mrf.mxu0 }
 0xac6   : > { %v4493_v29 = vadd.f32 %v4492_v19, %v4450_v20  ;;  %v4535_v30 = vpop.f32.mrf.mxu1 }
 0xac7   : > { %v4494_v32 = vpop.f32.mrf.mxu0 }
 0xac8   : > { %v4536_v34 = vadd.f32 %v4535_v30, %v4493_v29  ;;  %v4495_v35 = vadd.f32 %v4494_v32, %v4452_v18  ;;  %v4537_v36 = vpop.f32.mrf.mxu1 }
 0xac9   : > { %v4496_v37 = vpop.f32.mrf.mxu0 }
 0xaca   : > { %v4544_v41 = vadd.f32 %v4536_v34, %v7558_v51  ;;  %v4538_v42 = vadd.f32 %v4537_v36, %v4495_v35  ;;  %v4497_v43 = vadd.f32 %v4496_v37, %v4454_v26  ;;  %v4539_v46 = vpop.f32.mrf.mxu1 }
 0xacb   : > { %v4498_v47 = vpop.f32.mrf.mxu0 }
 0xacc   : > { %4548 = vst [vmem:[#allocation2 + $0x10] sm:$0xff] %v4544_v41  ;;  %v4545_v48 = vadd.f32 %v4538_v42, %v7560_v53  ;;  %v4540_v49 = vadd.f32 %v4539_v46, %v4497_v43  ;;  %v4499_v54 = vadd.f32 %v4498_v47, %v4456_v40  ;;  %v4541_v55 = vpop.f32.mrf.mxu1 }
 0xace   : > { %4549 = vst [vmem:[#allocation2] sm:$0xff] %v4545_v48  ;;  %v4546_v56 = vadd.f32 %v4540_v49, %v7564_v59  ;;  %v4542_v57 = vadd.f32 %v4541_v55, %v4499_v54  ;;  %4555 = sbr.rel (%p5572_p7) target bundleno = 3290 (0xcda), region = 152 }
 0xad0   : > { %4550 = vst [vmem:[#allocation2 + $0x18] sm:$0xff] %v4546_v56  ;;  %v4547_v61 = vadd.f32 %v4542_v57, %v7566_v0 }
 0xad2   : > { %4551 = vst [vmem:[#allocation2 + $0x8] sm:$0xff] %v4547_v61 }
 0xad3   : > { %v4558_v51 = vadd.f32 %v4545_v48, %v4544_v41  ;;  %v4561_v58 = vadd.f32 %v4547_v61, %v4546_v56  ;;  %v6315_v60 = vld [vmem:[#allocation19 + $0x78] sm:$0xff]   ;;  %v6317_v44 = vld [vmem:[#allocation19 + $0x70] sm:$0xff]   ;;  %v6319_v21 = vld [vmem:[#allocation19 + $0x68] sm:$0xff]  }
 0xad4   : > { %5611 = vmatprep.subr.bf16.mxu0 %v6315_v60  ;;  %v6316_v7 = vld [vmem:[#allocation19 + $0x38] sm:$0xff]   ;;  %v6318_v50 = vld [vmem:[#allocation19 + $0x30] sm:$0xff]   ;;  %v6320_v8 = vld [vmem:[#allocation19 + $0x28] sm:$0xff]  }
 0xad5   : > { %4559 = vadd.xlane.f32.xlu0 %v4558_v51  ;;  %5612 = vmatpush3.bf16.msra.mxu0 %v6316_v7  ;;  %v6321_v10 = vld [vmem:[#allocation19 + $0x60] sm:$0xff]   ;;  %v6323_v52 = vld [vmem:[#allocation19 + $0x58] sm:$0xff]   ;;  %v6325_v45 = vld [vmem:[#allocation19 + $0x50] sm:$0xff]  }
 0xad6   : > { %5613 = vmatprep.subr.bf16.mxu0 %v6317_v44  ;;  %v6322_v33 = vld [vmem:[#allocation19 + $0x20] sm:$0xff]   ;;  %v6324_v1 = vld [vmem:[#allocation19 + $0x18] sm:$0xff]   ;;  %v6326_v15 = vld [vmem:[#allocation19 + $0x10] sm:$0xff]  }
 0xad7   : > { %v6327_v13 = vld [vmem:[#allocation19 + $0x48] sm:$0xff]   ;;  %v6329_v9 = vld [vmem:[#allocation19 + $0x40] sm:$0xff]   ;;  %v4556_v19 = vld [vmem:[%s8181_s1] sm:$0x3] }
 0xad8   : > { %v6328_v25 = vld [vmem:[#allocation19 + $0x8] sm:$0xff]   ;;  %v6330_v39 = vld [vmem:[#allocation19] sm:$0xff]   ;;  %v4557_v27 = vld [vmem:[%s8182_s16] sm:$0x3]  ;;  %v4594_v30 = vrot.slane %v4556_v19, %v7459_v63  ;;  %v4598_v32 = vrot.slane %v4556_v19, %v7456_v62 }
 0xad9   : > { %4562 = vadd.xlane.f32.xlu0 %v4561_v58  ;;  %5614 = vmatpush3.bf16.msra.mxu0 %v6318_v50  ;;  %v4609_v35 = vrot.slane %v4557_v27, %v7459_v63  ;;  %v4613_v36 = vrot.slane %v4557_v27, %v7456_v62 }
 0xada   : > { %5615 = vmatprep.subr.bf16.mxu0 %v6319_v21 }
 0xadd   : > { %5616 = vmatpush3.bf16.msra.mxu0 %v6320_v8 }
 0xade   : > { %5617 = vmatprep.subr.bf16.mxu0 %v6321_v10 }
 0xae1   : > { %5618 = vmatpush3.bf16.msra.mxu0 %v6322_v33 }
 0xae2   : > { %5619 = vmatprep.subr.bf16.mxu0 %v6323_v52 }
 0xae5   : > { %5620 = vmatpush3.bf16.msra.mxu0 %v6324_v1 }
 0xae6   : > { %5621 = vmatprep.subr.bf16.mxu0 %v6325_v45 }
 0xae9   : > { %5622 = vmatpush3.bf16.msra.mxu0 %v6326_v15 }
 0xaea   : > { %5623 = vmatprep.subr.bf16.mxu0 %v6327_v13 }
 0xaed   : > { %5624 = vmatpush3.bf16.msra.mxu0 %v6328_v25 }
 0xaee   : > { %5625 = vmatprep.subr.bf16.mxu0 %v6329_v9 }
 0xaf1   : > { %5626 = vmatpush3.bf16.msra.mxu0 %v6330_v39 }
 0xb5e   : > { %v4560_v53 = vpop.xlane.xlu0 %4559 }
 0xb5f   : > { %v4564_v11 = vmul.f32 0.00390625, %v4560_v53 }
 0xb61   : > { %v4566_v2 = vsub.f32 %v4544_v41, %v4564_v11  ;;  %v4567_v22 = vsub.f32 %v4545_v48, %v4564_v11 }
 0xb62   : > { %v4563_v3 = vpop.xlane.xlu0 %4562 }
 0xb63   : > { %v4565_v59 = vmul.f32 0.00390625, %v4563_v3  ;;  %v4570_v4 = vmul.f32 %v4566_v2, %v4566_v2  ;;  %v4571_v5 = vmul.f32 %v4567_v22, %v4567_v22 }
 0xb65   : > { %v4568_v6 = vsub.f32 %v4546_v56, %v4565_v59  ;;  %v4569_v0 = vsub.f32 %v4547_v61, %v4565_v59  ;;  %v4574_v38 = vadd.f32 %v4571_v5, %v4570_v4 }
 0xb67   : > { %4575 = vadd.xlane.f32.xlu1 %v4574_v38  ;;  %v4572_v28 = vmul.f32 %v4568_v6, %v4568_v6  ;;  %v4573_v31 = vmul.f32 %v4569_v0, %v4569_v0 }
 0xb69   : > { %v4577_v14 = vadd.f32 %v4573_v31, %v4572_v28 }
 0xb6b   : > { %4578 = vadd.xlane.f32.xlu1 %v4577_v14 }
 0xbf0   : > { %v4576_v16 = vpop.xlane.xlu1 %4575 }
 0xbf1   : > { %v4580_v17 = vmul.f32 0.00390625, %v4576_v16 }
 0xbf3   : > { %v4582_v12 = vadd.f32 1e-05, %v4580_v17 }
 0xbf4   : > { %v4579_v20 = vpop.xlane.xlu1 %4578 }
 0xbf5   : > { %6331 = vrsqrt.f32 %v4582_v12  ;;  %v4581_v23 = vmul.f32 0.00390625, %v4579_v20 }
 0xbf7   : > { %v4583_v24 = vadd.f32 1e-05, %v4581_v23 }
 0xbf9   : > { %6333 = vrsqrt.f32 %v4583_v24 }
 0xc02   : > { %v6332_v18 = vpop.eup %6331 }
 0xc03   : > { %v4587_v29 = vmul.f32 %v6332_v18, %v4567_v22  ;;  %v4586_v26 = vmul.f32 %v6332_v18, %v4566_v2 }
 0xc05   : > { %v4602_v40 = vmul.f32 %v4598_v32, %v4587_v29  ;;  %v4601_v42 = vmul.f32 %v4594_v30, %v4586_v26 }
 0xc06   : > { %v6334_v34 = vpop.eup %6333 }
 0xc07   : > { %v4589_v37 = vmul.f32 %v6334_v34, %v4569_v0  ;;  %v4588_v41 = vmul.f32 %v6334_v34, %v4568_v6  ;;  %v4617_v47 = vadd.f32 %v4613_v36, %v4602_v40  ;;  %v4616_v49 = vadd.f32 %v4609_v35, %v4601_v42 }
 0xc09   : > { %v4604_v43 = vmul.f32 %v4598_v32, %v4589_v37  ;;  %v4603_v46 = vmul.f32 %v4594_v30, %v4588_v41 }
 0xc0b   : > { %v4619_v48 = vadd.f32 %v4613_v36, %v4604_v43  ;;  %v4618_v54 = vadd.f32 %v4609_v35, %v4603_v46 }
 0xc0d   : > { %v4621_v55 = vpack.c.bf16 %v4619_v48, %v4617_v47  ;;  %v4620_v56 = vpack.c.bf16 %v4618_v54, %v4616_v49 }
 0xc0f   : > { %4782 = vmatprep.mubr.bf16.mxu0 %v4621_v55 }
 0xc10   : > { %4783 = vmatmul.mubr.bf16.vlgmr.msra.gmra.mxu0 %v4620_v56 }
 0xcd0   : > { %v5627_v57 = vpop.f32.mrf.mxu0 }
 0xcd2   : > { %v5628_v63 = vpop.f32.mrf.mxu0 }
 0xcd3   : > { %v5629_v61 = vadd.f32 %v5628_v63, %v5627_v57 }
 0xcd4   : > { %v5630_v62 = vpop.f32.mrf.mxu0 }
 0xcd5   : > { %4791 = vst [vmem:[%s7352_s3] sm:$0xff] %v5629_v61 }
 0xcd6   : > { %v5631_v51 = vpop.f32.mrf.mxu0 }
 0xcd7   : > { %v5632_v58 = vadd.f32 %v5631_v51, %v5630_v62 }
 0xcd9   : > { %4792 = vst [vmem:[%s7352_s3 + $0x8] sm:$0xff] %v5632_v58 }
 0xcda PF: > { %s8183_s29 = sld [smem:[#allocation31_spill]]  ;;  %s4807_s25 = sshll.u32 %s7352_s3, 4  ;;  %s8001_s25 = int_to_ptr.vmem [resolvable:$true] %s4807_s25 }
 0xcdb   : > { %s8184_s23 = sld [smem:[#allocation39_spill]]  ;;  %s4794_s8 = scalar_lea.sflag [#allocation5], %s7294_s20 }
 0xcdc   : > { %s8185_s5 = sld [smem:[#allocation58_spill]]  ;;  %s6691_s19 = scalar_lea.vmem %s8001_s25, 256 }
 0xcdd   : > { %p6692_p12 = scmp.ne.s32.totalorder %s8001_s25, %s6691_s19  ;;  %s6855_s17 = smov [#allocation20]  }
 0xcde   : > { %s6695_s11 = sshll.u32 %s6855_s17, 4  ;;  %s6696_s11 = int_to_ptr.vmem [resolvable:$false] %s6695_s11 }
 0xcdf   : > { %s6697_s24 = scalar_lea.vmem %s6696_s11, 512  ;;  %p6698_p6 = scmp.lt.s32.totalorder %s8001_s25, %s6696_s11 }
 0xce0   : > { %s5602_s15 = sshll.u32 %s8183_s29, 8  ;;  %p6699_p4 = scmp.lt.s32.totalorder %s6697_s24, %s6691_s19 }
 0xce1   : > { %p8186_p13 = scmp.ne.s32.totalorder %s8184_s23, 0 }
 0xce2   : > { %s7998_s30 = scalar_lea.hbm %s8185_s5, %s5602_s15  ;;  %p6700_p8 = por %p6699_p4, %p6698_p6 }
 0xce3   : > { %p6693_p10 = pnand %p6692_p12, %p8186_p13 }
 0xce5   : > { %p6694_p11 = pneg %p6693_p10 }
 0xce7   : > { %p6701_p5 = pnand %p6700_p8, %p6694_p11 }
 0xce9   : > { %6704 = shalt.err (!%p6701_p5)
}
 0xcea   : > { %s6705_s3 = scalar_lea.hbm %s7998_s30, 256  ;;  %s6709_s22 = scalar_lea.hbm %s8185_s5, 512 }
 0xceb   : > { %p6706_p9 = scmp.ne.s32.totalorder %s7998_s30, %s6705_s3  ;;  %p6710_p3 = scmp.lt.s32.totalorder %s7998_s30, %s8185_s5 }
 0xcec   : > { %p6711_p1 = scmp.lt.s32.totalorder %s6709_s22, %s6705_s3 }
 0xced   : > { %p6707_p2 = pnand %p6706_p9, %p8186_p13 }
 0xcee   : > { %p6712_p7 = por %p6711_p1, %p6710_p3 }
 0xcef   : > { %p6708_p0 = pneg %p6707_p2 }
 0xcf1   : > { %p6713_p12 = pnand %p6712_p7, %p6708_p0 }
 0xcf3   : > { %6716 = shalt.err (!%p6713_p12)
}
 0xcf4   : > { %s6856_s10 = smov 128   ;;  %s6857_s26 = smov 8  }
 0xcf5   : > { %5694 = dma.vmem_to_hbm [thread:$0]  (%p8186_p13), %s8001_s25, 256, %s7998_s30, %s4794_s8, %s6856_s10, %s6856_s10, %s6857_s26  }
 0xcf6 PF: > { %s8187_s4 = sld [smem:[#allocation33_spill]] }
 0xcf7   : > { %s8188_s14 = sld [smem:[#allocation28_spill]] }
 0xcf8   : > { %s8189_s1 = sld [smem:[#allocation36_spill]] }
 0xcfc   : > { %p5750_p10 = scmp.ge.s32.totalorder %s8187_s4, 2 }
 0xcfd   : > { %s4822_s13 = sand.u32 1, %s8188_s14  }
 0xcfe   : > { %p8190_p11 = scmp.ne.s32.totalorder %s8189_s1, 0  ;;  %s4823_s12 = scalar_lea.sflag [#allocation5], %s4822_s13 }
 0xd00   : > { %p5738_p6 = pnand %p5750_p10, %p8190_p11 }
 0xd02   : > { %p5739_p4 = pneg %p5738_p6 }
 0xd04   : > { %6782 = dma.done.wait (%p5739_p4), %s4823_s12, 256  }
 0xd05   : > { %6784 = vsyncadd (%p5739_p4), %s4823_s12, 4294967040  ;;  %s36_s2 = sadd.s32 1, %s8187_s4   ;;  %s8191_s16 = sld [smem:[#allocation27_spill]] }
 0xd06   : > { %p33_p8 = scmp.ge.s32.totalorder %s36_s2, 6   ;;  %s8192_s29 = sld [smem:[#allocation38_spill]] }
 0xd07   : > { %s8193_s20 = sld [smem:[#allocation29_spill]]  ;;  %s8198_s27 = smov %s6791_s28 }
 0xd08   : > { %s8194_s19 = sld [smem:[#allocation37_spill]]  ;;  %s8200_s30 = smov %s6803_s0 }
 0xd09   : > { %s8195_s23 = sld [smem:[#allocation32_spill]]  ;;  %s8202_s1 = smov %s6819_s21 }
 0xd0a   : > { %s8196_s15 = sld [smem:[#allocation34_spill]] }
 0xd0b   : > { %s8197_s22 = sld [smem:[#allocation35_spill]]  ;;  %s8199_s28 = smov %s8191_s16 }
 0xd0c   :  { %35 = sbr.rel (!%p33_p8) target bundleno = 31 (0x1f), region = 258 }
 0xd0d   : > { %s8201_s0 = smov %s8193_s20 }
 0xd0f   : > { %s8203_s20 = smov %s8195_s23 }
 0xd10   : > { %s8204_s21 = smov %s8196_s15 }
 0xd11   :  { %4828 = vsyncpa [#allocation4], 1 }
 0xd12   :  { %4830 = vsyncpa [#allocation4 + $0x1], 1 }
 0xd13   :  { %4831 = vsyncpa [#allocation7], 1 }
 0xd14   :  { %4832 = vsyncpa [#allocation10], 1 }
 0xd15   :  { %4833 = vsyncpa [#allocation5], 1 }
 0xd16   :  { %4835 = vsyncpa [#allocation5 + $0x1], 1 }

</bundles_post_ra>
